<compile_context>
chip_gen: v5e
topology: v5e:2x2
jax: 0.10.0
libtpu: 0.0.40
codegen_flags: <defaults>
</compile_context>

<pallas_src>
import functools

import numpy as np
import jax
import jax.numpy as jnp
from jax.experimental import pallas as pl
from jax.experimental.pallas import tpu as pltpu


# ----------------------------------------------------------------------------
# Pallas matmul kernel (fused ReLU epilogue, f32 accumulation)
# ----------------------------------------------------------------------------
_TM = 128  # row tile
_TN = 128  # column tile (used when N is a larger multiple of 128)

COMPUTE_DTYPE = jnp.bfloat16  # MXU operand dtype (accumulation stays f32)
FILTERS = [64, 128, 256]


def _mm_relu_kernel(a_ref, b_ref, o_ref, *, relu):
    acc = jnp.dot(a_ref[...], b_ref[...], preferred_element_type=jnp.float32)
    if relu:
        acc = jnp.maximum(acc, 0.0)          # f32 epilogue (v5e-safe)
    o_ref[...] = acc.astype(o_ref.dtype)


def pallas_matmul(a, b, *, relu=False, out_dtype=jnp.float32):
    """(M,K) @ (K,N) [+ ReLU] on the MXU.

    Rows tiled by 128 (partial last block handled by Pallas, no pad copy);
    columns tiled by 128 when N is a larger multiple of 128 so there are >=2
    parallel grid steps for megacore sharding.
    """
    M, K = a.shape
    K2, N = b.shape
    assert K == K2
    tm = _TM if M >= _TM else M
    tn = _TN if (N > _TN and N % _TN == 0) else N
    gm = pl.cdiv(M, tm)
    gn = N // tn

    return pl.pallas_call(
        functools.partial(_mm_relu_kernel, relu=relu),
        out_shape=jax.ShapeDtypeStruct((M, N), out_dtype),
        grid=(gm, gn),
        in_specs=[
            pl.BlockSpec((tm, K), lambda i, j: (i, 0)),
            pl.BlockSpec((K, tn), lambda i, j: (0, j)),
        ],
        out_specs=pl.BlockSpec((tm, tn), lambda i, j: (i, j)),
        compiler_params=pltpu.CompilerParams(
            dimension_semantics=("parallel", "parallel")),
    )(a, b)


# ----------------------------------------------------------------------------
# NHWC glue: im2col for 3x3/stride-1/pad-1 convs, 2x2 max-pool
# ----------------------------------------------------------------------------
def _im2col_3x3(x):
    """x: (B,H,W,C) -> (B,H,W,9*C); feature ordering (ky, kx, cin)."""
    B, H, W, C = x.shape
    xp = jnp.pad(x, ((0, 0), (1, 1), (1, 1), (0, 0)))
    cols = []
    for dy in range(3):
        for dx in range(3):
            cols.append(xp[:, dy:dy + H, dx:dx + W, :])
    return jnp.concatenate(cols, axis=-1)


def conv3x3_relu(x, w, *, out_dtype):
    """x: (B,H,W,Cin) NHWC, w: (3,3,Cin,Cout) HWIO.  ReLU fused in the kernel."""
    B, H, W, C = x.shape
    kh, kw, cin, cout = w.shape
    patches = _im2col_3x3(x).reshape(B * H * W, kh * kw * cin)
    out = pallas_matmul(patches, w.reshape(kh * kw * cin, cout),
                        relu=True, out_dtype=out_dtype)
    return out.reshape(B, H, W, cout)


def maxpool2_nhwc(x):
    B, H, W, C = x.shape
    return x.reshape(B, H // 2, 2, W // 2, 2, C).max(axis=(2, 4))


# ----------------------------------------------------------------------------
# Parameters (deterministic synthetic init; conv3x3 has bias=False)
# ----------------------------------------------------------------------------
def _conv_init(key, cin, cout):
    fan_in = 9 * cin
    w = jax.random.normal(key, (3, 3, cin, cout), jnp.float32) * np.sqrt(2.0 / fan_in)
    return w.astype(COMPUTE_DTYPE)


def init_params(key, in_ch=3, filters=FILTERS):
    ks = jax.random.split(key, 6)
    return {
        "conv1_a": _conv_init(ks[0], in_ch, filters[0]),
        "conv1_b": _conv_init(ks[1], filters[0], filters[0]),
        "conv2_a": _conv_init(ks[2], filters[0], filters[1]),
        "conv2_b": _conv_init(ks[3], filters[1], filters[1]),
        "conv3_a": _conv_init(ks[4], filters[2 - 1], filters[2]),
        "conv3_b": _conv_init(ks[5], filters[2], filters[2]),
    }


# ----------------------------------------------------------------------------
# Base_CNN forward
# ----------------------------------------------------------------------------
def base_cnn_forward(params, x_nchw):
    """x_nchw: (B,3,H,W) f32 -> (B, filters[2]*(H//8)*(W//8)) f32."""
    h = jnp.transpose(x_nchw, (0, 2, 3, 1)).astype(COMPUTE_DTYPE)  # NHWC, bf16

    h = conv3x3_relu(h, params["conv1_a"], out_dtype=COMPUTE_DTYPE)
    h = conv3x3_relu(h, params["conv1_b"], out_dtype=COMPUTE_DTYPE)
    h = maxpool2_nhwc(h)

    h = conv3x3_relu(h, params["conv2_a"], out_dtype=COMPUTE_DTYPE)
    h = conv3x3_relu(h, params["conv2_b"], out_dtype=COMPUTE_DTYPE)
    h = maxpool2_nhwc(h)

    h = conv3x3_relu(h, params["conv3_a"], out_dtype=COMPUTE_DTYPE)
    h = conv3x3_relu(h, params["conv3_b"], out_dtype=jnp.float32)
    h = maxpool2_nhwc(h)

    # torch.flatten(out, 1) flattens NCHW channel-major
    return jnp.transpose(h, (0, 3, 1, 2)).reshape(h.shape[0], -1)


# ----------------------------------------------------------------------------
# Pure-JAX reference (mirrors the bf16 operand rounding of the Pallas path)
# ----------------------------------------------------------------------------
def _ref_forward(params, x_nchw):
    h = jnp.transpose(x_nchw, (0, 2, 3, 1)).astype(COMPUTE_DTYPE)
    order = ["conv1_a", "conv1_b", "conv2_a", "conv2_b", "conv3_a", "conv3_b"]
    for name in order:
        w = params[name].astype(jnp.float32)
        y = jax.lax.conv_general_dilated(
            h.astype(jnp.float32), w, (1, 1), ((1, 1), (1, 1)),
            dimension_numbers=("NHWC", "HWIO", "NHWC"))
        y = jnp.maximum(y, 0.0)
        h = y.astype(jnp.float32 if name == "conv3_b" else COMPUTE_DTYPE)
        if name in ("conv1_b", "conv2_b", "conv3_b"):
            h = maxpool2_nhwc(h)
    return jnp.transpose(h, (0, 3, 1, 2)).reshape(h.shape[0], -1)


# ----------------------------------------------------------------------------
if __name__ == "__main__":
    key = jax.random.PRNGKey(0)
    k_x, k_p = jax.random.split(key)
    B, C, H, W = 2, 3, 16, 16
    x = jax.random.normal(k_x, (B, C, H, W), jnp.float32)
    params = init_params(k_p, in_ch=C)

    fwd = jax.jit(base_cnn_forward)
    out = fwd(params, x)
    jax.block_until_ready(out)

    assert out.shape == (B, FILTERS[2] * (H // 8) * (W // 8)), out.shape

    ref = _ref_forward(params, x)
    max_err = float(jnp.max(jnp.abs(out - ref)))
    scale = float(jnp.max(jnp.abs(ref))) + 1e-6
    assert max_err / scale < 2e-2, f"mismatch: abs {max_err}, rel {max_err / scale}"

    print("KERNEL_OK")
</pallas_src>

<mosaic_0001>
module attributes {stable_mosaic.version = 11 : i64} {
  func.func @_mm_relu_kernel(%arg0: i32, %arg1: i32, %arg2: memref<128x27xbf16, #tpu.memory_space<vmem>>, %arg3: memref<27x64xbf16, #tpu.memory_space<vmem>>, %arg4: memref<128x64xbf16, #tpu.memory_space<vmem>>) attributes {dimension_semantics = [#tpu.dimension_semantics<parallel>, #tpu.dimension_semantics<parallel>], iteration_bounds = array<i64: 4, 1>, scalar_prefetch = 0 : i64, scratch_operands = 0 : i64, tpu.core_type = #tpu.core_type<tc>, window_params = [{transform_indices = @transform_0, window_bounds = array<i64: 128, 27>}, {transform_indices = @transform_1, window_bounds = array<i64: 27, 64>}, {transform_indices = @transform_2, window_bounds = array<i64: 128, 64>}]} {
    %c0 = arith.constant 0 : index
    %c0_0 = arith.constant 0 : index
    %0 = vector.load %arg2[%c0, %c0_0] : memref<128x27xbf16, #tpu.memory_space<vmem>>, vector<128x27xbf16>
    %c0_1 = arith.constant 0 : index
    %c0_2 = arith.constant 0 : index
    %1 = vector.load %arg3[%c0_1, %c0_2] : memref<27x64xbf16, #tpu.memory_space<vmem>>, vector<27x64xbf16>
    %cst = arith.constant dense<0.000000e+00> : vector<128x64xf32>
    %2 = tpu.matmul %0, %1, %cst {dimension_numbers = #tpu.dot_dimension_numbers<[1], [0], [0], [1], [0, 0, 1, 1], [], []>} : vector<128x27xbf16>, vector<27x64xbf16>, vector<128x64xf32> -> vector<128x64xf32>
    %cst_3 = arith.constant 0.000000e+00 : f32
    %3 = vector.broadcast %cst_3 : f32 to vector<128x64xf32>
    %4 = arith.maximumf %2, %3 : vector<128x64xf32>
    %5 = arith.truncf %4 : vector<128x64xf32> to vector<128x64xbf16>
    %c0_4 = arith.constant 0 : index
    %c0_5 = arith.constant 0 : index
    %6 = vector.load %arg4[%c0_4, %c0_5] : memref<128x64xbf16, #tpu.memory_space<vmem>>, vector<128x64xbf16>
    tpu.vector_store %arg4[%c0_4, %c0_5], %5 {strides = array<i32>} : memref<128x64xbf16, #tpu.memory_space<vmem>>, vector<128x64xbf16>,
    return
  }
  func.func @transform_0(%arg0: i32, %arg1: i32) -> (i32, i32) {
    %c0_i32 = arith.constant 0 : i32
    %c0_i32_0 = arith.constant 0 : i32
    return %arg0, %c0_i32 : i32, i32
  }
  func.func @transform_1(%arg0: i32, %arg1: i32) -> (i32, i32) {
    %c0_i32 = arith.constant 0 : i32
    %c0_i32_0 = arith.constant 0 : i32
    return %c0_i32, %arg1 : i32, i32
  }
  func.func @transform_2(%arg0: i32, %arg1: i32) -> (i32, i32) {
    %c0_i32 = arith.constant 0 : i32
    return %arg0, %arg1 : i32, i32
  }
}

module attributes {stable_mosaic.version = 11 : i64} {
  func.func @_mm_relu_kernel(%arg0: i32, %arg1: i32, %arg2: memref<128x576xbf16, #tpu.memory_space<vmem>>, %arg3: memref<576x64xbf16, #tpu.memory_space<vmem>>, %arg4: memref<128x64xbf16, #tpu.memory_space<vmem>>) attributes {dimension_semantics = [#tpu.dimension_semantics<parallel>, #tpu.dimension_semantics<parallel>], iteration_bounds = array<i64: 4, 1>, scalar_prefetch = 0 : i64, scratch_operands = 0 : i64, tpu.core_type = #tpu.core_type<tc>, window_params = [{transform_indices = @transform_0, window_bounds = array<i64: 128, 576>}, {transform_indices = @transform_1, window_bounds = array<i64: 576, 64>}, {transform_indices = @transform_2, window_bounds = array<i64: 128, 64>}]} {
    %c0 = arith.constant 0 : index
    %c0_0 = arith.constant 0 : index
    %0 = vector.load %arg2[%c0, %c0_0] : memref<128x576xbf16, #tpu.memory_space<vmem>>, vector<128x576xbf16>
    %c0_1 = arith.constant 0 : index
    %c0_2 = arith.constant 0 : index
    %1 = vector.load %arg3[%c0_1, %c0_2] : memref<576x64xbf16, #tpu.memory_space<vmem>>, vector<576x64xbf16>
    %cst = arith.constant dense<0.000000e+00> : vector<128x64xf32>
    %2 = tpu.matmul %0, %1, %cst {dimension_numbers = #tpu.dot_dimension_numbers<[1], [0], [0], [1], [0, 0, 1, 1], [], []>} : vector<128x576xbf16>, vector<576x64xbf16>, vector<128x64xf32> -> vector<128x64xf32>
    %cst_3 = arith.constant 0.000000e+00 : f32
    %3 = vector.broadcast %cst_3 : f32 to vector<128x64xf32>
    %4 = arith.maximumf %2, %3 : vector<128x64xf32>
    %5 = arith.truncf %4 : vector<128x64xf32> to vector<128x64xbf16>
    %c0_4 = arith.constant 0 : index
    %c0_5 = arith.constant 0 : index
    %6 = vector.load %arg4[%c0_4, %c0_5] : memref<128x64xbf16, #tpu.memory_space<vmem>>, vector<128x64xbf16>
    tpu.vector_store %arg4[%c0_4, %c0_5], %5 {strides = array<i32>} : memref<128x64xbf16, #tpu.memory_space<vmem>>, vector<128x64xbf16>,
    return
  }
  func.func @transform_0(%arg0: i32, %arg1: i32) -> (i32, i32) {
    %c0_i32 = arith.constant 0 : i32
    %c0_i32_0 = arith.constant 0 : i32
    return %arg0, %c0_i32 : i32, i32
  }
  func.func @transform_1(%arg0: i32, %arg1: i32) -> (i32, i32) {
    %c0_i32 = arith.constant 0 : i32
    %c0_i32_0 = arith.constant 0 : i32
    return %c0_i32, %arg1 : i32, i32
  }
  func.func @transform_2(%arg0: i32, %arg1: i32) -> (i32, i32) {
    %c0_i32 = arith.constant 0 : i32
    return %arg0, %arg1 : i32, i32
  }
}

module attributes {stable_mosaic.version = 11 : i64} {
  func.func @_mm_relu_kernel(%arg0: i32, %arg1: i32, %arg2: memref<128x576xbf16, #tpu.memory_space<vmem>>, %arg3: memref<576x128xbf16, #tpu.memory_space<vmem>>, %arg4: memref<128x128xbf16, #tpu.memory_space<vmem>>) attributes {dimension_semantics = [#tpu.dimension_semantics<parallel>, #tpu.dimension_semantics<parallel>], iteration_bounds = array<i64: 1, 1>, scalar_prefetch = 0 : i64, scratch_operands = 0 : i64, tpu.core_type = #tpu.core_type<tc>, window_params = [{transform_indices = @transform_0, window_bounds = array<i64: 128, 576>}, {transform_indices = @transform_1, window_bounds = array<i64: 576, 128>}, {transform_indices = @transform_2, window_bounds = array<i64: 128, 128>}]} {
    %c0 = arith.constant 0 : index
    %c0_0 = arith.constant 0 : index
    %0 = vector.load %arg2[%c0, %c0_0] : memref<128x576xbf16, #tpu.memory_space<vmem>>, vector<128x576xbf16>
    %c0_1 = arith.constant 0 : index
    %c0_2 = arith.constant 0 : index
    %1 = vector.load %arg3[%c0_1, %c0_2] : memref<576x128xbf16, #tpu.memory_space<vmem>>, vector<576x128xbf16>
    %cst = arith.constant dense<0.000000e+00> : vector<128x128xf32>
    %2 = tpu.matmul %0, %1, %cst {dimension_numbers = #tpu.dot_dimension_numbers<[1], [0], [0], [1], [0, 0, 1, 1], [], []>} : vector<128x576xbf16>, vector<576x128xbf16>, vector<128x128xf32> -> vector<128x128xf32>
    %cst_3 = arith.constant 0.000000e+00 : f32
    %3 = vector.broadcast %cst_3 : f32 to vector<128x128xf32>
    %4 = arith.maximumf %2, %3 : vector<128x128xf32>
    %5 = arith.truncf %4 : vector<128x128xf32> to vector<128x128xbf16>
    %c0_4 = arith.constant 0 : index
    %c0_5 = arith.constant 0 : index
    %6 = vector.load %arg4[%c0_4, %c0_5] : memref<128x128xbf16, #tpu.memory_space<vmem>>, vector<128x128xbf16>
    tpu.vector_store %arg4[%c0_4, %c0_5], %5 {strides = array<i32>} : memref<128x128xbf16, #tpu.memory_space<vmem>>, vector<128x128xbf16>,
    return
  }
  func.func @transform_0(%arg0: i32, %arg1: i32) -> (i32, i32) {
    %c0_i32 = arith.constant 0 : i32
    %c0_i32_0 = arith.constant 0 : i32
    return %arg0, %c0_i32 : i32, i32
  }
  func.func @transform_1(%arg0: i32, %arg1: i32) -> (i32, i32) {
    %c0_i32 = arith.constant 0 : i32
    %c0_i32_0 = arith.constant 0 : i32
    return %c0_i32, %arg1 : i32, i32
  }
  func.func @transform_2(%arg0: i32, %arg1: i32) -> (i32, i32) {
    %c0_i32 = arith.constant 0 : i32
    return %arg0, %arg1 : i32, i32
  }
}

module attributes {stable_mosaic.version = 11 : i64} {
  func.func @_mm_relu_kernel(%arg0: i32, %arg1: i32, %arg2: memref<128x1152xbf16, #tpu.memory_space<vmem>>, %arg3: memref<1152x128xbf16, #tpu.memory_space<vmem>>, %arg4: memref<128x128xbf16, #tpu.memory_space<vmem>>) attributes {dimension_semantics = [#tpu.dimension_semantics<parallel>, #tpu.dimension_semantics<parallel>], iteration_bounds = array<i64: 1, 1>, scalar_prefetch = 0 : i64, scratch_operands = 0 : i64, tpu.core_type = #tpu.core_type<tc>, window_params = [{transform_indices = @transform_0, window_bounds = array<i64: 128, 1152>}, {transform_indices = @transform_1, window_bounds = array<i64: 1152, 128>}, {transform_indices = @transform_2, window_bounds = array<i64: 128, 128>}]} {
    %c0 = arith.constant 0 : index
    %c0_0 = arith.constant 0 : index
    %0 = vector.load %arg2[%c0, %c0_0] : memref<128x1152xbf16, #tpu.memory_space<vmem>>, vector<128x1152xbf16>
    %c0_1 = arith.constant 0 : index
    %c0_2 = arith.constant 0 : index
    %1 = vector.load %arg3[%c0_1, %c0_2] : memref<1152x128xbf16, #tpu.memory_space<vmem>>, vector<1152x128xbf16>
    %cst = arith.constant dense<0.000000e+00> : vector<128x128xf32>
    %2 = tpu.matmul %0, %1, %cst {dimension_numbers = #tpu.dot_dimension_numbers<[1], [0], [0], [1], [0, 0, 1, 1], [], []>} : vector<128x1152xbf16>, vector<1152x128xbf16>, vector<128x128xf32> -> vector<128x128xf32>
    %cst_3 = arith.constant 0.000000e+00 : f32
    %3 = vector.broadcast %cst_3 : f32 to vector<128x128xf32>
    %4 = arith.maximumf %2, %3 : vector<128x128xf32>
    %5 = arith.truncf %4 : vector<128x128xf32> to vector<128x128xbf16>
    %c0_4 = arith.constant 0 : index
    %c0_5 = arith.constant 0 : index
    %6 = vector.load %arg4[%c0_4, %c0_5] : memref<128x128xbf16, #tpu.memory_space<vmem>>, vector<128x128xbf16>
    tpu.vector_store %arg4[%c0_4, %c0_5], %5 {strides = array<i32>} : memref<128x128xbf16, #tpu.memory_space<vmem>>, vector<128x128xbf16>,
    return
  }
  func.func @transform_0(%arg0: i32, %arg1: i32) -> (i32, i32) {
    %c0_i32 = arith.constant 0 : i32
    %c0_i32_0 = arith.constant 0 : i32
    return %arg0, %c0_i32 : i32, i32
  }
  func.func @transform_1(%arg0: i32, %arg1: i32) -> (i32, i32) {
    %c0_i32 = arith.constant 0 : i32
    %c0_i32_0 = arith.constant 0 : i32
    return %c0_i32, %arg1 : i32, i32
  }
  func.func @transform_2(%arg0: i32, %arg1: i32) -> (i32, i32) {
    %c0_i32 = arith.constant 0 : i32
    return %arg0, %arg1 : i32, i32
  }
}

module attributes {stable_mosaic.version = 11 : i64} {
  func.func @_mm_relu_kernel(%arg0: i32, %arg1: i32, %arg2: memref<32x1152xbf16, #tpu.memory_space<vmem>>, %arg3: memref<1152x128xbf16, #tpu.memory_space<vmem>>, %arg4: memref<32x128xbf16, #tpu.memory_space<vmem>>) attributes {dimension_semantics = [#tpu.dimension_semantics<parallel>, #tpu.dimension_semantics<parallel>], iteration_bounds = array<i64: 1, 2>, scalar_prefetch = 0 : i64, scratch_operands = 0 : i64, tpu.core_type = #tpu.core_type<tc>, window_params = [{transform_indices = @transform_0, window_bounds = array<i64: 32, 1152>}, {transform_indices = @transform_1, window_bounds = array<i64: 1152, 128>}, {transform_indices = @transform_2, window_bounds = array<i64: 32, 128>}]} {
    %c0 = arith.constant 0 : index
    %c0_0 = arith.constant 0 : index
    %0 = vector.load %arg2[%c0, %c0_0] : memref<32x1152xbf16, #tpu.memory_space<vmem>>, vector<32x1152xbf16>
    %c0_1 = arith.constant 0 : index
    %c0_2 = arith.constant 0 : index
    %1 = vector.load %arg3[%c0_1, %c0_2] : memref<1152x128xbf16, #tpu.memory_space<vmem>>, vector<1152x128xbf16>
    %cst = arith.constant dense<0.000000e+00> : vector<32x128xf32>
    %2 = tpu.matmul %0, %1, %cst {dimension_numbers = #tpu.dot_dimension_numbers<[1], [0], [0], [1], [0, 0, 1, 1], [], []>} : vector<32x1152xbf16>, vector<1152x128xbf16>, vector<32x128xf32> -> vector<32x128xf32>
    %cst_3 = arith.constant 0.000000e+00 : f32
    %3 = vector.broadcast %cst_3 : f32 to vector<32x128xf32>
    %4 = arith.maximumf %2, %3 : vector<32x128xf32>
    %5 = arith.truncf %4 : vector<32x128xf32> to vector<32x128xbf16>
    %c0_4 = arith.constant 0 : index
    %c0_5 = arith.constant 0 : index
    %6 = vector.load %arg4[%c0_4, %c0_5] : memref<32x128xbf16, #tpu.memory_space<vmem>>, vector<32x128xbf16>
    tpu.vector_store %arg4[%c0_4, %c0_5], %5 {strides = array<i32>} : memref<32x128xbf16, #tpu.memory_space<vmem>>, vector<32x128xbf16>,
    return
  }
  func.func @transform_0(%arg0: i32, %arg1: i32) -> (i32, i32) {
    %c0_i32 = arith.constant 0 : i32
    %c0_i32_0 = arith.constant 0 : i32
    return %arg0, %c0_i32 : i32, i32
  }
  func.func @transform_1(%arg0: i32, %arg1: i32) -> (i32, i32) {
    %c0_i32 = arith.constant 0 : i32
    %c0_i32_0 = arith.constant 0 : i32
    return %c0_i32, %arg1 : i32, i32
  }
  func.func @transform_2(%arg0: i32, %arg1: i32) -> (i32, i32) {
    %c0_i32 = arith.constant 0 : i32
    return %arg0, %arg1 : i32, i32
  }
}

module attributes {stable_mosaic.version = 11 : i64} {
  func.func @_mm_relu_kernel(%arg0: i32, %arg1: i32, %arg2: memref<32x2304xbf16, #tpu.memory_space<vmem>>, %arg3: memref<2304x128xbf16, #tpu.memory_space<vmem>>, %arg4: memref<32x128xf32, #tpu.memory_space<vmem>>) attributes {dimension_semantics = [#tpu.dimension_semantics<parallel>, #tpu.dimension_semantics<parallel>], iteration_bounds = array<i64: 1, 2>, scalar_prefetch = 0 : i64, scratch_operands = 0 : i64, tpu.core_type = #tpu.core_type<tc>, window_params = [{transform_indices = @transform_0, window_bounds = array<i64: 32, 2304>}, {transform_indices = @transform_1, window_bounds = array<i64: 2304, 128>}, {transform_indices = @transform_2, window_bounds = array<i64: 32, 128>}]} {
    %c0 = arith.constant 0 : index
    %c0_0 = arith.constant 0 : index
    %0 = vector.load %arg2[%c0, %c0_0] : memref<32x2304xbf16, #tpu.memory_space<vmem>>, vector<32x2304xbf16>
    %c0_1 = arith.constant 0 : index
    %c0_2 = arith.constant 0 : index
    %1 = vector.load %arg3[%c0_1, %c0_2] : memref<2304x128xbf16, #tpu.memory_space<vmem>>, vector<2304x128xbf16>
    %cst = arith.constant dense<0.000000e+00> : vector<32x128xf32>
    %2 = tpu.matmul %0, %1, %cst {dimension_numbers = #tpu.dot_dimension_numbers<[1], [0], [0], [1], [0, 0, 1, 1], [], []>} : vector<32x2304xbf16>, vector<2304x128xbf16>, vector<32x128xf32> -> vector<32x128xf32>
    %cst_3 = arith.constant 0.000000e+00 : f32
    %3 = vector.broadcast %cst_3 : f32 to vector<32x128xf32>
    %4 = arith.maximumf %2, %3 : vector<32x128xf32>
    %c0_4 = arith.constant 0 : index
    %c0_5 = arith.constant 0 : index
    %5 = vector.load %arg4[%c0_4, %c0_5] : memref<32x128xf32, #tpu.memory_space<vmem>>, vector<32x128xf32>
    tpu.vector_store %arg4[%c0_4, %c0_5], %4 {strides = array<i32>} : memref<32x128xf32, #tpu.memory_space<vmem>>, vector<32x128xf32>,
    return
  }
  func.func @transform_0(%arg0: i32, %arg1: i32) -> (i32, i32) {
    %c0_i32 = arith.constant 0 : i32
    %c0_i32_0 = arith.constant 0 : i32
    return %arg0, %c0_i32 : i32, i32
  }
  func.func @transform_1(%arg0: i32, %arg1: i32) -> (i32, i32) {
    %c0_i32 = arith.constant 0 : i32
    %c0_i32_0 = arith.constant 0 : i32
    return %c0_i32, %arg1 : i32, i32
  }
  func.func @transform_2(%arg0: i32, %arg1: i32) -> (i32, i32) {
    %c0_i32 = arith.constant 0 : i32
    return %arg0, %arg1 : i32, i32
  }
}

</mosaic_0001>

<bundles_post_ra>
// kernel: base_cnn_forward.6
= control target key start
LH: loop header
LB: loop body
LE: loop exit
PB: predicated region body
PF: predicated region fallthrough
CT: control target
= control target key end

     0   :  { %s617_s9 = smov 0   ;;  %s619_s10 = smov 0   ;;  %s708_s0 = inlined_call_operand.vmem [shape: bf16[512,27], index: 0, kind: input, shape index: {}]   ;;  %s709_s1 = inlined_call_operand.vmem [shape: bf16[27,64], index: 1, kind: input, shape index: {}]   ;;  %s710_s2 = inlined_call_operand.vmem [shape: bf16[512,64], index: 2, kind: output, shape index: {}]  }
   0x1   :  { %s621_s11 = smov 0  }
   0x2 LB: > { %s24_s12 = sadd.s32 1, %s595_s10  ;;  %p481_p0 = scmp.ge.s32.totalorder %s599_s11, 1  ;;  %s599_s11 = sphi %s621_s11, %s12_s11   ;;  %s595_s10 = sphi %s619_s10, %s712_s10   ;;  %s591_s9 = sphi %s617_s9, %s711_s9  }
   0x3   : > { %p26_p1 = scmp.ge.s32.totalorder %s24_s12, 4  ;;  %p136_p2 = scmp.lt.s32.totalorder %s599_s11, 5 }
   0x5   : > { %s714_s12 = smov (%p26_p1, %s24_s12), 0  ;;  %p137_p3 = pnand %p481_p0, %p136_p2 }
   0x6   : > { %s482_s17 = sshll.u32 (!%p137_p3), %s591_s9, 4 }
   0x7   : > { %140 = sbr.rel (%p137_p3) target bundleno = 188 (0xbc), region = 28  ;;  %p166_p4 = scmp.lt.s32.totalorder (!%p137_p3), %s482_s17, 63 }
   0xc   : > { %v524_v0 = vld [vmem:[%s709_s1 + $0x8] sm:$0xf]  ;;  %v545_v1 = vld [vmem:[%s709_s1 + $0x8] sm:$0x30]  ;;  %vm281_vm0 = vcmask 1044480   ;;  %vm282_vm1 = vcmask 1045504  }
   0xd   : > { %v525_v2 = vor.u32 %v545_v1, %v524_v0  ;;  %v601_v3 = vmov 65535   ;;  %s716_s17 = smov (!%p166_p4, %s482_s17), 63  ;;  %v544_v7 = vld [vmem:[%s709_s1] sm:$0xff]  ;;  %vm256_vm2 = vcmask 220160   ;;  %vm369_vm3 = vcmask 519168  }
   0xe   : > { %v283_v4 = vsel %vm281_vm0, 4294967295, %v601_v3  ;;  %s483_s20 = sshll.u32 %s716_s17, 2 }
   0xf   : > { %v284_v5 = vsel %vm282_vm1, %v283_v4, 0  ;;  %s169_s23 = scalar_lea.vmem %s708_s0, %s483_s20  ;;  %s665_s26 = scalar_lea.vmem %s710_s2, %s483_s20 }
  0x10   : > { %v286_v6 = vand.u32 %v525_v2, %v284_v5  ;;  %v536_v8 = vld [vmem:[%s169_s23] sm:$0xff]  ;;  %v538_v9 = vld [vmem:[%s169_s23 + $0x10] sm:$0xff]  ;;  %v537_v12 = vld [vmem:[%s169_s23 + $0x8] sm:$0xff] }
  0x11   : > { %v540_v10 = vld [vmem:[%s169_s23 + $0x20] sm:$0xff]  ;;  %v542_v11 = vld [vmem:[%s169_s23 + $0x30] sm:$0xff]  ;;  %v539_v13 = vld [vmem:[%s169_s23 + $0x18] sm:$0xff] }
  0x12   : > { %294 = vmatpush.bf16.msra.mxu0 %v286_v6  ;;  %546 = vmatpush.bf16.msra.mxu1 %v286_v6  ;;  %v541_v14 = vld [vmem:[%s169_s23 + $0x28] sm:$0xff]  ;;  %v543_v15 = vld [vmem:[%s169_s23 + $0x38] sm:$0xff] }
  0x13   : > { %547 = vmatpush.bf16.msra.mxu2 %v286_v6  ;;  %548 = vmatpush.bf16.msra.mxu3 %v286_v6 }
  0x16   : > { %295 = vmatpush.bf16.msra.mxu0 %v544_v7  ;;  %549 = vmatpush.bf16.msra.mxu1 %v544_v7 }
  0x17   : > { %550 = vmatpush.bf16.msra.mxu2 %v544_v7  ;;  %551 = vmatpush.bf16.msra.mxu3 %v544_v7 }
  0x19   : > { %526 = vmatmul.msk.bf16.vlgmr.msra.gmra.mxu0 %vm256_vm2, %v536_v8  ;;  %528 = vmatmul.msk.bf16.vlgmr.msra.gmra.mxu1 %vm256_vm2, %v538_v9 }
  0x1a   : > { %530 = vmatmul.msk.bf16.vlgmr.msra.gmra.mxu2 %vm256_vm2, %v540_v10  ;;  %532 = vmatmul.msk.bf16.vlgmr.msra.gmra.mxu3 %vm256_vm2, %v542_v11 }
  0x29   : > { %527 = vmatmul.msk.bf16.gmra.mxu0 %vm256_vm2, %v537_v12  ;;  %529 = vmatmul.msk.bf16.gmra.mxu1 %vm256_vm2, %v539_v13 }
  0x2a   : > { %531 = vmatmul.msk.bf16.gmra.mxu2 %vm256_vm2, %v541_v14  ;;  %533 = vmatmul.msk.bf16.gmra.mxu3 %vm256_vm2, %v543_v15 }
  0x96   : > { %v297_v16 = vpop.f32.mrf.mxu0  ;;  %v307_v17 = vpop.f32.mrf.mxu1 }
  0x97   : > { %v337_v18 = vmax.f32 %v297_v16, 0.0  ;;  %v341_v19 = vmax.f32 %v307_v17, 0.0 }
  0x99   : > { %v353_v20 = vpack.c.bf16 %v337_v18, %v337_v18  ;;  %v357_v21 = vpack.c.bf16 %v341_v19, %v341_v19 }
  0x9b   : > { %370 = vst.msk [vmem:[%s665_s26] sm:$0xf] %vm369_vm3, %v353_v20 }
  0x9c   : > { %374 = vst.msk [vmem:[%s665_s26 + $0x10] sm:$0xf] %vm369_vm3, %v357_v21 }
  0x9d   : > { %v317_v22 = vpop.f32.mrf.mxu2  ;;  %v327_v23 = vpop.f32.mrf.mxu3 }
  0x9e   : > { %v345_v24 = vmax.f32 %v317_v22, 0.0  ;;  %v349_v25 = vmax.f32 %v327_v23, 0.0  ;;  %v299_v26 = vpop.f32.mrf.mxu0  ;;  %v309_v27 = vpop.f32.mrf.mxu1 }
  0x9f   : > { %v338_v28 = vmax.f32 %v299_v26, 0.0  ;;  %v342_v29 = vmax.f32 %v309_v27, 0.0 }
  0xa0   : > { %v361_v30 = vpack.c.bf16 %v345_v24, %v345_v24  ;;  %v365_v31 = vpack.c.bf16 %v349_v25, %v349_v25 }
  0xa1   : > { %v354_v32 = vpack.c.bf16 %v338_v28, %v338_v28  ;;  %v358_v33 = vpack.c.bf16 %v342_v29, %v342_v29 }
  0xa2   : > { %378 = vst.msk [vmem:[%s665_s26 + $0x20] sm:$0xf] %vm369_vm3, %v361_v30 }
  0xa3   : > { %382 = vst.msk [vmem:[%s665_s26 + $0x30] sm:$0xf] %vm369_vm3, %v365_v31 }
  0xa4   : > { %371 = vst.msk [vmem:[%s665_s26 + $0x4] sm:$0xf] %vm369_vm3, %v354_v32 }
  0xa5   : > { %375 = vst.msk [vmem:[%s665_s26 + $0x14] sm:$0xf] %vm369_vm3, %v358_v33  ;;  %v319_v34 = vpop.f32.mrf.mxu2  ;;  %v329_v35 = vpop.f32.mrf.mxu3 }
  0xa6   : > { %v346_v36 = vmax.f32 %v319_v34, 0.0  ;;  %v350_v37 = vmax.f32 %v329_v35, 0.0  ;;  %v302_v38 = vpop.f32.mrf.mxu0  ;;  %v312_v39 = vpop.f32.mrf.mxu1 }
  0xa7   : > { %v339_v40 = vmax.f32 %v302_v38, 0.0  ;;  %v343_v41 = vmax.f32 %v312_v39, 0.0 }
  0xa8   : > { %v362_v42 = vpack.c.bf16 %v346_v36, %v346_v36  ;;  %v366_v43 = vpack.c.bf16 %v350_v37, %v350_v37 }
  0xa9   : > { %v355_v44 = vpack.c.bf16 %v339_v40, %v339_v40  ;;  %v359_v45 = vpack.c.bf16 %v343_v41, %v343_v41 }
  0xaa   : > { %379 = vst.msk [vmem:[%s665_s26 + $0x24] sm:$0xf] %vm369_vm3, %v362_v42 }
  0xab   : > { %383 = vst.msk [vmem:[%s665_s26 + $0x34] sm:$0xf] %vm369_vm3, %v366_v43 }
  0xac   : > { %372 = vst.msk [vmem:[%s665_s26 + $0x8] sm:$0xf] %vm369_vm3, %v355_v44 }
  0xad   : > { %376 = vst.msk [vmem:[%s665_s26 + $0x18] sm:$0xf] %vm369_vm3, %v359_v45  ;;  %v322_v46 = vpop.f32.mrf.mxu2  ;;  %v332_v47 = vpop.f32.mrf.mxu3 }
  0xae   : > { %v347_v48 = vmax.f32 %v322_v46, 0.0  ;;  %v351_v49 = vmax.f32 %v332_v47, 0.0  ;;  %v304_v50 = vpop.f32.mrf.mxu0  ;;  %v314_v51 = vpop.f32.mrf.mxu1 }
  0xaf   : > { %v340_v52 = vmax.f32 %v304_v50, 0.0  ;;  %v344_v53 = vmax.f32 %v314_v51, 0.0 }
  0xb0   : > { %v363_v54 = vpack.c.bf16 %v347_v48, %v347_v48  ;;  %v367_v55 = vpack.c.bf16 %v351_v49, %v351_v49 }
  0xb1   : > { %v356_v56 = vpack.c.bf16 %v340_v52, %v340_v52  ;;  %v360_v57 = vpack.c.bf16 %v344_v53, %v344_v53 }
  0xb2   : > { %380 = vst.msk [vmem:[%s665_s26 + $0x28] sm:$0xf] %vm369_vm3, %v363_v54 }
  0xb3   : > { %384 = vst.msk [vmem:[%s665_s26 + $0x38] sm:$0xf] %vm369_vm3, %v367_v55 }
  0xb4   : > { %373 = vst.msk [vmem:[%s665_s26 + $0xc] sm:$0xf] %vm369_vm3, %v356_v56 }
  0xb5   : > { %377 = vst.msk [vmem:[%s665_s26 + $0x1c] sm:$0xf] %vm369_vm3, %v360_v57  ;;  %v324_v58 = vpop.f32.mrf.mxu2  ;;  %v334_v59 = vpop.f32.mrf.mxu3 }
  0xb6   : > { %v348_v60 = vmax.f32 %v324_v58, 0.0  ;;  %v352_v61 = vmax.f32 %v334_v59, 0.0 }
  0xb8   : > { %v364_v62 = vpack.c.bf16 %v348_v60, %v348_v60  ;;  %v368_v63 = vpack.c.bf16 %v352_v61, %v352_v61 }
  0xba   : > { %381 = vst.msk [vmem:[%s665_s26 + $0x2c] sm:$0xf] %vm369_vm3, %v364_v62 }
  0xbb   : > { %385 = vst.msk [vmem:[%s665_s26 + $0x3c] sm:$0xf] %vm369_vm3, %v368_v63 }
  0xbc PF: > { %s12_s11 = sadd.s32 1, %s599_s11   ;;  %s711_s9 = smov %s595_s10 }
  0xbd   : > { %p9_p5 = scmp.ge.s32.totalorder %s12_s11, 6   ;;  %s712_s10 = smov %s714_s12 }
  0xbf   :  { %11 = sbr.rel (!%p9_p5) target bundleno = 2 (0x2), region = 61 }

// kernel: base_cnn_forward.7
= control target key start
LH: loop header
LB: loop body
LE: loop exit
PB: predicated region body
PF: predicated region fallthrough
CT: control target
= control target key end

     0   :  { %s1621_s9 = smov 0   ;;  %s1623_s10 = smov 0   ;;  %s1929_s0 = inlined_call_operand.vmem [shape: bf16[512,576], index: 0, kind: input, shape index: {}]   ;;  %s1930_s1 = inlined_call_operand.vmem [shape: bf16[576,64], index: 1, kind: input, shape index: {}]   ;;  %s1931_s2 = inlined_call_operand.vmem [shape: bf16[512,64], index: 2, kind: output, shape index: {}]  }
   0x1   :  { %s1625_s11 = smov 0  }
   0x2 LB: > { %s24_s12 = sadd.s32 1, %s1600_s10  ;;  %p1138_p0 = scmp.ge.s32.totalorder %s1604_s11, 1  ;;  %s1604_s11 = sphi %s1625_s11, %s12_s11   ;;  %s1600_s10 = sphi %s1623_s10, %s1933_s10   ;;  %s1596_s9 = sphi %s1621_s9, %s1932_s9  }
   0x3   : > { %p26_p1 = scmp.ge.s32.totalorder %s24_s12, 4  ;;  %p137_p2 = scmp.lt.s32.totalorder %s1604_s11, 5 }
   0x5   : > { %s1935_s12 = smov (%p26_p1, %s24_s12), 0  ;;  %p138_p3 = pnand %p1138_p0, %p137_p2 }
   0x6   : > { %s1139_s19 = sshll.u32 (!%p138_p3), %s1596_s9, 4 }
   0x7   : > { %141 = sbr.rel (%p138_p3) target bundleno = 339 (0x153), region = 28  ;;  %p168_p4 = scmp.lt.s32.totalorder (!%p138_p3), %s1139_s19, 63 }
   0xc   : > { %v1504_v0 = vld [vmem:[%s1930_s1 + $0x38] sm:$0xff]  ;;  %v1503_v1 = vld [vmem:[%s1930_s1 + $0x30] sm:$0xff]  ;;  %v1502_v2 = vld [vmem:[%s1930_s1 + $0x28] sm:$0xff]  ;;  %s1937_s19 = smov (!%p168_p4, %s1139_s19), 63  ;;  %vm724_vm0 = vcmask 523264   ;;  %vm1026_vm1 = vcmask 519168  }
   0xd   : > { %1533 = vmatpush.bf16.msra.mxu1 %v1504_v0  ;;  %1534 = vmatpush.bf16.msra.mxu2 %v1504_v0  ;;  %v1501_v3 = vld [vmem:[%s1930_s1 + $0x20] sm:$0xff]  ;;  %v1500_v4 = vld [vmem:[%s1930_s1 + $0x18] sm:$0xff]  ;;  %v1499_v5 = vld [vmem:[%s1930_s1 + $0x10] sm:$0xff]  ;;  %s1557_s26 = smul.u32 20, %s1937_s19 }
   0xe   : > { %1535 = vmatpush.bf16.msra.mxu3 %v1504_v0  ;;  %749 = vmatpush.bf16.msra.mxu0 %v1504_v0  ;;  %v1498_v6 = vld [vmem:[%s1930_s1 + $0x8] sm:$0xff]  ;;  %v1497_v7 = vld [vmem:[%s1930_s1] sm:$0xff]  ;;  %v1520_v16 = vld [vmem:[%s1930_s1 + $0xb8] sm:$0xff] }
   0xf   : > { %s1669_s3 = scalar_lea.vmem %s1929_s0, %s1557_s26  ;;  %v1512_v17 = vld [vmem:[%s1930_s1 + $0x78] sm:$0xff]  ;;  %v1519_v24 = vld [vmem:[%s1930_s1 + $0xb0] sm:$0xff]  ;;  %v1518_v28 = vld [vmem:[%s1930_s1 + $0xa8] sm:$0xff] }
  0x10   : > { %v1185_v8 = vld [vmem:[%s1669_s3 + $0x50] sm:$0xf]  ;;  %v1469_v9 = vld [vmem:[%s1669_s3 + $0x60] sm:$0xf0]  ;;  %v1225_v10 = vld [vmem:[%s1669_s3 + $0xa0] sm:$0xf] }
  0x11   : > { %1536 = vmatpush.bf16.msra.mxu1 %v1503_v1  ;;  %1537 = vmatpush.bf16.msra.mxu2 %v1503_v1  ;;  %v1479_v11 = vld [vmem:[%s1669_s3 + $0xb0] sm:$0xf0]  ;;  %v1265_v12 = vld [vmem:[%s1669_s3 + $0xf0] sm:$0xf]  ;;  %v1489_v13 = vld [vmem:[%s1669_s3 + $0x100] sm:$0xf0]  ;;  %v1186_v18 = vor.u32 %v1469_v9, %v1185_v8 }
  0x12   : > { %1538 = vmatpush.bf16.msra.mxu3 %v1503_v1  ;;  %750 = vmatpush.bf16.msra.mxu0 %v1503_v1  ;;  %v1145_v14 = vld [vmem:[%s1669_s3] sm:$0xf]  ;;  %v1459_v15 = vld [vmem:[%s1669_s3 + $0x10] sm:$0xf0]  ;;  %v1226_v19 = vor.u32 %v1479_v11, %v1225_v10  ;;  %v1266_v20 = vor.u32 %v1489_v13, %v1265_v12  ;;  %v1528_v22 = vld [vmem:[%s1930_s1 + $0xf8] sm:$0xff] }
  0x13   : > { %v1146_v21 = vor.u32 %v1459_v15, %v1145_v14  ;;  %v1532_v23 = vld [vmem:[%s1930_s1 + $0x118] sm:$0xff]  ;;  %v1511_v25 = vld [vmem:[%s1930_s1 + $0x70] sm:$0xff]  ;;  %v1510_v29 = vld [vmem:[%s1930_s1 + $0x68] sm:$0xff] }
  0x14   : > { %v1527_v26 = vld [vmem:[%s1930_s1 + $0xf0] sm:$0xff]  ;;  %v1526_v30 = vld [vmem:[%s1930_s1 + $0xe8] sm:$0xff]  ;;  %v1517_v32 = vld [vmem:[%s1930_s1 + $0xa0] sm:$0xff] }
  0x15   : > { %1539 = vmatpush.bf16.msra.mxu1 %v1502_v2  ;;  %1540 = vmatpush.bf16.msra.mxu2 %v1502_v2  ;;  %v1531_v27 = vld [vmem:[%s1930_s1 + $0x110] sm:$0xff]  ;;  %v1530_v31 = vld [vmem:[%s1930_s1 + $0x108] sm:$0xff]  ;;  %v1509_v33 = vld [vmem:[%s1930_s1 + $0x60] sm:$0xff] }
  0x16   : > { %1541 = vmatpush.bf16.msra.mxu3 %v1502_v2  ;;  %751 = vmatpush.bf16.msra.mxu0 %v1502_v2  ;;  %v1525_v34 = vld [vmem:[%s1930_s1 + $0xe0] sm:$0xff]  ;;  %v1205_v35 = vld [vmem:[%s1669_s3 + $0x78] sm:$0xf]  ;;  %v1474_v36 = vld [vmem:[%s1669_s3 + $0x88] sm:$0xf0] }
  0x17   : > { %v1245_v37 = vld [vmem:[%s1669_s3 + $0xc8] sm:$0xf]  ;;  %v1484_v38 = vld [vmem:[%s1669_s3 + $0xd8] sm:$0xf0]  ;;  %v1285_v39 = vld [vmem:[%s1669_s3 + $0x118] sm:$0xf]  ;;  %v1206_v46 = vor.u32 %v1474_v36, %v1205_v35 }
  0x18   : > { %v1494_v40 = vld [vmem:[%s1669_s3 + $0x128] sm:$0xf0]  ;;  %v1165_v41 = vld [vmem:[%s1669_s3 + $0x28] sm:$0xf]  ;;  %v1464_v42 = vld [vmem:[%s1669_s3 + $0x38] sm:$0xf0]  ;;  %v1246_v47 = vor.u32 %v1484_v38, %v1245_v37 }
  0x19   : > { %1542 = vmatpush.bf16.msra.mxu1 %v1501_v3  ;;  %1543 = vmatpush.bf16.msra.mxu2 %v1501_v3  ;;  %v1529_v43 = vld [vmem:[%s1930_s1 + $0x100] sm:$0xff]  ;;  %v1516_v44 = vld [vmem:[%s1930_s1 + $0x98] sm:$0xff]  ;;  %v1286_v48 = vor.u32 %v1494_v40, %v1285_v39  ;;  %v1166_v49 = vor.u32 %v1464_v42, %v1165_v41  ;;  %v1515_v51 = vld [vmem:[%s1930_s1 + $0x90] sm:$0xff] }
  0x1a   : > { %1544 = vmatpush.bf16.msra.mxu3 %v1501_v3  ;;  %752 = vmatpush.bf16.msra.mxu0 %v1501_v3  ;;  %v1508_v45 = vld [vmem:[%s1930_s1 + $0x58] sm:$0xff]  ;;  %v1507_v52 = vld [vmem:[%s1930_s1 + $0x50] sm:$0xff]  ;;  %v1514_v54 = vld [vmem:[%s1930_s1 + $0x88] sm:$0xff] }
  0x1b   : > { %v1524_v50 = vld [vmem:[%s1930_s1 + $0xd8] sm:$0xff]  ;;  %v1523_v53 = vld [vmem:[%s1930_s1 + $0xd0] sm:$0xff]  ;;  %v1506_v55 = vld [vmem:[%s1930_s1 + $0x48] sm:$0xff] }
  0x1c   : > { %v1522_v56 = vld [vmem:[%s1930_s1 + $0xc8] sm:$0xff]  ;;  %v1513_v57 = vld [vmem:[%s1930_s1 + $0x80] sm:$0xff]  ;;  %v1147_v61 = vld [vmem:[%s1669_s3 + $0x14] sm:$0xf0] }
  0x1d   : > { %1545 = vmatpush.bf16.msra.mxu1 %v1500_v4  ;;  %1546 = vmatpush.bf16.msra.mxu2 %v1500_v4  ;;  %v1505_v58 = vld [vmem:[%s1930_s1 + $0x40] sm:$0xff]  ;;  %v1153_v62 = vld [vmem:[%s1669_s3 + $0x8] sm:$0xf]  ;;  %v1460_v63 = vld [vmem:[%s1669_s3 + $0x18] sm:$0xf0] }
  0x1e   : > { %1547 = vmatpush.bf16.msra.mxu3 %v1500_v4  ;;  %753 = vmatpush.bf16.msra.mxu0 %v1500_v4  ;;  %v1521_v59 = vld [vmem:[%s1930_s1 + $0xc0] sm:$0xff]  ;;  %v1458_v0 = vld [vmem:[%s1669_s3 + $0xc] sm:$0xf]  ;;  %v1161_v2 = vld [vmem:[%s1669_s3 + $0x10] sm:$0xf] }
  0x1f   : > { %v1457_v60 = vld [vmem:[%s1669_s3 + $0x4] sm:$0xf]  ;;  %v1155_v1 = vld [vmem:[%s1669_s3 + $0x1c] sm:$0xf0]  ;;  %v1462_v8 = vld [vmem:[%s1669_s3 + $0x2c] sm:$0xf] }
  0x20   : > { %v1461_v3 = vld [vmem:[%s1669_s3 + $0x20] sm:$0xf0]  ;;  %v1150_v4 = vor.u32 %v1457_v60, %v1147_v61  ;;  %v1167_v9 = vld [vmem:[%s1669_s3 + $0x3c] sm:$0xf0]  ;;  %v1173_v10 = vld [vmem:[%s1669_s3 + $0x30] sm:$0xf] }
  0x21   : > { %1548 = vmatpush.bf16.msra.mxu1 %v1499_v5  ;;  %1549 = vmatpush.bf16.msra.mxu2 %v1499_v5  ;;  %v1465_v11 = vld [vmem:[%s1669_s3 + $0x40] sm:$0xf0]  ;;  %v1463_v12 = vld [vmem:[%s1669_s3 + $0x34] sm:$0xf]  ;;  %v1175_v13 = vld [vmem:[%s1669_s3 + $0x44] sm:$0xf0] }
  0x22   : > { %1550 = vmatpush.bf16.msra.mxu3 %v1499_v5  ;;  %754 = vmatpush.bf16.msra.mxu0 %v1499_v5  ;;  %v1154_v5 = vor.u32 %v1460_v63, %v1153_v62  ;;  %v1181_v14 = vld [vmem:[%s1669_s3 + $0x38] sm:$0xf]  ;;  %v1466_v15 = vld [vmem:[%s1669_s3 + $0x48] sm:$0xf0]  ;;  %v1475_v35 = vld [vmem:[%s1669_s3 + $0x90] sm:$0xf0] }
  0x23   : > { %v1473_v36 = vld [vmem:[%s1669_s3 + $0x84] sm:$0xf]  ;;  %v1215_v37 = vld [vmem:[%s1669_s3 + $0x94] sm:$0xf0]  ;;  %v1221_v38 = vld [vmem:[%s1669_s3 + $0x88] sm:$0xf] }
  0x24   : > { %v1476_v39 = vld [vmem:[%s1669_s3 + $0x98] sm:$0xf0]  ;;  %v1218_v42 = vor.u32 %v1473_v36, %v1215_v37  ;;  %v1483_v60 = vld [vmem:[%s1669_s3 + $0xd4] sm:$0xf]  ;;  %v1255_v61 = vld [vmem:[%s1669_s3 + $0xe4] sm:$0xf0] }
  0x25   : > { %1551 = vmatpush.bf16.msra.mxu1 %v1498_v6  ;;  %1552 = vmatpush.bf16.msra.mxu2 %v1498_v6  ;;  %v1261_v62 = vld [vmem:[%s1669_s3 + $0xd8] sm:$0xf]  ;;  %v1486_v63 = vld [vmem:[%s1669_s3 + $0xe8] sm:$0xf0] }
  0x26   : > { %1553 = vmatpush.bf16.msra.mxu3 %v1498_v6  ;;  %755 = vmatpush.bf16.msra.mxu0 %v1498_v6  ;;  %v1158_v6 = vor.u32 %v1458_v0, %v1155_v1 }
  0x29   : > { %1554 = vmatpush.bf16.msra.mxu1 %v1497_v7  ;;  %1555 = vmatpush.bf16.msra.mxu2 %v1497_v7 }
  0x2a   : > { %1556 = vmatpush.bf16.msra.mxu3 %v1497_v7  ;;  %756 = vmatpush.bf16.msra.mxu0 %v1497_v7  ;;  %v1162_v7 = vor.u32 %v1461_v3, %v1161_v2  ;;  %v1258_v2 = vor.u32 %v1483_v60, %v1255_v61  ;;  %v1262_v3 = vor.u32 %v1486_v63, %v1261_v62 }
  0x2c   : > { %767 = vmatmul.bf16.vlgmr.msra.gmra.mxu1 %v1186_v18  ;;  %777 = vmatmul.bf16.vlgmr.msra.gmra.mxu2 %v1226_v19  ;;  %v1178_v18 = vor.u32 %v1463_v12, %v1175_v13  ;;  %v1182_v19 = vor.u32 %v1466_v15, %v1181_v14 }
  0x2d   : > { %847 = vmatpush.bf16.msrb.mxu2 %v1520_v16  ;;  %798 = vmatpush.bf16.msrb.mxu1 %v1512_v17  ;;  %v1170_v16 = vor.u32 %v1462_v8, %v1167_v9  ;;  %v1174_v17 = vor.u32 %v1465_v11, %v1173_v10  ;;  %v1488_v8 = vld [vmem:[%s1669_s3 + $0xfc] sm:$0xf]  ;;  %v1275_v9 = vld [vmem:[%s1669_s3 + $0x10c] sm:$0xf0]  ;;  %v1281_v10 = vld [vmem:[%s1669_s3 + $0x100] sm:$0xf] }
  0x2e   : > { %787 = vmatmul.bf16.vlgmr.msra.gmra.mxu3 %v1266_v20  ;;  %757 = vmatmul.bf16.vlgmr.msra.gmra.mxu0 %v1146_v21  ;;  %v1467_v20 = vld [vmem:[%s1669_s3 + $0x54] sm:$0xf]  ;;  %v1187_v21 = vld [vmem:[%s1669_s3 + $0x64] sm:$0xf0]  ;;  %v1278_v15 = vor.u32 %v1488_v8, %v1275_v9 }
  0x2f   : > { %896 = vmatpush.bf16.msrb.mxu3 %v1528_v22  ;;  %949 = vmatpush.bf16.msrb.mxu0 %v1532_v23  ;;  %v1193_v22 = vld [vmem:[%s1669_s3 + $0x58] sm:$0xf]  ;;  %v1470_v23 = vld [vmem:[%s1669_s3 + $0x68] sm:$0xf0]  ;;  %v1491_v11 = vld [vmem:[%s1669_s3 + $0x110] sm:$0xf0] }
  0x31   : > { %848 = vmatpush.bf16.msrb.mxu2 %v1519_v24  ;;  %799 = vmatpush.bf16.msrb.mxu1 %v1511_v25  ;;  %v1468_v24 = vld [vmem:[%s1669_s3 + $0x5c] sm:$0xf]  ;;  %v1195_v25 = vld [vmem:[%s1669_s3 + $0x6c] sm:$0xf0] }
  0x33   : > { %897 = vmatpush.bf16.msrb.mxu3 %v1527_v26  ;;  %950 = vmatpush.bf16.msrb.mxu0 %v1531_v27  ;;  %v1201_v26 = vld [vmem:[%s1669_s3 + $0x60] sm:$0xf]  ;;  %v1471_v27 = vld [vmem:[%s1669_s3 + $0x70] sm:$0xf0] }
  0x35   : > { %849 = vmatpush.bf16.msrb.mxu2 %v1518_v28  ;;  %800 = vmatpush.bf16.msrb.mxu1 %v1510_v29  ;;  %v1190_v28 = vor.u32 %v1467_v20, %v1187_v21  ;;  %v1194_v29 = vor.u32 %v1470_v23, %v1193_v22  ;;  %v1492_v22 = vld [vmem:[%s1669_s3 + $0x11c] sm:$0xf]  ;;  %v1287_v23 = vld [vmem:[%s1669_s3 + $0x12c] sm:$0xf0] }
  0x37   : > { %898 = vmatpush.bf16.msrb.mxu3 %v1526_v30  ;;  %951 = vmatpush.bf16.msrb.mxu0 %v1530_v31  ;;  %v1198_v30 = vor.u32 %v1468_v24, %v1195_v25  ;;  %v1202_v31 = vor.u32 %v1471_v27, %v1201_v26  ;;  %v1293_v24 = vld [vmem:[%s1669_s3 + $0x120] sm:$0xf]  ;;  %v1495_v25 = vld [vmem:[%s1669_s3 + $0x130] sm:$0xf0]  ;;  %v1493_v26 = vld [vmem:[%s1669_s3 + $0x124] sm:$0xf] }
  0x38   : > { %v1295_v27 = vld [vmem:[%s1669_s3 + $0x134] sm:$0xf0] }
  0x39   : > { %850 = vmatpush.bf16.msrb.mxu2 %v1517_v32  ;;  %801 = vmatpush.bf16.msrb.mxu1 %v1509_v33  ;;  %v1472_v32 = vld [vmem:[%s1669_s3 + $0x7c] sm:$0xf]  ;;  %v1207_v33 = vld [vmem:[%s1669_s3 + $0x8c] sm:$0xf0] }
  0x3a   : > { %v1210_v40 = vor.u32 %v1472_v32, %v1207_v33  ;;  %v1290_v32 = vor.u32 %v1492_v22, %v1287_v23  ;;  %v1294_v33 = vor.u32 %v1495_v25, %v1293_v24 }
  0x3b   : > { %899 = vmatpush.bf16.msrb.mxu3 %v1525_v34  ;;  %952 = vmatpush.bf16.msrb.mxu0 %v1529_v43  ;;  %v1213_v34 = vld [vmem:[%s1669_s3 + $0x80] sm:$0xf]  ;;  %v1222_v43 = vor.u32 %v1476_v39, %v1221_v38 }
  0x3c   : > { %772 = vmatmul.bf16.gmra.mxu1 %v1206_v46  ;;  %782 = vmatmul.bf16.gmra.mxu2 %v1246_v47  ;;  %v1214_v41 = vor.u32 %v1475_v35, %v1213_v34  ;;  %v1233_v46 = vld [vmem:[%s1669_s3 + $0xa8] sm:$0xf]  ;;  %v1480_v47 = vld [vmem:[%s1669_s3 + $0xb8] sm:$0xf0]  ;;  %v1298_v35 = vor.u32 %v1493_v26, %v1295_v27 }
  0x3d   : > { %851 = vmatpush.bf16.msrb.mxu2 %v1516_v44  ;;  %802 = vmatpush.bf16.msrb.mxu1 %v1508_v45  ;;  %v1477_v44 = vld [vmem:[%s1669_s3 + $0xa4] sm:$0xf]  ;;  %v1227_v45 = vld [vmem:[%s1669_s3 + $0xb4] sm:$0xf0] }
  0x3e   : > { %792 = vmatmul.bf16.gmra.mxu3 %v1286_v48  ;;  %762 = vmatmul.bf16.gmra.mxu0 %v1166_v49  ;;  %v1478_v48 = vld [vmem:[%s1669_s3 + $0xac] sm:$0xf]  ;;  %v1235_v49 = vld [vmem:[%s1669_s3 + $0xbc] sm:$0xf0] }
  0x3f   : > { %900 = vmatpush.bf16.msrb.mxu3 %v1524_v50  ;;  %v1241_v50 = vld [vmem:[%s1669_s3 + $0xb0] sm:$0xf] }
  0x41   : > { %852 = vmatpush.bf16.msrb.mxu2 %v1515_v51  ;;  %803 = vmatpush.bf16.msrb.mxu1 %v1507_v52  ;;  %v1481_v51 = vld [vmem:[%s1669_s3 + $0xc0] sm:$0xf0]  ;;  %v1230_v52 = vor.u32 %v1477_v44, %v1227_v45 }
  0x43   : > { %901 = vmatpush.bf16.msrb.mxu3 %v1523_v53  ;;  %v1234_v53 = vor.u32 %v1480_v47, %v1233_v46 }
  0x45   : > { %853 = vmatpush.bf16.msrb.mxu2 %v1514_v54  ;;  %804 = vmatpush.bf16.msrb.mxu1 %v1506_v55  ;;  %v1238_v54 = vor.u32 %v1478_v48, %v1235_v49  ;;  %v1242_v55 = vor.u32 %v1481_v51, %v1241_v50 }
  0x47   : > { %902 = vmatpush.bf16.msrb.mxu3 %v1522_v56  ;;  %v1482_v56 = vld [vmem:[%s1669_s3 + $0xcc] sm:$0xf] }
  0x49   : > { %854 = vmatpush.bf16.msrb.mxu2 %v1513_v57  ;;  %805 = vmatpush.bf16.msrb.mxu1 %v1505_v58  ;;  %v1247_v57 = vld [vmem:[%s1669_s3 + $0xdc] sm:$0xf0]  ;;  %v1253_v58 = vld [vmem:[%s1669_s3 + $0xd0] sm:$0xf] }
  0x4a   : > { %v1250_v0 = vor.u32 %v1482_v56, %v1247_v57 }
  0x4b   : > { %903 = vmatpush.bf16.msrb.mxu3 %v1521_v59  ;;  %v1485_v59 = vld [vmem:[%s1669_s3 + $0xe0] sm:$0xf0] }
  0x4c   : > { %806 = vmatmul.bf16.vlgmr.msrb.gmra.mxu1 %v1150_v4  ;;  %855 = vmatmul.bf16.vlgmr.msrb.gmra.mxu2 %v1154_v5  ;;  %v1254_v1 = vor.u32 %v1485_v59, %v1253_v58  ;;  %v1487_v4 = vld [vmem:[%s1669_s3 + $0xf4] sm:$0xf]  ;;  %v1267_v5 = vld [vmem:[%s1669_s3 + $0x104] sm:$0xf0] }
  0x4d   : > { %v1270_v12 = vor.u32 %v1487_v4, %v1267_v5 }
  0x4e   : > { %904 = vmatmul.bf16.vlgmr.msrb.gmra.mxu3 %v1158_v6  ;;  %1447 = vmatmul.msk.bf16.vlgmr.msrb.gmra.mxu0 %vm724_vm0, %v1162_v7  ;;  %v1273_v6 = vld [vmem:[%s1669_s3 + $0xf8] sm:$0xf]  ;;  %v1490_v7 = vld [vmem:[%s1669_s3 + $0x108] sm:$0xf0] }
  0x4f   : > { %v1274_v13 = vor.u32 %v1490_v7, %v1273_v6 }
  0x5c   : > { %811 = vmatmul.bf16.gmra.mxu1 %v1170_v16  ;;  %860 = vmatmul.bf16.gmra.mxu2 %v1174_v17  ;;  %v1282_v16 = vor.u32 %v1491_v11, %v1281_v10 }
  0x5e   : > { %909 = vmatmul.bf16.gmra.mxu3 %v1178_v18  ;;  %1448 = vmatmul.msk.bf16.gmra.mxu0 %vm724_vm0, %v1182_v19 }
  0x6c   : > { %816 = vmatmul.bf16.gmra.mxu1 %v1190_v28  ;;  %865 = vmatmul.bf16.gmra.mxu2 %v1194_v29  ;;  %v1301_v28 = vld [vmem:[%s1669_s3 + $0x128] sm:$0xf]  ;;  %v1496_v29 = vld [vmem:[%s1669_s3 + $0x138] sm:$0xf0]  ;;  %s1142_s3 = sshll.u32 %s1937_s19, 2 }
  0x6d   : > { %v1302_v36 = vor.u32 %v1496_v29, %v1301_v28  ;;  %s1874_s22 = scalar_lea.vmem %s1931_s2, %s1142_s3 }
  0x6e   : > { %914 = vmatmul.bf16.gmra.mxu3 %v1198_v30  ;;  %1449 = vmatmul.msk.bf16.gmra.mxu0 %vm724_vm0, %v1202_v31 }
  0x7c   : > { %821 = vmatmul.bf16.gmra.mxu1 %v1210_v40  ;;  %870 = vmatmul.bf16.gmra.mxu2 %v1214_v41 }
  0x7e   : > { %919 = vmatmul.bf16.gmra.mxu3 %v1218_v42  ;;  %1450 = vmatmul.msk.bf16.gmra.mxu0 %vm724_vm0, %v1222_v43 }
  0x8c   : > { %826 = vmatmul.bf16.gmra.mxu1 %v1230_v52  ;;  %875 = vmatmul.bf16.gmra.mxu2 %v1234_v53 }
  0x8e   : > { %924 = vmatmul.bf16.gmra.mxu3 %v1238_v54  ;;  %1451 = vmatmul.msk.bf16.gmra.mxu0 %vm724_vm0, %v1242_v55 }
  0x9c   : > { %831 = vmatmul.bf16.gmra.mxu1 %v1250_v0  ;;  %880 = vmatmul.bf16.gmra.mxu2 %v1254_v1 }
  0x9e   : > { %929 = vmatmul.bf16.gmra.mxu3 %v1258_v2  ;;  %1452 = vmatmul.msk.bf16.gmra.mxu0 %vm724_vm0, %v1262_v3 }
  0xa9   : > { %v1836_v14 = vpop.f32.mrf.mxu1 }
  0xab   : > { %v758_v17 = vpop.f32.mrf.mxu0 }
  0xac   : > { %836 = vmatmul.bf16.gmra.mxu1 %v1270_v12  ;;  %885 = vmatmul.bf16.gmra.mxu2 %v1274_v13 }
  0xae   : > { %934 = vmatmul.bf16.gmra.mxu3 %v1278_v15  ;;  %1453 = vmatmul.msk.bf16.gmra.mxu0 %vm724_vm0, %v1282_v16 }
  0xaf   : > { %v1839_v18 = vpop.f32.mrf.mxu2 }
  0xb1   : > { %v1841_v19 = vpop.f32.mrf.mxu3  ;;  %v1843_v20 = vpop.f32.mrf.mxu1 }
  0xb3   : > { %v760_v21 = vpop.f32.mrf.mxu0 }
  0xb7   : > { %v1853_v30 = vpop.f32.mrf.mxu2 }
  0xb9   : > { %v1855_v31 = vpop.f32.mrf.mxu3  ;;  %v1857_v34 = vpop.f32.mrf.mxu1 }
  0xbb   : > { %v763_v37 = vpop.f32.mrf.mxu0 }
  0xbc   : > { %841 = vmatmul.bf16.gmra.mxu1 %v1290_v32  ;;  %890 = vmatmul.bf16.gmra.mxu2 %v1294_v33 }
  0xbe   : > { %939 = vmatmul.bf16.gmra.mxu3 %v1298_v35  ;;  %1454 = vmatmul.msk.bf16.gmra.mxu0 %vm724_vm0, %v1302_v36 }
  0xbf   : > { %v1860_v38 = vpop.f32.mrf.mxu2 }
  0xc1   : > { %v1862_v39 = vpop.f32.mrf.mxu3  ;;  %v1864_v40 = vpop.f32.mrf.mxu1 }
  0xc3   : > { %v765_v41 = vpop.f32.mrf.mxu0 }
  0xc7   : > { %v1866_v42 = vpop.f32.mrf.mxu2 }
  0xc9   : > { %v1868_v43 = vpop.f32.mrf.mxu3  ;;  %v807_v44 = vpop.f32.mrf.mxu1 }
  0xca   : > { %v808_v46 = vadd.f32 %v807_v44, %v758_v17 }
  0xcb   : > { %v954_v45 = vpop.f32.mrf.mxu0 }
  0xcf   : > { %v856_v47 = vpop.f32.mrf.mxu2 }
  0xd0   : > { %v857_v48 = vadd.f32 %v856_v47, %v808_v46 }
  0xd1   : > { %v905_v49 = vpop.f32.mrf.mxu3  ;;  %v809_v50 = vpop.f32.mrf.mxu1 }
  0xd2   : > { %v906_v51 = vadd.f32 %v905_v49, %v857_v48  ;;  %v810_v55 = vadd.f32 %v809_v50, %v760_v21 }
  0xd3   : > { %v956_v52 = vpop.f32.mrf.mxu0 }
  0xd4   : > { %v955_v53 = vadd.f32 %v954_v45, %v906_v51 }
  0xd6   : > { %v994_v54 = vmax.f32 %v955_v53, 0.0 }
  0xd7   : > { %v858_v56 = vpop.f32.mrf.mxu2 }
  0xd8   : > { %v1010_v57 = vpack.c.bf16 %v994_v54, %v994_v54  ;;  %v859_v58 = vadd.f32 %v858_v56, %v810_v55 }
  0xd9   : > { %v907_v59 = vpop.f32.mrf.mxu3  ;;  %v812_v60 = vpop.f32.mrf.mxu1 }
  0xda   : > { %1027 = vst.msk [vmem:[%s1874_s22] sm:$0xf] %vm1026_vm1, %v1010_v57  ;;  %v908_v61 = vadd.f32 %v907_v59, %v859_v58  ;;  %v813_v1 = vadd.f32 %v812_v60, %v763_v37 }
  0xdb   : > { %v959_v62 = vpop.f32.mrf.mxu0 }
  0xdc   : > { %v957_v63 = vadd.f32 %v956_v52, %v908_v61 }
  0xde   : > { %v995_v0 = vmax.f32 %v957_v63, 0.0 }
  0xdf   : > { %v861_v2 = vpop.f32.mrf.mxu2 }
  0xe0   : > { %v1011_v3 = vpack.c.bf16 %v995_v0, %v995_v0  ;;  %v862_v4 = vadd.f32 %v861_v2, %v813_v1 }
  0xe1   : > { %v910_v5 = vpop.f32.mrf.mxu3  ;;  %v814_v6 = vpop.f32.mrf.mxu1 }
  0xe2   : > { %1028 = vst.msk [vmem:[%s1874_s22 + $0x4] sm:$0xf] %vm1026_vm1, %v1011_v3  ;;  %v911_v7 = vadd.f32 %v910_v5, %v862_v4  ;;  %v815_v11 = vadd.f32 %v814_v6, %v765_v41 }
  0xe3   : > { %v961_v8 = vpop.f32.mrf.mxu0 }
  0xe4   : > { %v960_v9 = vadd.f32 %v959_v62, %v911_v7 }
  0xe6   : > { %v996_v10 = vmax.f32 %v960_v9, 0.0 }
  0xe7   : > { %v863_v12 = vpop.f32.mrf.mxu2 }
  0xe8   : > { %v1012_v13 = vpack.c.bf16 %v996_v10, %v996_v10  ;;  %v864_v15 = vadd.f32 %v863_v12, %v815_v11 }
  0xe9   : > { %v912_v16 = vpop.f32.mrf.mxu3  ;;  %v817_v17 = vpop.f32.mrf.mxu1 }
  0xea   : > { %1029 = vst.msk [vmem:[%s1874_s22 + $0x8] sm:$0xf] %vm1026_vm1, %v1012_v13  ;;  %v913_v21 = vadd.f32 %v912_v16, %v864_v15  ;;  %v818_v25 = vadd.f32 %v817_v17, %v1836_v14 }
  0xeb   : > { %v964_v22 = vpop.f32.mrf.mxu0 }
  0xec   : > { %v962_v23 = vadd.f32 %v961_v8, %v913_v21 }
  0xee   : > { %v997_v24 = vmax.f32 %v962_v23, 0.0 }
  0xef   : > { %v866_v26 = vpop.f32.mrf.mxu2 }
  0xf0   : > { %v1013_v27 = vpack.c.bf16 %v997_v24, %v997_v24  ;;  %v867_v28 = vadd.f32 %v866_v26, %v818_v25 }
  0xf1   : > { %v915_v29 = vpop.f32.mrf.mxu3  ;;  %v819_v32 = vpop.f32.mrf.mxu1 }
  0xf2   : > { %1030 = vst.msk [vmem:[%s1874_s22 + $0xc] sm:$0xf] %vm1026_vm1, %v1013_v27  ;;  %v916_v33 = vadd.f32 %v915_v29, %v867_v28  ;;  %v820_v41 = vadd.f32 %v819_v32, %v1843_v20 }
  0xf3   : > { %v966_v35 = vpop.f32.mrf.mxu0 }
  0xf4   : > { %v965_v36 = vadd.f32 %v964_v22, %v916_v33 }
  0xf6   : > { %v998_v37 = vmax.f32 %v965_v36, 0.0 }
  0xf7   : > { %v868_v44 = vpop.f32.mrf.mxu2 }
  0xf8   : > { %v1014_v45 = vpack.c.bf16 %v998_v37, %v998_v37  ;;  %v869_v46 = vadd.f32 %v868_v44, %v820_v41 }
  0xf9   : > { %v917_v47 = vpop.f32.mrf.mxu3  ;;  %v822_v14 = vpop.f32.mrf.mxu1 }
  0xfa   : > { %1031 = vst.msk [vmem:[%s1874_s22 + $0x10] sm:$0xf] %vm1026_vm1, %v1014_v45  ;;  %v918_v48 = vadd.f32 %v917_v47, %v869_v46  ;;  %v823_v52 = vadd.f32 %v822_v14, %v1857_v34 }
  0xfb   : > { %v969_v49 = vpop.f32.mrf.mxu0 }
  0xfc   : > { %v967_v50 = vadd.f32 %v966_v35, %v918_v48 }
  0xfe   : > { %v999_v51 = vmax.f32 %v967_v50, 0.0 }
  0xff   : > { %v871_v53 = vpop.f32.mrf.mxu2 }
 0x100   : > { %v1015_v54 = vpack.c.bf16 %v999_v51, %v999_v51  ;;  %v872_v55 = vadd.f32 %v871_v53, %v823_v52 }
 0x101   : > { %v920_v56 = vpop.f32.mrf.mxu3  ;;  %v824_v20 = vpop.f32.mrf.mxu1 }
 0x102   : > { %1032 = vst.msk [vmem:[%s1874_s22 + $0x14] sm:$0xf] %vm1026_vm1, %v1015_v54  ;;  %v921_v57 = vadd.f32 %v920_v56, %v872_v55  ;;  %v825_v61 = vadd.f32 %v824_v20, %v1864_v40 }
 0x103   : > { %v971_v58 = vpop.f32.mrf.mxu0 }
 0x104   : > { %v970_v59 = vadd.f32 %v969_v49, %v921_v57 }
 0x106   : > { %v1000_v60 = vmax.f32 %v970_v59, 0.0 }
 0x107   : > { %v873_v62 = vpop.f32.mrf.mxu2 }
 0x108   : > { %v1016_v63 = vpack.c.bf16 %v1000_v60, %v1000_v60  ;;  %v874_v0 = vadd.f32 %v873_v62, %v825_v61 }
 0x109   : > { %v922_v1 = vpop.f32.mrf.mxu3  ;;  %v827_v34 = vpop.f32.mrf.mxu1 }
 0x10a   : > { %1033 = vst.msk [vmem:[%s1874_s22 + $0x18] sm:$0xf] %vm1026_vm1, %v1016_v63  ;;  %v923_v2 = vadd.f32 %v922_v1, %v874_v0  ;;  %v828_v6 = vadd.f32 %v827_v34, %v1839_v18 }
 0x10b   : > { %v974_v3 = vpop.f32.mrf.mxu0 }
 0x10c   : > { %v972_v4 = vadd.f32 %v971_v58, %v923_v2 }
 0x10e   : > { %v1001_v5 = vmax.f32 %v972_v4, 0.0 }
 0x10f   : > { %v876_v7 = vpop.f32.mrf.mxu2 }
 0x110   : > { %v1017_v8 = vpack.c.bf16 %v1001_v5, %v1001_v5  ;;  %v877_v9 = vadd.f32 %v876_v7, %v828_v6 }
 0x111   : > { %v925_v10 = vpop.f32.mrf.mxu3  ;;  %v829_v40 = vpop.f32.mrf.mxu1 }
 0x112   : > { %1034 = vst.msk [vmem:[%s1874_s22 + $0x1c] sm:$0xf] %vm1026_vm1, %v1017_v8  ;;  %v926_v11 = vadd.f32 %v925_v10, %v877_v9  ;;  %v830_v16 = vadd.f32 %v829_v40, %v1853_v30 }
 0x113   : > { %v976_v12 = vpop.f32.mrf.mxu0 }
 0x114   : > { %v975_v13 = vadd.f32 %v974_v3, %v926_v11 }
 0x116   : > { %v1002_v15 = vmax.f32 %v975_v13, 0.0 }
 0x117   : > { %v878_v17 = vpop.f32.mrf.mxu2 }
 0x118   : > { %v1018_v21 = vpack.c.bf16 %v1002_v15, %v1002_v15  ;;  %v879_v22 = vadd.f32 %v878_v17, %v830_v16 }
 0x119   : > { %v927_v23 = vpop.f32.mrf.mxu3  ;;  %v832_v18 = vpop.f32.mrf.mxu1 }
 0x11a   : > { %1035 = vst.msk [vmem:[%s1874_s22 + $0x20] sm:$0xf] %vm1026_vm1, %v1018_v21  ;;  %v928_v24 = vadd.f32 %v927_v23, %v879_v22  ;;  %v833_v28 = vadd.f32 %v832_v18, %v1860_v38 }
 0x11b   : > { %v979_v25 = vpop.f32.mrf.mxu0 }
 0x11c   : > { %v977_v26 = vadd.f32 %v976_v12, %v928_v24 }
 0x11e   : > { %v1003_v27 = vmax.f32 %v977_v26, 0.0 }
 0x11f   : > { %v881_v29 = vpop.f32.mrf.mxu2 }
 0x120   : > { %v1019_v32 = vpack.c.bf16 %v1003_v27, %v1003_v27  ;;  %v882_v33 = vadd.f32 %v881_v29, %v833_v28 }
 0x121   : > { %v930_v35 = vpop.f32.mrf.mxu3  ;;  %v834_v30 = vpop.f32.mrf.mxu1 }
 0x122   : > { %1036 = vst.msk [vmem:[%s1874_s22 + $0x24] sm:$0xf] %vm1026_vm1, %v1019_v32  ;;  %v931_v36 = vadd.f32 %v930_v35, %v882_v33  ;;  %v835_v45 = vadd.f32 %v834_v30, %v1866_v42 }
 0x123   : > { %v981_v37 = vpop.f32.mrf.mxu0 }
 0x124   : > { %v980_v41 = vadd.f32 %v979_v25, %v931_v36 }
 0x126   : > { %v1004_v44 = vmax.f32 %v980_v41, 0.0 }
 0x127   : > { %v883_v46 = vpop.f32.mrf.mxu2 }
 0x128   : > { %v1020_v47 = vpack.c.bf16 %v1004_v44, %v1004_v44  ;;  %v884_v14 = vadd.f32 %v883_v46, %v835_v45 }
 0x129   : > { %v932_v48 = vpop.f32.mrf.mxu3  ;;  %v837_v38 = vpop.f32.mrf.mxu1 }
 0x12a   : > { %1037 = vst.msk [vmem:[%s1874_s22 + $0x28] sm:$0xf] %vm1026_vm1, %v1020_v47  ;;  %v933_v49 = vadd.f32 %v932_v48, %v884_v14  ;;  %v838_v53 = vadd.f32 %v837_v38, %v1841_v19 }
 0x12b   : > { %v984_v51 = vpop.f32.mrf.mxu0 }
 0x12c   : > { %v982_v50 = vadd.f32 %v981_v37, %v933_v49 }
 0x12e   : > { %v1005_v52 = vmax.f32 %v982_v50, 0.0 }
 0x12f   : > { %v886_v54 = vpop.f32.mrf.mxu2 }
 0x130   : > { %v1021_v55 = vpack.c.bf16 %v1005_v52, %v1005_v52  ;;  %v887_v56 = vadd.f32 %v886_v54, %v838_v53 }
 0x131   : > { %v935_v20 = vpop.f32.mrf.mxu3  ;;  %v839_v42 = vpop.f32.mrf.mxu1 }
 0x132   : > { %1038 = vst.msk [vmem:[%s1874_s22 + $0x2c] sm:$0xf] %vm1026_vm1, %v1021_v55  ;;  %v936_v57 = vadd.f32 %v935_v20, %v887_v56  ;;  %v840_v60 = vadd.f32 %v839_v42, %v1855_v31 }
 0x133   : > { %v986_v61 = vpop.f32.mrf.mxu0 }
 0x134   : > { %v985_v58 = vadd.f32 %v984_v51, %v936_v57 }
 0x136   : > { %v1006_v59 = vmax.f32 %v985_v58, 0.0 }
 0x137   : > { %v888_v62 = vpop.f32.mrf.mxu2 }
 0x138   : > { %v1022_v63 = vpack.c.bf16 %v1006_v59, %v1006_v59  ;;  %v889_v0 = vadd.f32 %v888_v62, %v840_v60 }
 0x139   : > { %v937_v1 = vpop.f32.mrf.mxu3  ;;  %v842_v19 = vpop.f32.mrf.mxu1 }
 0x13a   : > { %1039 = vst.msk [vmem:[%s1874_s22 + $0x30] sm:$0xf] %vm1026_vm1, %v1022_v63  ;;  %v938_v34 = vadd.f32 %v937_v1, %v889_v0  ;;  %v843_v4 = vadd.f32 %v842_v19, %v1862_v39 }
 0x13b   : > { %v989_v31 = vpop.f32.mrf.mxu0 }
 0x13c   : > { %v987_v2 = vadd.f32 %v986_v61, %v938_v34 }
 0x13e   : > { %v1007_v3 = vmax.f32 %v987_v2, 0.0 }
 0x13f   : > { %v891_v5 = vpop.f32.mrf.mxu2 }
 0x140   : > { %v1023_v6 = vpack.c.bf16 %v1007_v3, %v1007_v3  ;;  %v892_v7 = vadd.f32 %v891_v5, %v843_v4 }
 0x141   : > { %v940_v8 = vpop.f32.mrf.mxu3  ;;  %v844_v10 = vpop.f32.mrf.mxu1 }
 0x142   : > { %1040 = vst.msk [vmem:[%s1874_s22 + $0x34] sm:$0xf] %vm1026_vm1, %v1023_v6  ;;  %v941_v9 = vadd.f32 %v940_v8, %v892_v7  ;;  %v845_v12 = vadd.f32 %v844_v10, %v1868_v43 }
 0x143   : > { %v991_v21 = vpop.f32.mrf.mxu0 }
 0x144   : > { %v990_v40 = vadd.f32 %v989_v31, %v941_v9 }
 0x146   : > { %v1008_v11 = vmax.f32 %v990_v40, 0.0 }
 0x147   : > { %v893_v13 = vpop.f32.mrf.mxu2 }
 0x148   : > { %v1024_v15 = vpack.c.bf16 %v1008_v11, %v1008_v11  ;;  %v894_v16 = vadd.f32 %v893_v13, %v845_v12 }
 0x149   : > { %v942_v17 = vpop.f32.mrf.mxu3 }
 0x14a   : > { %1041 = vst.msk [vmem:[%s1874_s22 + $0x38] sm:$0xf] %vm1026_vm1, %v1024_v15  ;;  %v943_v39 = vadd.f32 %v942_v17, %v894_v16 }
 0x14c   : > { %v992_v22 = vadd.f32 %v991_v21, %v943_v39 }
 0x14e   : > { %v1009_v23 = vmax.f32 %v992_v22, 0.0 }
 0x150   : > { %v1025_v18 = vpack.c.bf16 %v1009_v23, %v1009_v23 }
 0x152   : > { %1042 = vst.msk [vmem:[%s1874_s22 + $0x3c] sm:$0xf] %vm1026_vm1, %v1025_v18 }
 0x153 PF: > { %s12_s11 = sadd.s32 1, %s1604_s11   ;;  %s1932_s9 = smov %s1600_s10 }
 0x154   : > { %p9_p5 = scmp.ge.s32.totalorder %s12_s11, 6   ;;  %s1933_s10 = smov %s1935_s12 }
 0x156   :  { %11 = sbr.rel (!%p9_p5) target bundleno = 2 (0x2), region = 61 }

// kernel: base_cnn_forward.8
= control target key start
LH: loop header
LB: loop body
LE: loop exit
PB: predicated region body
PF: predicated region fallthrough
CT: control target
= control target key end

     0   :  { %vm548_vm0 = vcmask 523264   ;;  %s1760_s1 = inlined_call_operand.vmem [shape: bf16[576,128], index: 1, kind: input, shape index: {}]   ;;  %s1761_s0 = inlined_call_operand.vmem [shape: bf16[128,576], index: 0, kind: input, shape index: {}]   ;;  %s1762_s2 = inlined_call_operand.vmem [shape: bf16[128,128], index: 2, kind: output, shape index: {}]  }
   0x1   :  { %v1229_v0 = vld [vmem:[%s1760_s1 + $0x38] sm:$0xff]  ;;  %v1228_v1 = vld [vmem:[%s1760_s1 + $0x30] sm:$0xff]  ;;  %v1227_v2 = vld [vmem:[%s1760_s1 + $0x28] sm:$0xff] }
   0x2   :  { %1305 = vmatpush.bf16.msra.mxu1 %v1229_v0  ;;  %1306 = vmatpush.bf16.msra.mxu2 %v1229_v0  ;;  %v1226_v3 = vld [vmem:[%s1760_s1 + $0x20] sm:$0xff]  ;;  %v1225_v4 = vld [vmem:[%s1760_s1 + $0x18] sm:$0xff]  ;;  %v1224_v5 = vld [vmem:[%s1760_s1 + $0x10] sm:$0xff] }
   0x3   :  { %1307 = vmatpush.bf16.msra.mxu3 %v1229_v0  ;;  %573 = vmatpush.bf16.msra.mxu0 %v1229_v0  ;;  %v1223_v6 = vld [vmem:[%s1760_s1 + $0x8] sm:$0xff]  ;;  %v1222_v7 = vld [vmem:[%s1760_s1] sm:$0xff]  ;;  %v912_v8 = vld [vmem:[%s1761_s0 + $0x50] sm:$0xf] }
   0x4   :  { %v1194_v9 = vld [vmem:[%s1761_s0 + $0x60] sm:$0xf0]  ;;  %v952_v10 = vld [vmem:[%s1761_s0 + $0xa0] sm:$0xf]  ;;  %v1204_v11 = vld [vmem:[%s1761_s0 + $0xb0] sm:$0xf0] }
   0x5   :  { %v992_v12 = vld [vmem:[%s1761_s0 + $0xf0] sm:$0xf]  ;;  %v1214_v13 = vld [vmem:[%s1761_s0 + $0x100] sm:$0xf0]  ;;  %v872_v14 = vld [vmem:[%s1761_s0] sm:$0xf]  ;;  %v913_v18 = vor.u32 %v1194_v9, %v912_v8  ;;  %v953_v19 = vor.u32 %v1204_v11, %v952_v10 }
   0x6   :  { %1308 = vmatpush.bf16.msra.mxu1 %v1228_v1  ;;  %1309 = vmatpush.bf16.msra.mxu2 %v1228_v1  ;;  %v1184_v15 = vld [vmem:[%s1761_s0 + $0x10] sm:$0xf0]  ;;  %v1245_v16 = vld [vmem:[%s1760_s1 + $0xb8] sm:$0xff]  ;;  %v993_v20 = vor.u32 %v1214_v13, %v992_v12  ;;  %v1243_v28 = vld [vmem:[%s1760_s1 + $0xa8] sm:$0xff] }
   0x7   :  { %1310 = vmatpush.bf16.msra.mxu3 %v1228_v1  ;;  %574 = vmatpush.bf16.msra.mxu0 %v1228_v1  ;;  %v1237_v17 = vld [vmem:[%s1760_s1 + $0x78] sm:$0xff]  ;;  %v873_v21 = vor.u32 %v1184_v15, %v872_v14  ;;  %v1244_v24 = vld [vmem:[%s1760_s1 + $0xb0] sm:$0xff]  ;;  %v1235_v29 = vld [vmem:[%s1760_s1 + $0x68] sm:$0xff] }
   0x8   :  { %v1253_v22 = vld [vmem:[%s1760_s1 + $0xf8] sm:$0xff]  ;;  %v1236_v25 = vld [vmem:[%s1760_s1 + $0x70] sm:$0xff]  ;;  %v1251_v30 = vld [vmem:[%s1760_s1 + $0xe8] sm:$0xff] }
   0x9   :  { %v1257_v23 = vld [vmem:[%s1760_s1 + $0x118] sm:$0xff]  ;;  %v1252_v26 = vld [vmem:[%s1760_s1 + $0xf0] sm:$0xff]  ;;  %v1255_v31 = vld [vmem:[%s1760_s1 + $0x108] sm:$0xff] }
   0xa   :  { %1311 = vmatpush.bf16.msra.mxu1 %v1227_v2  ;;  %1312 = vmatpush.bf16.msra.mxu2 %v1227_v2  ;;  %v1256_v27 = vld [vmem:[%s1760_s1 + $0x110] sm:$0xff]  ;;  %v1242_v32 = vld [vmem:[%s1760_s1 + $0xa0] sm:$0xff]  ;;  %v932_v35 = vld [vmem:[%s1761_s0 + $0x78] sm:$0xf] }
   0xb   :  { %1313 = vmatpush.bf16.msra.mxu3 %v1227_v2  ;;  %575 = vmatpush.bf16.msra.mxu0 %v1227_v2  ;;  %v1234_v33 = vld [vmem:[%s1760_s1 + $0x60] sm:$0xff]  ;;  %v1199_v36 = vld [vmem:[%s1761_s0 + $0x88] sm:$0xf0]  ;;  %v972_v37 = vld [vmem:[%s1761_s0 + $0xc8] sm:$0xf] }
   0xc   :  { %v1250_v34 = vld [vmem:[%s1760_s1 + $0xe0] sm:$0xff]  ;;  %v1209_v38 = vld [vmem:[%s1761_s0 + $0xd8] sm:$0xf0]  ;;  %v1012_v39 = vld [vmem:[%s1761_s0 + $0x118] sm:$0xf]  ;;  %v933_v46 = vor.u32 %v1199_v36, %v932_v35 }
   0xd   :  { %v1219_v40 = vld [vmem:[%s1761_s0 + $0x128] sm:$0xf0]  ;;  %v892_v41 = vld [vmem:[%s1761_s0 + $0x28] sm:$0xf]  ;;  %v1189_v42 = vld [vmem:[%s1761_s0 + $0x38] sm:$0xf0]  ;;  %v973_v47 = vor.u32 %v1209_v38, %v972_v37 }
   0xe   :  { %1314 = vmatpush.bf16.msra.mxu1 %v1226_v3  ;;  %1315 = vmatpush.bf16.msra.mxu2 %v1226_v3  ;;  %v1254_v43 = vld [vmem:[%s1760_s1 + $0x100] sm:$0xff]  ;;  %v1241_v44 = vld [vmem:[%s1760_s1 + $0x98] sm:$0xff]  ;;  %v1013_v48 = vor.u32 %v1219_v40, %v1012_v39  ;;  %v893_v49 = vor.u32 %v1189_v42, %v892_v41  ;;  %v1240_v51 = vld [vmem:[%s1760_s1 + $0x90] sm:$0xff] }
   0xf   :  { %1316 = vmatpush.bf16.msra.mxu3 %v1226_v3  ;;  %576 = vmatpush.bf16.msra.mxu0 %v1226_v3  ;;  %v1233_v45 = vld [vmem:[%s1760_s1 + $0x58] sm:$0xff]  ;;  %v1232_v52 = vld [vmem:[%s1760_s1 + $0x50] sm:$0xff]  ;;  %v1239_v54 = vld [vmem:[%s1760_s1 + $0x88] sm:$0xff] }
  0x10   :  { %v1249_v50 = vld [vmem:[%s1760_s1 + $0xd8] sm:$0xff]  ;;  %v1248_v53 = vld [vmem:[%s1760_s1 + $0xd0] sm:$0xff]  ;;  %v1231_v55 = vld [vmem:[%s1760_s1 + $0x48] sm:$0xff] }
  0x11   :  { %v1247_v56 = vld [vmem:[%s1760_s1 + $0xc8] sm:$0xff]  ;;  %v1238_v57 = vld [vmem:[%s1760_s1 + $0x80] sm:$0xff]  ;;  %v874_v61 = vld [vmem:[%s1761_s0 + $0x14] sm:$0xf0] }
  0x12   :  { %1317 = vmatpush.bf16.msra.mxu1 %v1225_v4  ;;  %1318 = vmatpush.bf16.msra.mxu2 %v1225_v4  ;;  %v1230_v58 = vld [vmem:[%s1760_s1 + $0x40] sm:$0xff]  ;;  %v880_v62 = vld [vmem:[%s1761_s0 + $0x8] sm:$0xf]  ;;  %v1185_v63 = vld [vmem:[%s1761_s0 + $0x18] sm:$0xf0] }
  0x13   :  { %1319 = vmatpush.bf16.msra.mxu3 %v1225_v4  ;;  %577 = vmatpush.bf16.msra.mxu0 %v1225_v4  ;;  %v1246_v59 = vld [vmem:[%s1760_s1 + $0xc0] sm:$0xff]  ;;  %v1183_v0 = vld [vmem:[%s1761_s0 + $0xc] sm:$0xf]  ;;  %v888_v2 = vld [vmem:[%s1761_s0 + $0x10] sm:$0xf] }
  0x14   :  { %v1182_v60 = vld [vmem:[%s1761_s0 + $0x4] sm:$0xf]  ;;  %v882_v1 = vld [vmem:[%s1761_s0 + $0x1c] sm:$0xf0]  ;;  %v1187_v8 = vld [vmem:[%s1761_s0 + $0x2c] sm:$0xf] }
  0x15   :  { %v1186_v3 = vld [vmem:[%s1761_s0 + $0x20] sm:$0xf0]  ;;  %v877_v4 = vor.u32 %v1182_v60, %v874_v61  ;;  %v894_v9 = vld [vmem:[%s1761_s0 + $0x3c] sm:$0xf0]  ;;  %v900_v10 = vld [vmem:[%s1761_s0 + $0x30] sm:$0xf] }
  0x16   :  { %1320 = vmatpush.bf16.msra.mxu1 %v1224_v5  ;;  %1321 = vmatpush.bf16.msra.mxu2 %v1224_v5  ;;  %v1190_v11 = vld [vmem:[%s1761_s0 + $0x40] sm:$0xf0]  ;;  %v1188_v12 = vld [vmem:[%s1761_s0 + $0x34] sm:$0xf]  ;;  %v902_v13 = vld [vmem:[%s1761_s0 + $0x44] sm:$0xf0] }
  0x17   :  { %1322 = vmatpush.bf16.msra.mxu3 %v1224_v5  ;;  %578 = vmatpush.bf16.msra.mxu0 %v1224_v5  ;;  %v881_v5 = vor.u32 %v1185_v63, %v880_v62  ;;  %v908_v14 = vld [vmem:[%s1761_s0 + $0x38] sm:$0xf]  ;;  %v1191_v15 = vld [vmem:[%s1761_s0 + $0x48] sm:$0xf0]  ;;  %v1200_v35 = vld [vmem:[%s1761_s0 + $0x90] sm:$0xf0] }
  0x18   :  { %v1198_v36 = vld [vmem:[%s1761_s0 + $0x84] sm:$0xf]  ;;  %v942_v37 = vld [vmem:[%s1761_s0 + $0x94] sm:$0xf0]  ;;  %v948_v38 = vld [vmem:[%s1761_s0 + $0x88] sm:$0xf] }
  0x19   :  { %v1201_v39 = vld [vmem:[%s1761_s0 + $0x98] sm:$0xf0]  ;;  %v945_v42 = vor.u32 %v1198_v36, %v942_v37  ;;  %v1208_v60 = vld [vmem:[%s1761_s0 + $0xd4] sm:$0xf]  ;;  %v982_v61 = vld [vmem:[%s1761_s0 + $0xe4] sm:$0xf0] }
  0x1a   :  { %1323 = vmatpush.bf16.msra.mxu1 %v1223_v6  ;;  %1324 = vmatpush.bf16.msra.mxu2 %v1223_v6  ;;  %v988_v62 = vld [vmem:[%s1761_s0 + $0xd8] sm:$0xf]  ;;  %v1211_v63 = vld [vmem:[%s1761_s0 + $0xe8] sm:$0xf0] }
  0x1b   :  { %1325 = vmatpush.bf16.msra.mxu3 %v1223_v6  ;;  %579 = vmatpush.bf16.msra.mxu0 %v1223_v6  ;;  %v885_v6 = vor.u32 %v1183_v0, %v882_v1 }
  0x1e   :  { %1326 = vmatpush.bf16.msra.mxu1 %v1222_v7  ;;  %1327 = vmatpush.bf16.msra.mxu2 %v1222_v7 }
  0x1f   :  { %1328 = vmatpush.bf16.msra.mxu3 %v1222_v7  ;;  %580 = vmatpush.bf16.msra.mxu0 %v1222_v7  ;;  %v889_v7 = vor.u32 %v1186_v3, %v888_v2  ;;  %v985_v2 = vor.u32 %v1208_v60, %v982_v61  ;;  %v989_v3 = vor.u32 %v1211_v63, %v988_v62 }
  0x21   :  { %591 = vmatmul.bf16.vlgmr.msra.gmra.mxu1 %v913_v18  ;;  %601 = vmatmul.bf16.vlgmr.msra.gmra.mxu2 %v953_v19  ;;  %v905_v18 = vor.u32 %v1188_v12, %v902_v13  ;;  %v909_v19 = vor.u32 %v1191_v15, %v908_v14 }
  0x22   :  { %671 = vmatpush.bf16.msrb.mxu2 %v1245_v16  ;;  %622 = vmatpush.bf16.msrb.mxu1 %v1237_v17  ;;  %v897_v16 = vor.u32 %v1187_v8, %v894_v9  ;;  %v901_v17 = vor.u32 %v1190_v11, %v900_v10  ;;  %v1213_v8 = vld [vmem:[%s1761_s0 + $0xfc] sm:$0xf]  ;;  %v1002_v9 = vld [vmem:[%s1761_s0 + $0x10c] sm:$0xf0]  ;;  %v1008_v10 = vld [vmem:[%s1761_s0 + $0x100] sm:$0xf] }
  0x23   :  { %611 = vmatmul.bf16.vlgmr.msra.gmra.mxu3 %v993_v20  ;;  %581 = vmatmul.bf16.vlgmr.msra.gmra.mxu0 %v873_v21  ;;  %v1192_v20 = vld [vmem:[%s1761_s0 + $0x54] sm:$0xf]  ;;  %v914_v21 = vld [vmem:[%s1761_s0 + $0x64] sm:$0xf0]  ;;  %v1005_v15 = vor.u32 %v1213_v8, %v1002_v9 }
  0x24   :  { %720 = vmatpush.bf16.msrb.mxu3 %v1253_v22  ;;  %773 = vmatpush.bf16.msrb.mxu0 %v1257_v23  ;;  %v920_v22 = vld [vmem:[%s1761_s0 + $0x58] sm:$0xf]  ;;  %v1195_v23 = vld [vmem:[%s1761_s0 + $0x68] sm:$0xf0]  ;;  %v1216_v11 = vld [vmem:[%s1761_s0 + $0x110] sm:$0xf0] }
  0x26   :  { %672 = vmatpush.bf16.msrb.mxu2 %v1244_v24  ;;  %623 = vmatpush.bf16.msrb.mxu1 %v1236_v25  ;;  %v1193_v24 = vld [vmem:[%s1761_s0 + $0x5c] sm:$0xf]  ;;  %v922_v25 = vld [vmem:[%s1761_s0 + $0x6c] sm:$0xf0] }
  0x28   :  { %721 = vmatpush.bf16.msrb.mxu3 %v1252_v26  ;;  %774 = vmatpush.bf16.msrb.mxu0 %v1256_v27  ;;  %v928_v26 = vld [vmem:[%s1761_s0 + $0x60] sm:$0xf]  ;;  %v1196_v27 = vld [vmem:[%s1761_s0 + $0x70] sm:$0xf0] }
  0x2a   :  { %673 = vmatpush.bf16.msrb.mxu2 %v1243_v28  ;;  %624 = vmatpush.bf16.msrb.mxu1 %v1235_v29  ;;  %v917_v28 = vor.u32 %v1192_v20, %v914_v21  ;;  %v921_v29 = vor.u32 %v1195_v23, %v920_v22  ;;  %v1217_v22 = vld [vmem:[%s1761_s0 + $0x11c] sm:$0xf]  ;;  %v1014_v23 = vld [vmem:[%s1761_s0 + $0x12c] sm:$0xf0] }
  0x2c   :  { %722 = vmatpush.bf16.msrb.mxu3 %v1251_v30  ;;  %775 = vmatpush.bf16.msrb.mxu0 %v1255_v31  ;;  %v925_v30 = vor.u32 %v1193_v24, %v922_v25  ;;  %v929_v31 = vor.u32 %v1196_v27, %v928_v26  ;;  %v1020_v24 = vld [vmem:[%s1761_s0 + $0x120] sm:$0xf]  ;;  %v1220_v25 = vld [vmem:[%s1761_s0 + $0x130] sm:$0xf0]  ;;  %v1218_v26 = vld [vmem:[%s1761_s0 + $0x124] sm:$0xf] }
  0x2d   :  { %v1022_v27 = vld [vmem:[%s1761_s0 + $0x134] sm:$0xf0] }
  0x2e   :  { %674 = vmatpush.bf16.msrb.mxu2 %v1242_v32  ;;  %625 = vmatpush.bf16.msrb.mxu1 %v1234_v33  ;;  %v1197_v32 = vld [vmem:[%s1761_s0 + $0x7c] sm:$0xf]  ;;  %v934_v33 = vld [vmem:[%s1761_s0 + $0x8c] sm:$0xf0] }
  0x2f   :  { %v937_v40 = vor.u32 %v1197_v32, %v934_v33  ;;  %v1017_v32 = vor.u32 %v1217_v22, %v1014_v23  ;;  %v1021_v33 = vor.u32 %v1220_v25, %v1020_v24 }
  0x30   :  { %723 = vmatpush.bf16.msrb.mxu3 %v1250_v34  ;;  %776 = vmatpush.bf16.msrb.mxu0 %v1254_v43  ;;  %v940_v34 = vld [vmem:[%s1761_s0 + $0x80] sm:$0xf]  ;;  %v949_v43 = vor.u32 %v1201_v39, %v948_v38 }
  0x31   :  { %596 = vmatmul.bf16.gmra.mxu1 %v933_v46  ;;  %606 = vmatmul.bf16.gmra.mxu2 %v973_v47  ;;  %v941_v41 = vor.u32 %v1200_v35, %v940_v34  ;;  %v960_v46 = vld [vmem:[%s1761_s0 + $0xa8] sm:$0xf]  ;;  %v1205_v47 = vld [vmem:[%s1761_s0 + $0xb8] sm:$0xf0]  ;;  %v1025_v35 = vor.u32 %v1218_v26, %v1022_v27 }
  0x32   :  { %675 = vmatpush.bf16.msrb.mxu2 %v1241_v44  ;;  %626 = vmatpush.bf16.msrb.mxu1 %v1233_v45  ;;  %v1202_v44 = vld [vmem:[%s1761_s0 + $0xa4] sm:$0xf]  ;;  %v954_v45 = vld [vmem:[%s1761_s0 + $0xb4] sm:$0xf0] }
  0x33   :  { %616 = vmatmul.bf16.gmra.mxu3 %v1013_v48  ;;  %586 = vmatmul.bf16.gmra.mxu0 %v893_v49  ;;  %v1203_v48 = vld [vmem:[%s1761_s0 + $0xac] sm:$0xf]  ;;  %v962_v49 = vld [vmem:[%s1761_s0 + $0xbc] sm:$0xf0] }
  0x34   :  { %724 = vmatpush.bf16.msrb.mxu3 %v1249_v50  ;;  %v968_v50 = vld [vmem:[%s1761_s0 + $0xb0] sm:$0xf] }
  0x36   :  { %676 = vmatpush.bf16.msrb.mxu2 %v1240_v51  ;;  %627 = vmatpush.bf16.msrb.mxu1 %v1232_v52  ;;  %v1206_v51 = vld [vmem:[%s1761_s0 + $0xc0] sm:$0xf0]  ;;  %v957_v52 = vor.u32 %v1202_v44, %v954_v45 }
  0x38   :  { %725 = vmatpush.bf16.msrb.mxu3 %v1248_v53  ;;  %v961_v53 = vor.u32 %v1205_v47, %v960_v46 }
  0x3a   :  { %677 = vmatpush.bf16.msrb.mxu2 %v1239_v54  ;;  %628 = vmatpush.bf16.msrb.mxu1 %v1231_v55  ;;  %v965_v54 = vor.u32 %v1203_v48, %v962_v49  ;;  %v969_v55 = vor.u32 %v1206_v51, %v968_v50 }
  0x3c   :  { %726 = vmatpush.bf16.msrb.mxu3 %v1247_v56  ;;  %v1207_v56 = vld [vmem:[%s1761_s0 + $0xcc] sm:$0xf] }
  0x3e   :  { %678 = vmatpush.bf16.msrb.mxu2 %v1238_v57  ;;  %629 = vmatpush.bf16.msrb.mxu1 %v1230_v58  ;;  %v974_v57 = vld [vmem:[%s1761_s0 + $0xdc] sm:$0xf0]  ;;  %v980_v58 = vld [vmem:[%s1761_s0 + $0xd0] sm:$0xf] }
  0x3f   :  { %v977_v0 = vor.u32 %v1207_v56, %v974_v57 }
  0x40   :  { %727 = vmatpush.bf16.msrb.mxu3 %v1246_v59  ;;  %v1210_v59 = vld [vmem:[%s1761_s0 + $0xe0] sm:$0xf0] }
  0x41   :  { %630 = vmatmul.bf16.vlgmr.msrb.gmra.mxu1 %v877_v4  ;;  %679 = vmatmul.bf16.vlgmr.msrb.gmra.mxu2 %v881_v5  ;;  %v981_v1 = vor.u32 %v1210_v59, %v980_v58  ;;  %v1212_v4 = vld [vmem:[%s1761_s0 + $0xf4] sm:$0xf]  ;;  %v994_v5 = vld [vmem:[%s1761_s0 + $0x104] sm:$0xf0] }
  0x42   :  { %v997_v12 = vor.u32 %v1212_v4, %v994_v5 }
  0x43   :  { %728 = vmatmul.bf16.vlgmr.msrb.gmra.mxu3 %v885_v6  ;;  %1174 = vmatmul.msk.bf16.vlgmr.msrb.gmra.mxu0 %vm548_vm0, %v889_v7  ;;  %v1000_v6 = vld [vmem:[%s1761_s0 + $0xf8] sm:$0xf]  ;;  %v1215_v7 = vld [vmem:[%s1761_s0 + $0x108] sm:$0xf0] }
  0x44   :  { %v1001_v13 = vor.u32 %v1215_v7, %v1000_v6 }
  0x51   :  { %635 = vmatmul.bf16.gmra.mxu1 %v897_v16  ;;  %684 = vmatmul.bf16.gmra.mxu2 %v901_v17  ;;  %v1009_v16 = vor.u32 %v1216_v11, %v1008_v10 }
  0x53   :  { %733 = vmatmul.bf16.gmra.mxu3 %v905_v18  ;;  %1175 = vmatmul.msk.bf16.gmra.mxu0 %vm548_vm0, %v909_v19 }
  0x61   :  { %640 = vmatmul.bf16.gmra.mxu1 %v917_v28  ;;  %689 = vmatmul.bf16.gmra.mxu2 %v921_v29  ;;  %v1028_v28 = vld [vmem:[%s1761_s0 + $0x128] sm:$0xf]  ;;  %v1221_v29 = vld [vmem:[%s1761_s0 + $0x138] sm:$0xf0] }
  0x62   :  { %v1029_v36 = vor.u32 %v1221_v29, %v1028_v28 }
  0x63   :  { %738 = vmatmul.bf16.gmra.mxu3 %v925_v30  ;;  %1176 = vmatmul.msk.bf16.gmra.mxu0 %vm548_vm0, %v929_v31 }
  0x71   :  { %645 = vmatmul.bf16.gmra.mxu1 %v937_v40  ;;  %694 = vmatmul.bf16.gmra.mxu2 %v941_v41 }
  0x73   :  { %743 = vmatmul.bf16.gmra.mxu3 %v945_v42  ;;  %1177 = vmatmul.msk.bf16.gmra.mxu0 %vm548_vm0, %v949_v43 }
  0x81   :  { %650 = vmatmul.bf16.gmra.mxu1 %v957_v52  ;;  %699 = vmatmul.bf16.gmra.mxu2 %v961_v53 }
  0x83   :  { %748 = vmatmul.bf16.gmra.mxu3 %v965_v54  ;;  %1178 = vmatmul.msk.bf16.gmra.mxu0 %vm548_vm0, %v969_v55 }
  0x91   :  { %655 = vmatmul.bf16.gmra.mxu1 %v977_v0  ;;  %704 = vmatmul.bf16.gmra.mxu2 %v981_v1 }
  0x93   :  { %753 = vmatmul.bf16.gmra.mxu3 %v985_v2  ;;  %1179 = vmatmul.msk.bf16.gmra.mxu0 %vm548_vm0, %v989_v3 }
  0x9e   :  { %v1674_v14 = vpop.f32.mrf.mxu1 }
  0xa0   :  { %v582_v17 = vpop.f32.mrf.mxu0 }
  0xa1   :  { %660 = vmatmul.bf16.gmra.mxu1 %v997_v12  ;;  %709 = vmatmul.bf16.gmra.mxu2 %v1001_v13 }
  0xa3   :  { %758 = vmatmul.bf16.gmra.mxu3 %v1005_v15  ;;  %1180 = vmatmul.msk.bf16.gmra.mxu0 %vm548_vm0, %v1009_v16 }
  0xa4   :  { %v1677_v18 = vpop.f32.mrf.mxu2 }
  0xa6   :  { %v1679_v19 = vpop.f32.mrf.mxu3  ;;  %v1681_v20 = vpop.f32.mrf.mxu1 }
  0xa8   :  { %v584_v21 = vpop.f32.mrf.mxu0 }
  0xac   :  { %v1707_v30 = vpop.f32.mrf.mxu2 }
  0xae   :  { %v1709_v31 = vpop.f32.mrf.mxu3  ;;  %v1711_v34 = vpop.f32.mrf.mxu1 }
  0xb0   :  { %v587_v37 = vpop.f32.mrf.mxu0 }
  0xb1   :  { %665 = vmatmul.bf16.gmra.mxu1 %v1017_v32  ;;  %714 = vmatmul.bf16.gmra.mxu2 %v1021_v33 }
  0xb3   :  { %763 = vmatmul.bf16.gmra.mxu3 %v1025_v35  ;;  %1181 = vmatmul.msk.bf16.gmra.mxu0 %vm548_vm0, %v1029_v36 }
  0xb4   :  { %v1714_v38 = vpop.f32.mrf.mxu2 }
  0xb6   :  { %v1716_v39 = vpop.f32.mrf.mxu3  ;;  %v1718_v40 = vpop.f32.mrf.mxu1 }
  0xb8   :  { %v589_v41 = vpop.f32.mrf.mxu0 }
  0xbc   :  { %v1720_v42 = vpop.f32.mrf.mxu2 }
  0xbe   :  { %v1722_v43 = vpop.f32.mrf.mxu3  ;;  %v631_v44 = vpop.f32.mrf.mxu1 }
  0xbf   :  { %v632_v47 = vadd.f32 %v631_v44, %v582_v17 }
  0xc0   :  { %v778_v45 = vpop.f32.mrf.mxu0 }
  0xc4   :  { %v680_v46 = vpop.f32.mrf.mxu2 }
  0xc5   :  { %v681_v50 = vadd.f32 %v680_v46, %v632_v47 }
  0xc6   :  { %v729_v48 = vpop.f32.mrf.mxu3  ;;  %v633_v49 = vpop.f32.mrf.mxu1 }
  0xc7   :  { %v730_v52 = vadd.f32 %v729_v48, %v681_v50  ;;  %v634_v53 = vadd.f32 %v633_v49, %v584_v21 }
  0xc8   :  { %v780_v51 = vpop.f32.mrf.mxu0 }
  0xc9   :  { %v779_v58 = vadd.f32 %v778_v45, %v730_v52 }
  0xcb   :  { %v818_v62 = vmax.f32 %v779_v58, 0.0 }
  0xcc   :  { %v682_v54 = vpop.f32.mrf.mxu2 }
  0xcd   :  { %v683_v55 = vadd.f32 %v682_v54, %v634_v53 }
  0xce   :  { %v731_v56 = vpop.f32.mrf.mxu3  ;;  %v636_v57 = vpop.f32.mrf.mxu1 }
  0xcf   :  { %v732_v59 = vadd.f32 %v731_v56, %v683_v55  ;;  %v637_v2 = vadd.f32 %v636_v57, %v587_v37 }
  0xd0   :  { %v783_v60 = vpop.f32.mrf.mxu0 }
  0xd1   :  { %v781_v61 = vadd.f32 %v780_v51, %v732_v59 }
  0xd3   :  { %v819_v63 = vmax.f32 %v781_v61, 0.0 }
  0xd4   :  { %v685_v0 = vpop.f32.mrf.mxu2 }
  0xd5   :  { %v1261_v1 = vpack.c.bf16 %v819_v63, %v818_v62  ;;  %v686_v5 = vadd.f32 %v685_v0, %v637_v2 }
  0xd6   :  { %v734_v3 = vpop.f32.mrf.mxu3  ;;  %v638_v4 = vpop.f32.mrf.mxu1 }
  0xd7   :  { %1262 = vst [vmem:[%s1762_s2] sm:$0xff] %v1261_v1   ;;  %v735_v7 = vadd.f32 %v734_v3, %v686_v5  ;;  %v639_v8 = vadd.f32 %v638_v4, %v589_v41 }
  0xd8   :  { %v785_v6 = vpop.f32.mrf.mxu0 }
  0xd9   :  { %v784_v13 = vadd.f32 %v783_v60, %v735_v7 }
  0xdb   :  { %v820_v21 = vmax.f32 %v784_v13, 0.0 }
  0xdc   :  { %v687_v9 = vpop.f32.mrf.mxu2 }
  0xdd   :  { %v688_v10 = vadd.f32 %v687_v9, %v639_v8 }
  0xde   :  { %v736_v11 = vpop.f32.mrf.mxu3  ;;  %v641_v12 = vpop.f32.mrf.mxu1 }
  0xdf   :  { %v737_v15 = vadd.f32 %v736_v11, %v688_v10  ;;  %v642_v25 = vadd.f32 %v641_v12, %v1674_v14 }
  0xe0   :  { %v788_v16 = vpop.f32.mrf.mxu0 }
  0xe1   :  { %v786_v17 = vadd.f32 %v785_v6, %v737_v15 }
  0xe3   :  { %v821_v22 = vmax.f32 %v786_v17, 0.0 }
  0xe4   :  { %v690_v23 = vpop.f32.mrf.mxu2 }
  0xe5   :  { %v1266_v24 = vpack.c.bf16 %v821_v22, %v820_v21  ;;  %v691_v28 = vadd.f32 %v690_v23, %v642_v25 }
  0xe6   :  { %v739_v26 = vpop.f32.mrf.mxu3  ;;  %v643_v27 = vpop.f32.mrf.mxu1 }
  0xe7   :  { %1298 = vst [vmem:[%s1762_s2 + $0x8] sm:$0xff] %v1266_v24   ;;  %v740_v32 = vadd.f32 %v739_v26, %v691_v28  ;;  %v644_v33 = vadd.f32 %v643_v27, %v1681_v20 }
  0xe8   :  { %v790_v29 = vpop.f32.mrf.mxu0 }
  0xe9   :  { %v789_v44 = vadd.f32 %v788_v16, %v740_v32 }
  0xeb   :  { %v822_v14 = vmax.f32 %v789_v44, 0.0 }
  0xec   :  { %v692_v35 = vpop.f32.mrf.mxu2 }
  0xed   :  { %v693_v36 = vadd.f32 %v692_v35, %v644_v33 }
  0xee   :  { %v741_v37 = vpop.f32.mrf.mxu3  ;;  %v646_v41 = vpop.f32.mrf.mxu1 }
  0xef   :  { %v742_v45 = vadd.f32 %v741_v37, %v693_v36  ;;  %v647_v51 = vadd.f32 %v646_v41, %v1711_v34 }
  0xf0   :  { %v793_v46 = vpop.f32.mrf.mxu0 }
  0xf1   :  { %v791_v47 = vadd.f32 %v790_v29, %v742_v45 }
  0xf3   :  { %v823_v48 = vmax.f32 %v791_v47, 0.0 }
  0xf4   :  { %v695_v49 = vpop.f32.mrf.mxu2 }
  0xf5   :  { %v1271_v50 = vpack.c.bf16 %v823_v48, %v822_v14  ;;  %v696_v20 = vadd.f32 %v695_v49, %v647_v51 }
  0xf6   :  { %v744_v52 = vpop.f32.mrf.mxu3  ;;  %v648_v53 = vpop.f32.mrf.mxu1 }
  0xf7   :  { %1299 = vst [vmem:[%s1762_s2 + $0x10] sm:$0xff] %v1271_v50   ;;  %v745_v55 = vadd.f32 %v744_v52, %v696_v20  ;;  %v649_v56 = vadd.f32 %v648_v53, %v1718_v40 }
  0xf8   :  { %v795_v54 = vpop.f32.mrf.mxu0 }
  0xf9   :  { %v794_v61 = vadd.f32 %v793_v46, %v745_v55 }
  0xfb   :  { %v824_v34 = vmax.f32 %v794_v61, 0.0 }
  0xfc   :  { %v697_v57 = vpop.f32.mrf.mxu2 }
  0xfd   :  { %v698_v58 = vadd.f32 %v697_v57, %v649_v56 }
  0xfe   :  { %v746_v59 = vpop.f32.mrf.mxu3  ;;  %v651_v60 = vpop.f32.mrf.mxu1 }
  0xff   :  { %v747_v62 = vadd.f32 %v746_v59, %v698_v58  ;;  %v652_v4 = vadd.f32 %v651_v60, %v1677_v18 }
 0x100   :  { %v798_v63 = vpop.f32.mrf.mxu0 }
 0x101   :  { %v796_v0 = vadd.f32 %v795_v54, %v747_v62 }
 0x103   :  { %v825_v1 = vmax.f32 %v796_v0, 0.0 }
 0x104   :  { %v700_v2 = vpop.f32.mrf.mxu2 }
 0x105   :  { %v1276_v3 = vpack.c.bf16 %v825_v1, %v824_v34  ;;  %v701_v40 = vadd.f32 %v700_v2, %v652_v4 }
 0x106   :  { %v749_v5 = vpop.f32.mrf.mxu3  ;;  %v653_v6 = vpop.f32.mrf.mxu1 }
 0x107   :  { %1300 = vst [vmem:[%s1762_s2 + $0x18] sm:$0xff] %v1276_v3   ;;  %v750_v8 = vadd.f32 %v749_v5, %v701_v40  ;;  %v654_v9 = vadd.f32 %v653_v6, %v1707_v30 }
 0x108   :  { %v800_v7 = vpop.f32.mrf.mxu0 }
 0x109   :  { %v799_v15 = vadd.f32 %v798_v63, %v750_v8 }
 0x10b   :  { %v826_v18 = vmax.f32 %v799_v15, 0.0 }
 0x10c   :  { %v702_v10 = vpop.f32.mrf.mxu2 }
 0x10d   :  { %v703_v11 = vadd.f32 %v702_v10, %v654_v9 }
 0x10e   :  { %v751_v12 = vpop.f32.mrf.mxu3  ;;  %v656_v13 = vpop.f32.mrf.mxu1 }
 0x10f   :  { %v752_v16 = vadd.f32 %v751_v12, %v703_v11  ;;  %v657_v25 = vadd.f32 %v656_v13, %v1714_v38 }
 0x110   :  { %v803_v17 = vpop.f32.mrf.mxu0 }
 0x111   :  { %v801_v21 = vadd.f32 %v800_v7, %v752_v16 }
 0x113   :  { %v827_v22 = vmax.f32 %v801_v21, 0.0 }
 0x114   :  { %v705_v23 = vpop.f32.mrf.mxu2 }
 0x115   :  { %v1281_v24 = vpack.c.bf16 %v827_v22, %v826_v18  ;;  %v706_v30 = vadd.f32 %v705_v23, %v657_v25 }
 0x116   :  { %v754_v26 = vpop.f32.mrf.mxu3  ;;  %v658_v27 = vpop.f32.mrf.mxu1 }
 0x117   :  { %1301 = vst [vmem:[%s1762_s2 + $0x20] sm:$0xff] %v1281_v24   ;;  %v755_v29 = vadd.f32 %v754_v26, %v706_v30  ;;  %v659_v32 = vadd.f32 %v658_v27, %v1720_v42 }
 0x118   :  { %v805_v28 = vpop.f32.mrf.mxu0 }
 0x119   :  { %v804_v41 = vadd.f32 %v803_v17, %v755_v29 }
 0x11b   :  { %v828_v38 = vmax.f32 %v804_v41, 0.0 }
 0x11c   :  { %v707_v33 = vpop.f32.mrf.mxu2 }
 0x11d   :  { %v708_v35 = vadd.f32 %v707_v33, %v659_v32 }
 0x11e   :  { %v756_v36 = vpop.f32.mrf.mxu3  ;;  %v661_v37 = vpop.f32.mrf.mxu1 }
 0x11f   :  { %v757_v44 = vadd.f32 %v756_v36, %v708_v35  ;;  %v662_v49 = vadd.f32 %v661_v37, %v1679_v19 }
 0x120   :  { %v808_v46 = vpop.f32.mrf.mxu0 }
 0x121   :  { %v806_v45 = vadd.f32 %v805_v28, %v757_v44 }
 0x123   :  { %v829_v47 = vmax.f32 %v806_v45, 0.0 }
 0x124   :  { %v710_v14 = vpop.f32.mrf.mxu2 }
 0x125   :  { %v1286_v48 = vpack.c.bf16 %v829_v47, %v828_v38  ;;  %v711_v42 = vadd.f32 %v710_v14, %v662_v49 }
 0x126   :  { %v759_v50 = vpop.f32.mrf.mxu3  ;;  %v663_v51 = vpop.f32.mrf.mxu1 }
 0x127   :  { %1302 = vst [vmem:[%s1762_s2 + $0x28] sm:$0xff] %v1286_v48   ;;  %v760_v52 = vadd.f32 %v759_v50, %v711_v42  ;;  %v664_v53 = vadd.f32 %v663_v51, %v1709_v31 }
 0x128   :  { %v810_v20 = vpop.f32.mrf.mxu0 }
 0x129   :  { %v809_v58 = vadd.f32 %v808_v46, %v760_v52 }
 0x12b   :  { %v830_v61 = vmax.f32 %v809_v58, 0.0 }
 0x12c   :  { %v712_v54 = vpop.f32.mrf.mxu2 }
 0x12d   :  { %v713_v55 = vadd.f32 %v712_v54, %v664_v53 }
 0x12e   :  { %v761_v56 = vpop.f32.mrf.mxu3  ;;  %v666_v57 = vpop.f32.mrf.mxu1 }
 0x12f   :  { %v762_v59 = vadd.f32 %v761_v56, %v713_v55  ;;  %v667_v0 = vadd.f32 %v666_v57, %v1716_v39 }
 0x130   :  { %v813_v1 = vpop.f32.mrf.mxu0 }
 0x131   :  { %v811_v60 = vadd.f32 %v810_v20, %v762_v59 }
 0x133   :  { %v831_v19 = vmax.f32 %v811_v60, 0.0 }
 0x134   :  { %v715_v62 = vpop.f32.mrf.mxu2 }
 0x135   :  { %v1291_v63 = vpack.c.bf16 %v831_v19, %v830_v61  ;;  %v716_v31 = vadd.f32 %v715_v62, %v667_v0 }
 0x136   :  { %v764_v34 = vpop.f32.mrf.mxu3  ;;  %v668_v2 = vpop.f32.mrf.mxu1 }
 0x137   :  { %1303 = vst [vmem:[%s1762_s2 + $0x30] sm:$0xff] %v1291_v63   ;;  %v765_v3 = vadd.f32 %v764_v34, %v716_v31  ;;  %v669_v4 = vadd.f32 %v668_v2, %v1722_v43 }
 0x138   :  { %v815_v9 = vpop.f32.mrf.mxu0 }
 0x139   :  { %v814_v7 = vadd.f32 %v813_v1, %v765_v3 }
 0x13b   :  { %v832_v11 = vmax.f32 %v814_v7, 0.0 }
 0x13c   :  { %v717_v5 = vpop.f32.mrf.mxu2 }
 0x13d   :  { %v718_v6 = vadd.f32 %v717_v5, %v669_v4 }
 0x13e   :  { %v766_v40 = vpop.f32.mrf.mxu3 }
 0x13f   :  { %v767_v8 = vadd.f32 %v766_v40, %v718_v6 }
 0x141   :  { %v816_v10 = vadd.f32 %v815_v9, %v767_v8 }
 0x143   :  { %v833_v39 = vmax.f32 %v816_v10, 0.0 }
 0x145   :  { %v1296_v12 = vpack.c.bf16 %v833_v39, %v832_v11 }
 0x147   :  { %1304 = vst [vmem:[%s1762_s2 + $0x38] sm:$0xff] %v1296_v12  }

// kernel: base_cnn_forward.10
= control target key start
LH: loop header
LB: loop body
LE: loop exit
PB: predicated region body
PF: predicated region fallthrough
CT: control target
= control target key end

     0   :  { %s2389_s9 = smov 0   ;;  %s2391_s10 = smov 0   ;;  %s2939_s0 = inlined_call_operand.vmem [shape: bf16[32,1152], index: 0, kind: input, shape index: {}]   ;;  %s2940_s1 = inlined_call_operand.vmem [shape: bf16[1152,256], index: 1, kind: input, shape index: {}]   ;;  %s2941_s2 = inlined_call_operand.vmem [shape: bf16[32,256], index: 2, kind: output, shape index: {}]  }
   0x1   :  { %s2393_s11 = smov 0   ;;  %s2395_s12 = smov 0  }
   0x2   :  { %s2397_s13 = smov 0  }
   0x3 LB: > { %s21_s14 = sadd.s32 1, %s2368_s12  ;;  %s1811_s15 = sadd.s32 4294967295, %s2372_s13   ;;  %s2372_s13 = sphi %s2397_s13, %s12_s13   ;;  %s2368_s12 = sphi %s2395_s12, %s2946_s12   ;;  %s2364_s11 = sphi %s2393_s11, %s2945_s11   ;;  %s2360_s10 = sphi %s2391_s10, %s2944_s10   ;;  %s2356_s9 = sphi %s2389_s9, %s2943_s9  }
   0x4   : > { %p22_p0 = scmp.ge.s32.totalorder %s21_s14, 2  ;;  %p64_p1 = scmp.ne.s32.totalorder %s2360_s10, %s2356_s9 }
   0x5   : > { %p65_p2 = scmp.eq.s32.totalorder %s2372_s13, 0  ;;  %p96_p4 = scmp.eq.s32.totalorder %s1811_s15, 1 }
   0x6   : > { %s2948_s14 = smov (%p22_p0, %s21_s14), 0  ;;  %s57_s17 = sadd.s32 1, %s2360_s10 }
   0x7   : > { %p66_p3 = por %p65_p2, %p64_p1  ;;  %s54_s16 = ssub.s32 %s2368_s12, %s2948_s14 }
   0x8   : > { %p55_p5 = scmp.eq.s32.totalorder %s54_s16, 0  ;;  %p2424_p6 = por %p96_p4, %p64_p1 }
   0x9   : > { %p1815_p7 = scmp.ge.s32.totalorder %s2372_s13, 2 }
   0xa   : > { %s2429_s19 = scalar_select %p55_p5, %s2360_s10, %s57_s17  }
   0xb   : > { %128 = sbr.rel (%p1815_p7) target bundleno = 165 (0xa5), region = 20 }
  0x10   : > { %131 = sbr.rel (!%p66_p3) target bundleno = 165 (0xa5), region = 24  ;;  %s133_s20 = sand.u32 (%p66_p3), 1, %s2360_s10  }
  0x11   : > { %s1816_s21 = sshll.u32 (%p66_p3), %s2368_s12, 2  ;;  %s2292_s22 = smul.u32 (%p66_p3), 576, %s133_s20 }
  0x12   : > { %s2437_s25 = scalar_lea.vmem (%p66_p3), %s2940_s1, %s1816_s21 }
  0x13   : > { %v154_v0 = vld [vmem:[%s2437_s25] sm:$0xf] (%p66_p3)  ;;  %v156_v1 = vld [vmem:[%s2437_s25 + $0x8] sm:$0xf] (%p66_p3)  ;;  %v158_v2 = vld [vmem:[%s2437_s25 + $0x10] sm:$0xf] (%p66_p3) }
  0x14   : > { %s2442_s26 = scalar_lea.vmem (%p66_p3), [#allocation2], %s2292_s22  ;;  %v160_v3 = vld [vmem:[%s2437_s25 + $0x18] sm:$0xf] (%p66_p3)  ;;  %v162_v4 = vld [vmem:[%s2437_s25 + $0x20] sm:$0xf] (%p66_p3) }
  0x15   : > { %155 = vst [vmem:[%s2442_s26] sm:$0xf] %v154_v0  ;;  %v164_v5 = vld [vmem:[%s2437_s25 + $0x28] sm:$0xf]  ;;  %v166_v6 = vld [vmem:[%s2437_s25 + $0x30] sm:$0xf] }
  0x16   : > { %157 = vst [vmem:[%s2442_s26 + $0x4] sm:$0xf] %v156_v1  ;;  %v168_v7 = vld [vmem:[%s2437_s25 + $0x38] sm:$0xf]  ;;  %v170_v8 = vld [vmem:[%s2437_s25 + $0x40] sm:$0xf] }
  0x17   : > { %159 = vst [vmem:[%s2442_s26 + $0x8] sm:$0xf] %v158_v2  ;;  %v172_v9 = vld [vmem:[%s2437_s25 + $0x48] sm:$0xf]  ;;  %v174_v10 = vld [vmem:[%s2437_s25 + $0x50] sm:$0xf] }
  0x18   : > { %161 = vst [vmem:[%s2442_s26 + $0xc] sm:$0xf] %v160_v3  ;;  %v176_v11 = vld [vmem:[%s2437_s25 + $0x58] sm:$0xf]  ;;  %v178_v12 = vld [vmem:[%s2437_s25 + $0x60] sm:$0xf] }
  0x19   : > { %163 = vst [vmem:[%s2442_s26 + $0x10] sm:$0xf] %v162_v4  ;;  %v180_v13 = vld [vmem:[%s2437_s25 + $0x68] sm:$0xf]  ;;  %v182_v14 = vld [vmem:[%s2437_s25 + $0x70] sm:$0xf] }
  0x1a   : > { %165 = vst [vmem:[%s2442_s26 + $0x14] sm:$0xf] %v164_v5  ;;  %v184_v15 = vld [vmem:[%s2437_s25 + $0x78] sm:$0xf]  ;;  %v186_v16 = vld [vmem:[%s2437_s25 + $0x80] sm:$0xf] }
  0x1b   : > { %167 = vst [vmem:[%s2442_s26 + $0x18] sm:$0xf] %v166_v6  ;;  %v188_v17 = vld [vmem:[%s2437_s25 + $0x88] sm:$0xf]  ;;  %v190_v18 = vld [vmem:[%s2437_s25 + $0x90] sm:$0xf] }
  0x1c   : > { %169 = vst [vmem:[%s2442_s26 + $0x1c] sm:$0xf] %v168_v7  ;;  %v192_v19 = vld [vmem:[%s2437_s25 + $0x98] sm:$0xf]  ;;  %v194_v20 = vld [vmem:[%s2437_s25 + $0xa0] sm:$0xf] }
  0x1d   : > { %171 = vst [vmem:[%s2442_s26 + $0x20] sm:$0xf] %v170_v8  ;;  %v196_v21 = vld [vmem:[%s2437_s25 + $0xa8] sm:$0xf]  ;;  %v198_v22 = vld [vmem:[%s2437_s25 + $0xb0] sm:$0xf] }
  0x1e   : > { %173 = vst [vmem:[%s2442_s26 + $0x24] sm:$0xf] %v172_v9  ;;  %v200_v23 = vld [vmem:[%s2437_s25 + $0xb8] sm:$0xf]  ;;  %v202_v24 = vld [vmem:[%s2437_s25 + $0xc0] sm:$0xf] }
  0x1f   : > { %175 = vst [vmem:[%s2442_s26 + $0x28] sm:$0xf] %v174_v10  ;;  %v204_v25 = vld [vmem:[%s2437_s25 + $0xc8] sm:$0xf]  ;;  %v206_v26 = vld [vmem:[%s2437_s25 + $0xd0] sm:$0xf] }
  0x20   : > { %177 = vst [vmem:[%s2442_s26 + $0x2c] sm:$0xf] %v176_v11  ;;  %v208_v27 = vld [vmem:[%s2437_s25 + $0xd8] sm:$0xf]  ;;  %v210_v28 = vld [vmem:[%s2437_s25 + $0xe0] sm:$0xf] }
  0x21   : > { %179 = vst [vmem:[%s2442_s26 + $0x30] sm:$0xf] %v178_v12  ;;  %v212_v29 = vld [vmem:[%s2437_s25 + $0xe8] sm:$0xf]  ;;  %v214_v30 = vld [vmem:[%s2437_s25 + $0xf0] sm:$0xf] }
  0x22   : > { %181 = vst [vmem:[%s2442_s26 + $0x34] sm:$0xf] %v180_v13  ;;  %v216_v31 = vld [vmem:[%s2437_s25 + $0xf8] sm:$0xf]  ;;  %v218_v32 = vld [vmem:[%s2437_s25 + $0x100] sm:$0xf] }
  0x23   : > { %183 = vst [vmem:[%s2442_s26 + $0x38] sm:$0xf] %v182_v14  ;;  %v220_v33 = vld [vmem:[%s2437_s25 + $0x108] sm:$0xf]  ;;  %v222_v34 = vld [vmem:[%s2437_s25 + $0x110] sm:$0xf] }
  0x24   : > { %185 = vst [vmem:[%s2442_s26 + $0x3c] sm:$0xf] %v184_v15  ;;  %v224_v35 = vld [vmem:[%s2437_s25 + $0x118] sm:$0xf]  ;;  %v226_v36 = vld [vmem:[%s2437_s25 + $0x120] sm:$0xf] }
  0x25   : > { %187 = vst [vmem:[%s2442_s26 + $0x40] sm:$0xf] %v186_v16  ;;  %v228_v37 = vld [vmem:[%s2437_s25 + $0x128] sm:$0xf]  ;;  %v230_v38 = vld [vmem:[%s2437_s25 + $0x130] sm:$0xf] }
  0x26   : > { %189 = vst [vmem:[%s2442_s26 + $0x44] sm:$0xf] %v188_v17  ;;  %v232_v39 = vld [vmem:[%s2437_s25 + $0x138] sm:$0xf]  ;;  %v234_v40 = vld [vmem:[%s2437_s25 + $0x140] sm:$0xf] }
  0x27   : > { %191 = vst [vmem:[%s2442_s26 + $0x48] sm:$0xf] %v190_v18  ;;  %v236_v41 = vld [vmem:[%s2437_s25 + $0x148] sm:$0xf]  ;;  %v238_v42 = vld [vmem:[%s2437_s25 + $0x150] sm:$0xf] }
  0x28   : > { %193 = vst [vmem:[%s2442_s26 + $0x4c] sm:$0xf] %v192_v19  ;;  %v240_v43 = vld [vmem:[%s2437_s25 + $0x158] sm:$0xf]  ;;  %v242_v44 = vld [vmem:[%s2437_s25 + $0x160] sm:$0xf] }
  0x29   : > { %195 = vst [vmem:[%s2442_s26 + $0x50] sm:$0xf] %v194_v20  ;;  %v244_v45 = vld [vmem:[%s2437_s25 + $0x168] sm:$0xf]  ;;  %v246_v46 = vld [vmem:[%s2437_s25 + $0x170] sm:$0xf] }
  0x2a   : > { %197 = vst [vmem:[%s2442_s26 + $0x54] sm:$0xf] %v196_v21  ;;  %v248_v47 = vld [vmem:[%s2437_s25 + $0x178] sm:$0xf]  ;;  %v250_v48 = vld [vmem:[%s2437_s25 + $0x180] sm:$0xf] }
  0x2b   : > { %199 = vst [vmem:[%s2442_s26 + $0x58] sm:$0xf] %v198_v22  ;;  %v252_v49 = vld [vmem:[%s2437_s25 + $0x188] sm:$0xf]  ;;  %v254_v50 = vld [vmem:[%s2437_s25 + $0x190] sm:$0xf] }
  0x2c   : > { %201 = vst [vmem:[%s2442_s26 + $0x5c] sm:$0xf] %v200_v23  ;;  %v256_v51 = vld [vmem:[%s2437_s25 + $0x198] sm:$0xf]  ;;  %v258_v52 = vld [vmem:[%s2437_s25 + $0x1a0] sm:$0xf] }
  0x2d   : > { %203 = vst [vmem:[%s2442_s26 + $0x60] sm:$0xf] %v202_v24  ;;  %v260_v53 = vld [vmem:[%s2437_s25 + $0x1a8] sm:$0xf]  ;;  %v262_v54 = vld [vmem:[%s2437_s25 + $0x1b0] sm:$0xf] }
  0x2e   : > { %205 = vst [vmem:[%s2442_s26 + $0x64] sm:$0xf] %v204_v25  ;;  %v264_v55 = vld [vmem:[%s2437_s25 + $0x1b8] sm:$0xf]  ;;  %v266_v56 = vld [vmem:[%s2437_s25 + $0x1c0] sm:$0xf] }
  0x2f   : > { %207 = vst [vmem:[%s2442_s26 + $0x68] sm:$0xf] %v206_v26  ;;  %v268_v57 = vld [vmem:[%s2437_s25 + $0x1c8] sm:$0xf]  ;;  %v270_v58 = vld [vmem:[%s2437_s25 + $0x1d0] sm:$0xf] }
  0x30   : > { %209 = vst [vmem:[%s2442_s26 + $0x6c] sm:$0xf] %v208_v27  ;;  %v272_v59 = vld [vmem:[%s2437_s25 + $0x1d8] sm:$0xf]  ;;  %v274_v60 = vld [vmem:[%s2437_s25 + $0x1e0] sm:$0xf] }
  0x31   : > { %211 = vst [vmem:[%s2442_s26 + $0x70] sm:$0xf] %v210_v28  ;;  %v276_v61 = vld [vmem:[%s2437_s25 + $0x1e8] sm:$0xf]  ;;  %v278_v62 = vld [vmem:[%s2437_s25 + $0x1f0] sm:$0xf] }
  0x32   : > { %213 = vst [vmem:[%s2442_s26 + $0x74] sm:$0xf] %v212_v29  ;;  %v280_v63 = vld [vmem:[%s2437_s25 + $0x1f8] sm:$0xf]  ;;  %v282_v0 = vld [vmem:[%s2437_s25 + $0x200] sm:$0xf] }
  0x33   : > { %215 = vst [vmem:[%s2442_s26 + $0x78] sm:$0xf] %v214_v30  ;;  %v284_v1 = vld [vmem:[%s2437_s25 + $0x208] sm:$0xf]  ;;  %v286_v2 = vld [vmem:[%s2437_s25 + $0x210] sm:$0xf] }
  0x34   : > { %217 = vst [vmem:[%s2442_s26 + $0x7c] sm:$0xf] %v216_v31  ;;  %v288_v3 = vld [vmem:[%s2437_s25 + $0x218] sm:$0xf]  ;;  %v290_v4 = vld [vmem:[%s2437_s25 + $0x220] sm:$0xf] }
  0x35   : > { %219 = vst [vmem:[%s2442_s26 + $0x80] sm:$0xf] %v218_v32  ;;  %v292_v5 = vld [vmem:[%s2437_s25 + $0x228] sm:$0xf]  ;;  %v294_v6 = vld [vmem:[%s2437_s25 + $0x230] sm:$0xf] }
  0x36   : > { %221 = vst [vmem:[%s2442_s26 + $0x84] sm:$0xf] %v220_v33  ;;  %v296_v7 = vld [vmem:[%s2437_s25 + $0x238] sm:$0xf]  ;;  %v298_v8 = vld [vmem:[%s2437_s25 + $0x240] sm:$0xf] }
  0x37   : > { %223 = vst [vmem:[%s2442_s26 + $0x88] sm:$0xf] %v222_v34  ;;  %v300_v9 = vld [vmem:[%s2437_s25 + $0x248] sm:$0xf]  ;;  %v302_v10 = vld [vmem:[%s2437_s25 + $0x250] sm:$0xf] }
  0x38   : > { %225 = vst [vmem:[%s2442_s26 + $0x8c] sm:$0xf] %v224_v35  ;;  %v304_v11 = vld [vmem:[%s2437_s25 + $0x258] sm:$0xf]  ;;  %v306_v12 = vld [vmem:[%s2437_s25 + $0x260] sm:$0xf] }
  0x39   : > { %227 = vst [vmem:[%s2442_s26 + $0x90] sm:$0xf] %v226_v36  ;;  %v308_v13 = vld [vmem:[%s2437_s25 + $0x268] sm:$0xf]  ;;  %v310_v14 = vld [vmem:[%s2437_s25 + $0x270] sm:$0xf] }
  0x3a   : > { %229 = vst [vmem:[%s2442_s26 + $0x94] sm:$0xf] %v228_v37  ;;  %v312_v15 = vld [vmem:[%s2437_s25 + $0x278] sm:$0xf]  ;;  %v314_v16 = vld [vmem:[%s2437_s25 + $0x280] sm:$0xf] }
  0x3b   : > { %231 = vst [vmem:[%s2442_s26 + $0x98] sm:$0xf] %v230_v38  ;;  %v316_v17 = vld [vmem:[%s2437_s25 + $0x288] sm:$0xf]  ;;  %v318_v18 = vld [vmem:[%s2437_s25 + $0x290] sm:$0xf] }
  0x3c   : > { %233 = vst [vmem:[%s2442_s26 + $0x9c] sm:$0xf] %v232_v39  ;;  %v320_v19 = vld [vmem:[%s2437_s25 + $0x298] sm:$0xf]  ;;  %v322_v20 = vld [vmem:[%s2437_s25 + $0x2a0] sm:$0xf] }
  0x3d   : > { %235 = vst [vmem:[%s2442_s26 + $0xa0] sm:$0xf] %v234_v40  ;;  %v324_v21 = vld [vmem:[%s2437_s25 + $0x2a8] sm:$0xf]  ;;  %v326_v22 = vld [vmem:[%s2437_s25 + $0x2b0] sm:$0xf] }
  0x3e   : > { %237 = vst [vmem:[%s2442_s26 + $0xa4] sm:$0xf] %v236_v41  ;;  %v328_v23 = vld [vmem:[%s2437_s25 + $0x2b8] sm:$0xf]  ;;  %v330_v24 = vld [vmem:[%s2437_s25 + $0x2c0] sm:$0xf] }
  0x3f   : > { %239 = vst [vmem:[%s2442_s26 + $0xa8] sm:$0xf] %v238_v42  ;;  %v332_v25 = vld [vmem:[%s2437_s25 + $0x2c8] sm:$0xf]  ;;  %v334_v26 = vld [vmem:[%s2437_s25 + $0x2d0] sm:$0xf] }
  0x40   : > { %241 = vst [vmem:[%s2442_s26 + $0xac] sm:$0xf] %v240_v43  ;;  %v336_v27 = vld [vmem:[%s2437_s25 + $0x2d8] sm:$0xf]  ;;  %v338_v28 = vld [vmem:[%s2437_s25 + $0x2e0] sm:$0xf] }
  0x41   : > { %243 = vst [vmem:[%s2442_s26 + $0xb0] sm:$0xf] %v242_v44  ;;  %v340_v29 = vld [vmem:[%s2437_s25 + $0x2e8] sm:$0xf]  ;;  %v342_v30 = vld [vmem:[%s2437_s25 + $0x2f0] sm:$0xf] }
  0x42   : > { %245 = vst [vmem:[%s2442_s26 + $0xb4] sm:$0xf] %v244_v45  ;;  %v344_v31 = vld [vmem:[%s2437_s25 + $0x2f8] sm:$0xf]  ;;  %v346_v32 = vld [vmem:[%s2437_s25 + $0x300] sm:$0xf] }
  0x43   : > { %247 = vst [vmem:[%s2442_s26 + $0xb8] sm:$0xf] %v246_v46  ;;  %v348_v33 = vld [vmem:[%s2437_s25 + $0x308] sm:$0xf]  ;;  %v350_v34 = vld [vmem:[%s2437_s25 + $0x310] sm:$0xf] }
  0x44   : > { %249 = vst [vmem:[%s2442_s26 + $0xbc] sm:$0xf] %v248_v47  ;;  %v352_v35 = vld [vmem:[%s2437_s25 + $0x318] sm:$0xf]  ;;  %v354_v36 = vld [vmem:[%s2437_s25 + $0x320] sm:$0xf] }
  0x45   : > { %251 = vst [vmem:[%s2442_s26 + $0xc0] sm:$0xf] %v250_v48  ;;  %v356_v37 = vld [vmem:[%s2437_s25 + $0x328] sm:$0xf]  ;;  %v358_v38 = vld [vmem:[%s2437_s25 + $0x330] sm:$0xf] }
  0x46   : > { %253 = vst [vmem:[%s2442_s26 + $0xc4] sm:$0xf] %v252_v49  ;;  %v360_v39 = vld [vmem:[%s2437_s25 + $0x338] sm:$0xf]  ;;  %v362_v40 = vld [vmem:[%s2437_s25 + $0x340] sm:$0xf] }
  0x47   : > { %255 = vst [vmem:[%s2442_s26 + $0xc8] sm:$0xf] %v254_v50  ;;  %v364_v41 = vld [vmem:[%s2437_s25 + $0x348] sm:$0xf]  ;;  %v366_v42 = vld [vmem:[%s2437_s25 + $0x350] sm:$0xf] }
  0x48   : > { %257 = vst [vmem:[%s2442_s26 + $0xcc] sm:$0xf] %v256_v51  ;;  %v368_v43 = vld [vmem:[%s2437_s25 + $0x358] sm:$0xf]  ;;  %v370_v44 = vld [vmem:[%s2437_s25 + $0x360] sm:$0xf] }
  0x49   : > { %259 = vst [vmem:[%s2442_s26 + $0xd0] sm:$0xf] %v258_v52  ;;  %v372_v45 = vld [vmem:[%s2437_s25 + $0x368] sm:$0xf]  ;;  %v374_v46 = vld [vmem:[%s2437_s25 + $0x370] sm:$0xf] }
  0x4a   : > { %261 = vst [vmem:[%s2442_s26 + $0xd4] sm:$0xf] %v260_v53  ;;  %v376_v47 = vld [vmem:[%s2437_s25 + $0x378] sm:$0xf]  ;;  %v378_v48 = vld [vmem:[%s2437_s25 + $0x380] sm:$0xf] }
  0x4b   : > { %263 = vst [vmem:[%s2442_s26 + $0xd8] sm:$0xf] %v262_v54  ;;  %v380_v49 = vld [vmem:[%s2437_s25 + $0x388] sm:$0xf]  ;;  %v382_v50 = vld [vmem:[%s2437_s25 + $0x390] sm:$0xf] }
  0x4c   : > { %265 = vst [vmem:[%s2442_s26 + $0xdc] sm:$0xf] %v264_v55  ;;  %v384_v51 = vld [vmem:[%s2437_s25 + $0x398] sm:$0xf]  ;;  %v386_v52 = vld [vmem:[%s2437_s25 + $0x3a0] sm:$0xf] }
  0x4d   : > { %267 = vst [vmem:[%s2442_s26 + $0xe0] sm:$0xf] %v266_v56  ;;  %v388_v53 = vld [vmem:[%s2437_s25 + $0x3a8] sm:$0xf]  ;;  %v390_v54 = vld [vmem:[%s2437_s25 + $0x3b0] sm:$0xf] }
  0x4e   : > { %269 = vst [vmem:[%s2442_s26 + $0xe4] sm:$0xf] %v268_v57  ;;  %v392_v55 = vld [vmem:[%s2437_s25 + $0x3b8] sm:$0xf]  ;;  %v394_v56 = vld [vmem:[%s2437_s25 + $0x3c0] sm:$0xf] }
  0x4f   : > { %271 = vst [vmem:[%s2442_s26 + $0xe8] sm:$0xf] %v270_v58  ;;  %v396_v57 = vld [vmem:[%s2437_s25 + $0x3c8] sm:$0xf]  ;;  %v398_v58 = vld [vmem:[%s2437_s25 + $0x3d0] sm:$0xf] }
  0x50   : > { %273 = vst [vmem:[%s2442_s26 + $0xec] sm:$0xf] %v272_v59  ;;  %v400_v59 = vld [vmem:[%s2437_s25 + $0x3d8] sm:$0xf] }
  0x51   : > { %275 = vst [vmem:[%s2442_s26 + $0xf0] sm:$0xf] %v274_v60  ;;  %v402_v60 = vld [vmem:[%s2437_s25 + $0x3e0] sm:$0xf] }
  0x52   : > { %277 = vst [vmem:[%s2442_s26 + $0xf4] sm:$0xf] %v276_v61  ;;  %v404_v61 = vld [vmem:[%s2437_s25 + $0x3e8] sm:$0xf] }
  0x53   : > { %279 = vst [vmem:[%s2442_s26 + $0xf8] sm:$0xf] %v278_v62  ;;  %v406_v62 = vld [vmem:[%s2437_s25 + $0x3f0] sm:$0xf] }
  0x54   : > { %281 = vst [vmem:[%s2442_s26 + $0xfc] sm:$0xf] %v280_v63  ;;  %v408_v63 = vld [vmem:[%s2437_s25 + $0x3f8] sm:$0xf] }
  0x55   : > { %283 = vst [vmem:[%s2442_s26 + $0x100] sm:$0xf] %v282_v0  ;;  %v410_v0 = vld [vmem:[%s2437_s25 + $0x400] sm:$0xf] }
  0x56   : > { %285 = vst [vmem:[%s2442_s26 + $0x104] sm:$0xf] %v284_v1  ;;  %v412_v1 = vld [vmem:[%s2437_s25 + $0x408] sm:$0xf] }
  0x57   : > { %287 = vst [vmem:[%s2442_s26 + $0x108] sm:$0xf] %v286_v2  ;;  %v414_v2 = vld [vmem:[%s2437_s25 + $0x410] sm:$0xf] }
  0x58   : > { %289 = vst [vmem:[%s2442_s26 + $0x10c] sm:$0xf] %v288_v3  ;;  %v416_v3 = vld [vmem:[%s2437_s25 + $0x418] sm:$0xf] }
  0x59   : > { %291 = vst [vmem:[%s2442_s26 + $0x110] sm:$0xf] %v290_v4  ;;  %v418_v4 = vld [vmem:[%s2437_s25 + $0x420] sm:$0xf] }
  0x5a   : > { %293 = vst [vmem:[%s2442_s26 + $0x114] sm:$0xf] %v292_v5  ;;  %v420_v5 = vld [vmem:[%s2437_s25 + $0x428] sm:$0xf] }
  0x5b   : > { %295 = vst [vmem:[%s2442_s26 + $0x118] sm:$0xf] %v294_v6  ;;  %v422_v6 = vld [vmem:[%s2437_s25 + $0x430] sm:$0xf] }
  0x5c   : > { %297 = vst [vmem:[%s2442_s26 + $0x11c] sm:$0xf] %v296_v7  ;;  %v424_v7 = vld [vmem:[%s2437_s25 + $0x438] sm:$0xf] }
  0x5d   : > { %299 = vst [vmem:[%s2442_s26 + $0x120] sm:$0xf] %v298_v8  ;;  %v426_v8 = vld [vmem:[%s2437_s25 + $0x440] sm:$0xf] }
  0x5e   : > { %301 = vst [vmem:[%s2442_s26 + $0x124] sm:$0xf] %v300_v9  ;;  %v428_v9 = vld [vmem:[%s2437_s25 + $0x448] sm:$0xf] }
  0x5f   : > { %303 = vst [vmem:[%s2442_s26 + $0x128] sm:$0xf] %v302_v10  ;;  %v430_v10 = vld [vmem:[%s2437_s25 + $0x450] sm:$0xf] }
  0x60   : > { %305 = vst [vmem:[%s2442_s26 + $0x12c] sm:$0xf] %v304_v11  ;;  %v432_v11 = vld [vmem:[%s2437_s25 + $0x458] sm:$0xf] }
  0x61   : > { %307 = vst [vmem:[%s2442_s26 + $0x130] sm:$0xf] %v306_v12  ;;  %v434_v12 = vld [vmem:[%s2437_s25 + $0x460] sm:$0xf] }
  0x62   : > { %309 = vst [vmem:[%s2442_s26 + $0x134] sm:$0xf] %v308_v13  ;;  %v436_v13 = vld [vmem:[%s2437_s25 + $0x468] sm:$0xf] }
  0x63   : > { %311 = vst [vmem:[%s2442_s26 + $0x138] sm:$0xf] %v310_v14  ;;  %v438_v14 = vld [vmem:[%s2437_s25 + $0x470] sm:$0xf] }
  0x64   : > { %313 = vst [vmem:[%s2442_s26 + $0x13c] sm:$0xf] %v312_v15  ;;  %v440_v15 = vld [vmem:[%s2437_s25 + $0x478] sm:$0xf] }
  0x65   : > { %315 = vst [vmem:[%s2442_s26 + $0x140] sm:$0xf] %v314_v16 }
  0x66   : > { %317 = vst [vmem:[%s2442_s26 + $0x144] sm:$0xf] %v316_v17 }
  0x67   : > { %319 = vst [vmem:[%s2442_s26 + $0x148] sm:$0xf] %v318_v18 }
  0x68   : > { %321 = vst [vmem:[%s2442_s26 + $0x14c] sm:$0xf] %v320_v19 }
  0x69   : > { %323 = vst [vmem:[%s2442_s26 + $0x150] sm:$0xf] %v322_v20 }
  0x6a   : > { %325 = vst [vmem:[%s2442_s26 + $0x154] sm:$0xf] %v324_v21 }
  0x6b   : > { %327 = vst [vmem:[%s2442_s26 + $0x158] sm:$0xf] %v326_v22 }
  0x6c   : > { %329 = vst [vmem:[%s2442_s26 + $0x15c] sm:$0xf] %v328_v23 }
  0x6d   : > { %331 = vst [vmem:[%s2442_s26 + $0x160] sm:$0xf] %v330_v24 }
  0x6e   : > { %333 = vst [vmem:[%s2442_s26 + $0x164] sm:$0xf] %v332_v25 }
  0x6f   : > { %335 = vst [vmem:[%s2442_s26 + $0x168] sm:$0xf] %v334_v26 }
  0x70   : > { %337 = vst [vmem:[%s2442_s26 + $0x16c] sm:$0xf] %v336_v27 }
  0x71   : > { %339 = vst [vmem:[%s2442_s26 + $0x170] sm:$0xf] %v338_v28 }
  0x72   : > { %341 = vst [vmem:[%s2442_s26 + $0x174] sm:$0xf] %v340_v29 }
  0x73   : > { %343 = vst [vmem:[%s2442_s26 + $0x178] sm:$0xf] %v342_v30 }
  0x74   : > { %345 = vst [vmem:[%s2442_s26 + $0x17c] sm:$0xf] %v344_v31 }
  0x75   : > { %347 = vst [vmem:[%s2442_s26 + $0x180] sm:$0xf] %v346_v32 }
  0x76   : > { %349 = vst [vmem:[%s2442_s26 + $0x184] sm:$0xf] %v348_v33 }
  0x77   : > { %351 = vst [vmem:[%s2442_s26 + $0x188] sm:$0xf] %v350_v34 }
  0x78   : > { %353 = vst [vmem:[%s2442_s26 + $0x18c] sm:$0xf] %v352_v35 }
  0x79   : > { %355 = vst [vmem:[%s2442_s26 + $0x190] sm:$0xf] %v354_v36 }
  0x7a   : > { %357 = vst [vmem:[%s2442_s26 + $0x194] sm:$0xf] %v356_v37 }
  0x7b   : > { %359 = vst [vmem:[%s2442_s26 + $0x198] sm:$0xf] %v358_v38 }
  0x7c   : > { %361 = vst [vmem:[%s2442_s26 + $0x19c] sm:$0xf] %v360_v39 }
  0x7d   : > { %363 = vst [vmem:[%s2442_s26 + $0x1a0] sm:$0xf] %v362_v40 }
  0x7e   : > { %365 = vst [vmem:[%s2442_s26 + $0x1a4] sm:$0xf] %v364_v41 }
  0x7f   : > { %367 = vst [vmem:[%s2442_s26 + $0x1a8] sm:$0xf] %v366_v42 }
  0x80   : > { %369 = vst [vmem:[%s2442_s26 + $0x1ac] sm:$0xf] %v368_v43 }
  0x81   : > { %371 = vst [vmem:[%s2442_s26 + $0x1b0] sm:$0xf] %v370_v44 }
  0x82   : > { %373 = vst [vmem:[%s2442_s26 + $0x1b4] sm:$0xf] %v372_v45 }
  0x83   : > { %375 = vst [vmem:[%s2442_s26 + $0x1b8] sm:$0xf] %v374_v46 }
  0x84   : > { %377 = vst [vmem:[%s2442_s26 + $0x1bc] sm:$0xf] %v376_v47 }
  0x85   : > { %379 = vst [vmem:[%s2442_s26 + $0x1c0] sm:$0xf] %v378_v48 }
  0x86   : > { %381 = vst [vmem:[%s2442_s26 + $0x1c4] sm:$0xf] %v380_v49 }
  0x87   : > { %383 = vst [vmem:[%s2442_s26 + $0x1c8] sm:$0xf] %v382_v50 }
  0x88   : > { %385 = vst [vmem:[%s2442_s26 + $0x1cc] sm:$0xf] %v384_v51 }
  0x89   : > { %387 = vst [vmem:[%s2442_s26 + $0x1d0] sm:$0xf] %v386_v52 }
  0x8a   : > { %389 = vst [vmem:[%s2442_s26 + $0x1d4] sm:$0xf] %v388_v53 }
  0x8b   : > { %391 = vst [vmem:[%s2442_s26 + $0x1d8] sm:$0xf] %v390_v54 }
  0x8c   : > { %393 = vst [vmem:[%s2442_s26 + $0x1dc] sm:$0xf] %v392_v55 }
  0x8d   : > { %395 = vst [vmem:[%s2442_s26 + $0x1e0] sm:$0xf] %v394_v56 }
  0x8e   : > { %397 = vst [vmem:[%s2442_s26 + $0x1e4] sm:$0xf] %v396_v57 }
  0x8f   : > { %399 = vst [vmem:[%s2442_s26 + $0x1e8] sm:$0xf] %v398_v58 }
  0x90   : > { %401 = vst [vmem:[%s2442_s26 + $0x1ec] sm:$0xf] %v400_v59 }
  0x91   : > { %403 = vst [vmem:[%s2442_s26 + $0x1f0] sm:$0xf] %v402_v60 }
  0x92   : > { %405 = vst [vmem:[%s2442_s26 + $0x1f4] sm:$0xf] %v404_v61 }
  0x93   : > { %407 = vst [vmem:[%s2442_s26 + $0x1f8] sm:$0xf] %v406_v62 }
  0x94   : > { %409 = vst [vmem:[%s2442_s26 + $0x1fc] sm:$0xf] %v408_v63 }
  0x95   : > { %411 = vst [vmem:[%s2442_s26 + $0x200] sm:$0xf] %v410_v0 }
  0x96   : > { %413 = vst [vmem:[%s2442_s26 + $0x204] sm:$0xf] %v412_v1 }
  0x97   : > { %415 = vst [vmem:[%s2442_s26 + $0x208] sm:$0xf] %v414_v2 }
  0x98   : > { %417 = vst [vmem:[%s2442_s26 + $0x20c] sm:$0xf] %v416_v3 }
  0x99   : > { %419 = vst [vmem:[%s2442_s26 + $0x210] sm:$0xf] %v418_v4 }
  0x9a   : > { %421 = vst [vmem:[%s2442_s26 + $0x214] sm:$0xf] %v420_v5 }
  0x9b   : > { %423 = vst [vmem:[%s2442_s26 + $0x218] sm:$0xf] %v422_v6 }
  0x9c   : > { %425 = vst [vmem:[%s2442_s26 + $0x21c] sm:$0xf] %v424_v7 }
  0x9d   : > { %427 = vst [vmem:[%s2442_s26 + $0x220] sm:$0xf] %v426_v8 }
  0x9e   : > { %429 = vst [vmem:[%s2442_s26 + $0x224] sm:$0xf] %v428_v9 }
  0x9f   : > { %431 = vst [vmem:[%s2442_s26 + $0x228] sm:$0xf] %v430_v10 }
  0xa0   : > { %433 = vst [vmem:[%s2442_s26 + $0x22c] sm:$0xf] %v432_v11 }
  0xa1   : > { %435 = vst [vmem:[%s2442_s26 + $0x230] sm:$0xf] %v434_v12 }
  0xa2   : > { %437 = vst [vmem:[%s2442_s26 + $0x234] sm:$0xf] %v436_v13 }
  0xa3   : > { %439 = vst [vmem:[%s2442_s26 + $0x238] sm:$0xf] %v438_v14 }
  0xa4   : > { %441 = vst [vmem:[%s2442_s26 + $0x23c] sm:$0xf] %v440_v15 }
  0xa5 PF: > { %p1817_p8 = scmp.ge.s32.totalorder %s2372_s13, 1  ;;  %p752_p9 = scmp.lt.s32.totalorder %s2372_s13, 3 }
  0xa7   : > { %p753_p10 = pnand %p1817_p8, %p752_p9 }
  0xa8   : > { %s759_s27 = sand.u32 (!%p753_p10), 1, %s2356_s9  }
  0xa9   : > { %756 = sbr.rel (%p753_p10) target bundleno = 422 (0x1a6), region = 65 }
  0xaa   : > { %s2293_s28 = smul.u32 (!%p753_p10), 576, %s759_s27 }
  0xac   : > { %s2734_s29 = scalar_lea.vmem (!%p753_p10), [#allocation2], %s2293_s28 }
  0xae   : > { %v2208_v16 = vld [vmem:[%s2734_s29 + $0x38] sm:$0xff]  ;;  %v2207_v20 = vld [vmem:[%s2734_s29 + $0x30] sm:$0xff]  ;;  %v2206_v24 = vld [vmem:[%s2734_s29 + $0x28] sm:$0xff]  ;;  %s2180_s3 = sshll.u32 (%p2424_p6), %s2364_s11, 2 }
  0xaf   : > { %v2216_v17 = vld [vmem:[%s2734_s29 + $0x78] sm:$0xff]  ;;  %1481 = vmatpush.bf16.msra.mxu0 %v2208_v16  ;;  %v2215_v21 = vld [vmem:[%s2734_s29 + $0x70] sm:$0xff]  ;;  %v2214_v25 = vld [vmem:[%s2734_s29 + $0x68] sm:$0xff]  ;;  %s1675_s4 = scalar_lea.vmem (%p2424_p6), %s2941_s2, %s2180_s3 }
  0xb0   : > { %v2224_v18 = vld [vmem:[%s2734_s29 + $0xb8] sm:$0xff]  ;;  %1500 = vmatpush.bf16.msra.mxu1 %v2216_v17  ;;  %v2223_v22 = vld [vmem:[%s2734_s29 + $0xb0] sm:$0xff]  ;;  %v2222_v26 = vld [vmem:[%s2734_s29 + $0xa8] sm:$0xff] }
  0xb1   : > { %v2232_v19 = vld [vmem:[%s2734_s29 + $0xf8] sm:$0xff]  ;;  %1519 = vmatpush.bf16.msra.mxu2 %v2224_v18  ;;  %v2231_v23 = vld [vmem:[%s2734_s29 + $0xf0] sm:$0xff]  ;;  %v2230_v27 = vld [vmem:[%s2734_s29 + $0xe8] sm:$0xff] }
  0xb2   : > { %1538 = vmatpush.bf16.msra.mxu3 %v2232_v19  ;;  %v2205_v28 = vld [vmem:[%s2734_s29 + $0x20] sm:$0xff]  ;;  %v2204_v32 = vld [vmem:[%s2734_s29 + $0x18] sm:$0xff]  ;;  %v2203_v36 = vld [vmem:[%s2734_s29 + $0x10] sm:$0xff] }
  0xb3   : > { %1482 = vmatpush.bf16.msra.mxu0 %v2207_v20  ;;  %v2213_v29 = vld [vmem:[%s2734_s29 + $0x60] sm:$0xff]  ;;  %v2212_v33 = vld [vmem:[%s2734_s29 + $0x58] sm:$0xff]  ;;  %v2211_v37 = vld [vmem:[%s2734_s29 + $0x50] sm:$0xff] }
  0xb4   : > { %1501 = vmatpush.bf16.msra.mxu1 %v2215_v21  ;;  %v2221_v30 = vld [vmem:[%s2734_s29 + $0xa0] sm:$0xff]  ;;  %v2220_v34 = vld [vmem:[%s2734_s29 + $0x98] sm:$0xff]  ;;  %v2219_v38 = vld [vmem:[%s2734_s29 + $0x90] sm:$0xff] }
  0xb5   : > { %1520 = vmatpush.bf16.msra.mxu2 %v2223_v22  ;;  %v2229_v31 = vld [vmem:[%s2734_s29 + $0xe0] sm:$0xff]  ;;  %v2228_v35 = vld [vmem:[%s2734_s29 + $0xd8] sm:$0xff]  ;;  %v2227_v39 = vld [vmem:[%s2734_s29 + $0xd0] sm:$0xff] }
  0xb6   : > { %1539 = vmatpush.bf16.msra.mxu3 %v2231_v23  ;;  %v2202_v40 = vld [vmem:[%s2734_s29 + $0x8] sm:$0xff]  ;;  %v2201_v44 = vld [vmem:[%s2734_s29] sm:$0xff]  ;;  %v1831_v55 = vld [vmem:[%s2939_s0 + $0x2c] sm:$0xf0] }
  0xb7   : > { %1483 = vmatpush.bf16.msra.mxu0 %v2206_v24  ;;  %v2210_v41 = vld [vmem:[%s2734_s29 + $0x48] sm:$0xff]  ;;  %v1821_v45 = vld [vmem:[%s2939_s0] sm:$0xf]  ;;  %v2187_v46 = vld [vmem:[%s2939_s0 + $0x20] sm:$0xf0] }
  0xb8   : > { %1502 = vmatpush.bf16.msra.mxu1 %v2214_v25  ;;  %v2218_v42 = vld [vmem:[%s2734_s29 + $0x88] sm:$0xff]  ;;  %v2209_v47 = vld [vmem:[%s2734_s29 + $0x40] sm:$0xff]  ;;  %v2240_v56 = vld [vmem:[%s2734_s29 + $0x138] sm:$0xff]  ;;  %v1822_v58 = vor.u32 %v2187_v46, %v1821_v45 }
  0xb9   : > { %1521 = vmatpush.bf16.msra.mxu2 %v2222_v26  ;;  %v2226_v43 = vld [vmem:[%s2734_s29 + $0xc8] sm:$0xff]  ;;  %v2217_v48 = vld [vmem:[%s2734_s29 + $0x80] sm:$0xff]  ;;  %v2248_v57 = vld [vmem:[%s2734_s29 + $0x178] sm:$0xff] }
  0xba   : > { %1540 = vmatpush.bf16.msra.mxu3 %v2230_v27  ;;  %v2225_v49 = vld [vmem:[%s2734_s29 + $0xc0] sm:$0xff]  ;;  %v1823_v51 = vld [vmem:[%s2939_s0 + $0x24] sm:$0xf0]  ;;  %v2188_v53 = vld [vmem:[%s2939_s0 + $0x28] sm:$0xf0] }
  0xbb   : > { %1484 = vmatpush.bf16.msra.mxu0 %v2205_v28  ;;  %v2183_v50 = vld [vmem:[%s2939_s0 + $0x4] sm:$0xf]  ;;  %v1829_v52 = vld [vmem:[%s2939_s0 + $0x8] sm:$0xf]  ;;  %v2184_v54 = vld [vmem:[%s2939_s0 + $0xc] sm:$0xf] }
  0xbc   : > { %1503 = vmatpush.bf16.msra.mxu1 %v2213_v29  ;;  %v1826_v59 = vor.u32 %v2183_v50, %v1823_v51  ;;  %v1830_v60 = vor.u32 %v2188_v53, %v1829_v52  ;;  %v1834_v61 = vor.u32 %v2184_v54, %v1831_v55  ;;  %v2256_v62 = vld [vmem:[%s2734_s29 + $0x1b8] sm:$0xff]  ;;  %v2239_v0 = vld [vmem:[%s2734_s29 + $0x130] sm:$0xff]  ;;  %v2238_v4 = vld [vmem:[%s2734_s29 + $0x128] sm:$0xff] }
  0xbd   : > { %1522 = vmatpush.bf16.msra.mxu2 %v2221_v30  ;;  %v2264_v63 = vld [vmem:[%s2734_s29 + $0x1f8] sm:$0xff]  ;;  %v2247_v1 = vld [vmem:[%s2734_s29 + $0x170] sm:$0xff]  ;;  %v2246_v5 = vld [vmem:[%s2734_s29 + $0x168] sm:$0xff] }
  0xbe   : > { %1541 = vmatpush.bf16.msra.mxu3 %v2229_v31  ;;  %v2255_v2 = vld [vmem:[%s2734_s29 + $0x1b0] sm:$0xff]  ;;  %v2254_v6 = vld [vmem:[%s2734_s29 + $0x1a8] sm:$0xff]  ;;  %v2237_v8 = vld [vmem:[%s2734_s29 + $0x120] sm:$0xff] }
  0xbf   : > { %1485 = vmatpush.bf16.msra.mxu0 %v2204_v32  ;;  %v2263_v3 = vld [vmem:[%s2734_s29 + $0x1f0] sm:$0xff]  ;;  %v2262_v7 = vld [vmem:[%s2734_s29 + $0x1e8] sm:$0xff]  ;;  %v2245_v9 = vld [vmem:[%s2734_s29 + $0x160] sm:$0xff] }
  0xc0   : > { %1504 = vmatpush.bf16.msra.mxu1 %v2212_v33  ;;  %v2253_v10 = vld [vmem:[%s2734_s29 + $0x1a0] sm:$0xff]  ;;  %v1857_v12 = vld [vmem:[%s2939_s0 + $0x48] sm:$0xf]  ;;  %v2196_v13 = vld [vmem:[%s2939_s0 + $0x68] sm:$0xf0] }
  0xc1   : > { %1523 = vmatpush.bf16.msra.mxu2 %v2220_v34  ;;  %v2261_v11 = vld [vmem:[%s2734_s29 + $0x1e0] sm:$0xff]  ;;  %v2192_v14 = vld [vmem:[%s2939_s0 + $0x4c] sm:$0xf]  ;;  %v1859_v15 = vld [vmem:[%s2939_s0 + $0x6c] sm:$0xf0]  ;;  %v1858_v22 = vor.u32 %v2196_v13, %v1857_v12 }
  0xc2   : > { %1542 = vmatpush.bf16.msra.mxu3 %v2228_v35  ;;  %v1865_v16 = vld [vmem:[%s2939_s0 + $0x50] sm:$0xf]  ;;  %v2197_v17 = vld [vmem:[%s2939_s0 + $0x70] sm:$0xf0]  ;;  %v1867_v19 = vld [vmem:[%s2939_s0 + $0x74] sm:$0xf0]  ;;  %v1862_v23 = vor.u32 %v2192_v14, %v1859_v15 }
  0xc3   : > { %1486 = vmatpush.bf16.msra.mxu0 %v2203_v36  ;;  %v2193_v18 = vld [vmem:[%s2939_s0 + $0x54] sm:$0xf]  ;;  %v2236_v20 = vld [vmem:[%s2734_s29 + $0x118] sm:$0xff]  ;;  %v1866_v24 = vor.u32 %v2197_v17, %v1865_v16  ;;  %v2234_v32 = vld [vmem:[%s2734_s29 + $0x108] sm:$0xff] }
  0xc4   : > { %1505 = vmatpush.bf16.msra.mxu1 %v2211_v37  ;;  %v2244_v21 = vld [vmem:[%s2734_s29 + $0x158] sm:$0xff]  ;;  %v1870_v25 = vor.u32 %v2193_v18, %v1867_v19  ;;  %v2235_v28 = vld [vmem:[%s2734_s29 + $0x110] sm:$0xff]  ;;  %v2242_v33 = vld [vmem:[%s2734_s29 + $0x148] sm:$0xff] }
  0xc5   : > { %1524 = vmatpush.bf16.msra.mxu2 %v2219_v38  ;;  %v2252_v26 = vld [vmem:[%s2734_s29 + $0x198] sm:$0xff]  ;;  %v2243_v29 = vld [vmem:[%s2734_s29 + $0x150] sm:$0xff]  ;;  %v2250_v34 = vld [vmem:[%s2734_s29 + $0x188] sm:$0xff] }
  0xc6   : > { %1543 = vmatpush.bf16.msra.mxu3 %v2227_v39  ;;  %v2260_v27 = vld [vmem:[%s2734_s29 + $0x1d8] sm:$0xff]  ;;  %v2251_v30 = vld [vmem:[%s2734_s29 + $0x190] sm:$0xff]  ;;  %v2258_v35 = vld [vmem:[%s2734_s29 + $0x1c8] sm:$0xff] }
  0xc7   : > { %1487 = vmatpush.bf16.msra.mxu0 %v2202_v40  ;;  %v2259_v31 = vld [vmem:[%s2734_s29 + $0x1d0] sm:$0xff]  ;;  %v2233_v36 = vld [vmem:[%s2734_s29 + $0x100] sm:$0xff]  ;;  %v1845_v45 = vld [vmem:[%s2939_s0 + $0x18] sm:$0xf] }
  0xc8   : > { %1506 = vmatpush.bf16.msra.mxu1 %v2210_v41  ;;  %v2241_v37 = vld [vmem:[%s2734_s29 + $0x140] sm:$0xff]  ;;  %v1837_v40 = vld [vmem:[%s2939_s0 + $0x10] sm:$0xf]  ;;  %v2189_v41 = vld [vmem:[%s2939_s0 + $0x30] sm:$0xf0] }
  0xc9   : > { %1525 = vmatpush.bf16.msra.mxu2 %v2218_v42  ;;  %v2249_v38 = vld [vmem:[%s2734_s29 + $0x180] sm:$0xff]  ;;  %v2272_v42 = vld [vmem:[%s2734_s29 + $0x238] sm:$0xff]  ;;  %v2271_v53 = vld [vmem:[%s2734_s29 + $0x230] sm:$0xff] }
  0xca   : > { %1544 = vmatpush.bf16.msra.mxu3 %v2226_v43  ;;  %v2257_v39 = vld [vmem:[%s2734_s29 + $0x1c0] sm:$0xff]  ;;  %v2185_v43 = vld [vmem:[%s2939_s0 + $0x14] sm:$0xf]  ;;  %v2190_v46 = vld [vmem:[%s2939_s0 + $0x38] sm:$0xf0] }
  0xcb   : > { %1488 = vmatpush.bf16.msra.mxu0 %v2201_v44  ;;  %v1839_v44 = vld [vmem:[%s2939_s0 + $0x34] sm:$0xf0]  ;;  %v1846_v51 = vor.u32 %v2190_v46, %v1845_v45  ;;  %v2270_v54 = vld [vmem:[%s2734_s29 + $0x228] sm:$0xff]  ;;  %v2269_v55 = vld [vmem:[%s2734_s29 + $0x220] sm:$0xff] }
  0xcc   : > { %1507 = vmatpush.bf16.msra.mxu1 %v2209_v47  ;;  %v2186_v47 = vld [vmem:[%s2939_s0 + $0x1c] sm:$0xf]  ;;  %v1842_v50 = vor.u32 %v2185_v43, %v1839_v44 }
  0xcd   : > { %1526 = vmatpush.bf16.msra.mxu2 %v2217_v48  ;;  %v1847_v48 = vld [vmem:[%s2939_s0 + $0x3c] sm:$0xf0] }
  0xce   : > { %1545 = vmatpush.bf16.msra.mxu3 %v2225_v49  ;;  %1489 = vmatmul.bf16.vlgmr.msra.gmra.mxu0 %v1822_v58  ;;  %v1838_v49 = vor.u32 %v2189_v41, %v1837_v40  ;;  %v1850_v52 = vor.u32 %v2186_v47, %v1847_v48  ;;  %v2194_v58 = vld [vmem:[%s2939_s0 + $0x5c] sm:$0xf] }
  0xcf   : > { %1557 = vmatpush.bf16.msrb.mxu0 %v2240_v56  ;;  %1508 = vmatmul.bf16.vlgmr.msra.gmra.mxu1 %v1826_v59  ;;  %v1873_v56 = vld [vmem:[%s2939_s0 + $0x58] sm:$0xf]  ;;  %v1875_v59 = vld [vmem:[%s2939_s0 + $0x7c] sm:$0xf0] }
  0xd0   : > { %1576 = vmatpush.bf16.msrb.mxu1 %v2248_v57  ;;  %1527 = vmatmul.bf16.vlgmr.msra.gmra.mxu2 %v1830_v60  ;;  %v2198_v57 = vld [vmem:[%s2939_s0 + $0x78] sm:$0xf0]  ;;  %v1881_v60 = vld [vmem:[%s2939_s0 + $0x60] sm:$0xf] }
  0xd1   : > { %1546 = vmatmul.bf16.vlgmr.msra.gmra.mxu3 %v1834_v61  ;;  %1595 = vmatpush.bf16.msrb.mxu2 %v2256_v62  ;;  %v2199_v61 = vld [vmem:[%s2939_s0 + $0x80] sm:$0xf0] }
  0xd2   : > { %1614 = vmatpush.bf16.msrb.mxu3 %v2264_v63  ;;  %v2195_v62 = vld [vmem:[%s2939_s0 + $0x64] sm:$0xf]  ;;  %v1883_v63 = vld [vmem:[%s2939_s0 + $0x84] sm:$0xf0] }
  0xd3   : > { %1558 = vmatpush.bf16.msrb.mxu0 %v2239_v0  ;;  %v2268_v0 = vld [vmem:[%s2734_s29 + $0x218] sm:$0xff] }
  0xd4   : > { %1577 = vmatpush.bf16.msrb.mxu1 %v2247_v1  ;;  %v1874_v1 = vor.u32 %v2198_v57, %v1873_v56 }
  0xd5   : > { %1596 = vmatpush.bf16.msrb.mxu2 %v2255_v2  ;;  %v1878_v2 = vor.u32 %v2194_v58, %v1875_v59 }
  0xd6   : > { %1615 = vmatpush.bf16.msrb.mxu3 %v2263_v3  ;;  %v1882_v3 = vor.u32 %v2199_v61, %v1881_v60 }
  0xd7   : > { %1559 = vmatpush.bf16.msrb.mxu0 %v2238_v4  ;;  %v1886_v4 = vor.u32 %v2195_v62, %v1883_v63 }
  0xd8   : > { %1578 = vmatpush.bf16.msrb.mxu1 %v2246_v5  ;;  %v2267_v5 = vld [vmem:[%s2734_s29 + $0x210] sm:$0xff] }
  0xd9   : > { %1597 = vmatpush.bf16.msrb.mxu2 %v2254_v6  ;;  %v2266_v6 = vld [vmem:[%s2734_s29 + $0x208] sm:$0xff] }
  0xda   : > { %1616 = vmatpush.bf16.msrb.mxu3 %v2262_v7  ;;  %v2265_v7 = vld [vmem:[%s2734_s29 + $0x200] sm:$0xff]  ;;  %s1818_s29 = sshll.u32 %s759_s27, 4 }
  0xdb   : > { %1560 = vmatpush.bf16.msrb.mxu0 %v2237_v8  ;;  %v1853_v8 = vld [vmem:[%s2939_s0 + $0x20] sm:$0xf]  ;;  %s784_s30 = scalar_lea.vmem [#allocation3], %s1818_s29 }
  0xdc   : > { %1579 = vmatpush.bf16.msrb.mxu1 %v2245_v9  ;;  %v2191_v9 = vld [vmem:[%s2939_s0 + $0x40] sm:$0xf0] }
  0xdd   : > { %1598 = vmatpush.bf16.msrb.mxu2 %v2253_v10  ;;  %v1889_v10 = vld [vmem:[%s2939_s0 + $0x68] sm:$0xf]  ;;  %v1854_v12 = vor.u32 %v2191_v9, %v1853_v8 }
  0xde   : > { %1617 = vmatpush.bf16.msrb.mxu3 %v2261_v11  ;;  %1494 = vmatmul.bf16.gmra.mxu0 %v1858_v22  ;;  %v2200_v11 = vld [vmem:[%s2939_s0 + $0x88] sm:$0xf0] }
  0xdf   : > { %1561 = vmatpush.bf16.msrb.mxu0 %v2236_v20  ;;  %1513 = vmatmul.bf16.gmra.mxu1 %v1862_v23  ;;  %v1890_v13 = vor.u32 %v2200_v11, %v1889_v10 }
  0xe0   : > { %1580 = vmatpush.bf16.msrb.mxu1 %v2244_v21  ;;  %1532 = vmatmul.bf16.gmra.mxu2 %v1866_v24 }
  0xe1   : > { %1551 = vmatmul.bf16.gmra.mxu3 %v1870_v25  ;;  %1599 = vmatpush.bf16.msrb.mxu2 %v2252_v26 }
  0xe2   : > { %1618 = vmatpush.bf16.msrb.mxu3 %v2260_v27 }
  0xe3   : > { %1562 = vmatpush.bf16.msrb.mxu0 %v2235_v28 }
  0xe4   : > { %1581 = vmatpush.bf16.msrb.mxu1 %v2243_v29 }
  0xe5   : > { %1600 = vmatpush.bf16.msrb.mxu2 %v2251_v30 }
  0xe6   : > { %1619 = vmatpush.bf16.msrb.mxu3 %v2259_v31 }
  0xe7   : > { %1563 = vmatpush.bf16.msrb.mxu0 %v2234_v32 }
  0xe8   : > { %1582 = vmatpush.bf16.msrb.mxu1 %v2242_v33 }
  0xe9   : > { %1601 = vmatpush.bf16.msrb.mxu2 %v2250_v34 }
  0xea   : > { %1620 = vmatpush.bf16.msrb.mxu3 %v2258_v35 }
  0xeb   : > { %1564 = vmatpush.bf16.msrb.mxu0 %v2233_v36 }
  0xec   : > { %1583 = vmatpush.bf16.msrb.mxu1 %v2241_v37 }
  0xed   : > { %1602 = vmatpush.bf16.msrb.mxu2 %v2249_v38 }
  0xee   : > { %1621 = vmatpush.bf16.msrb.mxu3 %v2257_v39  ;;  %1565 = vmatmul.bf16.vlgmr.msrb.gmra.mxu0 %v1838_v49 }
  0xef   : > { %1633 = vmatpush.bf16.msra.mxu0 %v2272_v42  ;;  %1584 = vmatmul.bf16.vlgmr.msrb.gmra.mxu1 %v1842_v50 }
  0xf0   : > { %2284 = vmatpush.bf16.msra.mxu1 %v2272_v42  ;;  %1603 = vmatmul.bf16.vlgmr.msrb.gmra.mxu2 %v1846_v51 }
  0xf1   : > { %1622 = vmatmul.bf16.vlgmr.msrb.gmra.mxu3 %v1850_v52 }
  0xf3   : > { %1634 = vmatpush.bf16.msra.mxu0 %v2271_v53 }
  0xf4   : > { %2285 = vmatpush.bf16.msra.mxu1 %v2271_v53 }
  0xf7   : > { %1635 = vmatpush.bf16.msra.mxu0 %v2270_v54 }
  0xf8   : > { %2286 = vmatpush.bf16.msra.mxu1 %v2270_v54 }
  0xfb   : > { %1636 = vmatpush.bf16.msra.mxu0 %v2269_v55 }
  0xfc   : > { %2287 = vmatpush.bf16.msra.mxu1 %v2269_v55 }
  0xfe   : > { %1570 = vmatmul.bf16.gmra.mxu0 %v1874_v1 }
  0xff   : > { %1637 = vmatpush.bf16.msra.mxu0 %v2268_v0  ;;  %1589 = vmatmul.bf16.gmra.mxu1 %v1878_v2 }
 0x100   : > { %2288 = vmatpush.bf16.msra.mxu1 %v2268_v0  ;;  %1608 = vmatmul.bf16.gmra.mxu2 %v1882_v3 }
 0x101   : > { %1627 = vmatmul.bf16.gmra.mxu3 %v1886_v4 }
 0x103   : > { %1638 = vmatpush.bf16.msra.mxu0 %v2267_v5 }
 0x104   : > { %2289 = vmatpush.bf16.msra.mxu1 %v2267_v5 }
 0x107   : > { %1639 = vmatpush.bf16.msra.mxu0 %v2266_v6 }
 0x108   : > { %2290 = vmatpush.bf16.msra.mxu1 %v2266_v6 }
 0x10b   : > { %1640 = vmatpush.bf16.msra.mxu0 %v2265_v7 }
 0x10c   : > { %2291 = vmatpush.bf16.msra.mxu1 %v2265_v7 }
 0x10e   : > { %1641 = vmatmul.bf16.vlgmr.msra.gmra.mxu0 %v1854_v12 }
 0x10f   : > { %1646 = vmatmul.bf16.vlgmr.msra.gmra.mxu1 %v1890_v13 }
 0x14b   : > { %v1490_v14 = vpop.f32.mrf.mxu0 }
 0x14c   : > { %v1509_v15 = vpop.f32.mrf.mxu1 }
 0x14d   : > { %v1510_v40 = vadd.f32 %v1509_v15, %v1490_v14 }
 0x153   : > { %v1528_v16 = vpop.f32.mrf.mxu2  ;;  %v1492_v18 = vpop.f32.mrf.mxu0 }
 0x154   : > { %v1547_v17 = vpop.f32.mrf.mxu3  ;;  %v1511_v19 = vpop.f32.mrf.mxu1  ;;  %v1529_v42 = vadd.f32 %v1528_v16, %v1510_v40 }
 0x155   : > { %v1512_v43 = vadd.f32 %v1511_v19, %v1492_v18 }
 0x156   : > { %v1548_v51 = vadd.f32 %v1547_v17, %v1529_v42 }
 0x15b   : > { %v1530_v20 = vpop.f32.mrf.mxu2  ;;  %v1495_v22 = vpop.f32.mrf.mxu0 }
 0x15c   : > { %v1549_v21 = vpop.f32.mrf.mxu3  ;;  %v1514_v23 = vpop.f32.mrf.mxu1  ;;  %v1531_v46 = vadd.f32 %v1530_v20, %v1512_v43 }
 0x15d   : > { %v1515_v41 = vadd.f32 %v1514_v23, %v1495_v22 }
 0x15e   : > { %v1550_v53 = vadd.f32 %v1549_v21, %v1531_v46 }
 0x163   : > { %v1533_v24 = vpop.f32.mrf.mxu2  ;;  %v1497_v26 = vpop.f32.mrf.mxu0 }
 0x164   : > { %v1552_v25 = vpop.f32.mrf.mxu3  ;;  %v1516_v27 = vpop.f32.mrf.mxu1  ;;  %v1534_v44 = vadd.f32 %v1533_v24, %v1515_v41 }
 0x165   : > { %v1517_v45 = vadd.f32 %v1516_v27, %v1497_v26 }
 0x166   : > { %v1553_v52 = vadd.f32 %v1552_v25, %v1534_v44 }
 0x16b   : > { %v1535_v28 = vpop.f32.mrf.mxu2  ;;  %v1566_v30 = vpop.f32.mrf.mxu0 }
 0x16c   : > { %v1554_v29 = vpop.f32.mrf.mxu3  ;;  %v1585_v31 = vpop.f32.mrf.mxu1  ;;  %v1536_v47 = vadd.f32 %v1535_v28, %v1517_v45  ;;  %v1567_v55 = vadd.f32 %v1566_v30, %v1548_v51 }
 0x16e   : > { %v1555_v54 = vadd.f32 %v1554_v29, %v1536_v47  ;;  %v1586_v60 = vadd.f32 %v1585_v31, %v1567_v55 }
 0x173   : > { %v1604_v32 = vpop.f32.mrf.mxu2  ;;  %v1568_v34 = vpop.f32.mrf.mxu0 }
 0x174   : > { %v1623_v33 = vpop.f32.mrf.mxu3  ;;  %v1587_v35 = vpop.f32.mrf.mxu1  ;;  %v1569_v58 = vadd.f32 %v1568_v34, %v1550_v53  ;;  %v1605_v1 = vadd.f32 %v1604_v32, %v1586_v60 }
 0x176   : > { %v1588_v2 = vadd.f32 %v1587_v35, %v1569_v58  ;;  %v1624_v7 = vadd.f32 %v1623_v33, %v1605_v1 }
 0x17b   : > { %v1606_v36 = vpop.f32.mrf.mxu2  ;;  %v1571_v37 = vpop.f32.mrf.mxu0 }
 0x17c   : > { %v1590_v38 = vpop.f32.mrf.mxu1  ;;  %v1625_v39 = vpop.f32.mrf.mxu3  ;;  %v1572_v56 = vadd.f32 %v1571_v37, %v1553_v52  ;;  %v1607_v5 = vadd.f32 %v1606_v36, %v1588_v2 }
 0x17e   : > { %v1591_v61 = vadd.f32 %v1590_v38, %v1572_v56  ;;  %v1626_v10 = vadd.f32 %v1625_v39, %v1607_v5 }
 0x183   : > { %v1609_v48 = vpop.f32.mrf.mxu2  ;;  %v1573_v49 = vpop.f32.mrf.mxu0 }
 0x184   : > { %v1592_v50 = vpop.f32.mrf.mxu1  ;;  %v1628_v57 = vpop.f32.mrf.mxu3  ;;  %v1574_v59 = vadd.f32 %v1573_v49, %v1555_v54  ;;  %v1610_v3 = vadd.f32 %v1609_v48, %v1591_v61 }
 0x186   : > { %v1593_v4 = vadd.f32 %v1592_v50, %v1574_v59  ;;  %v1629_v8 = vadd.f32 %v1628_v57, %v1610_v3 }
 0x18b   : > { %v1611_v62 = vpop.f32.mrf.mxu2  ;;  %v1642_v63 = vpop.f32.mrf.mxu0 }
 0x18c   : > { %v1647_v0 = vpop.f32.mrf.mxu1  ;;  %v1612_v6 = vadd.f32 %v1611_v62, %v1593_v4  ;;  %v1630_v9 = vpop.f32.mrf.mxu3  ;;  %v1643_v12 = vadd.f32 %v1642_v63, %v1624_v7 }
 0x18d   : > { %v1648_v13 = vadd.f32 %v1647_v0, %v1629_v8 }
 0x18e   : > { %v1631_v11 = vadd.f32 %v1630_v9, %v1612_v6  ;;  %v1652_v18 = vmax.f32 %v1643_v12, 0.0 }
 0x18f   : > { %v1654_v19 = vmax.f32 %v1648_v13, 0.0 }
 0x193   : > { %v1644_v14 = vpop.f32.mrf.mxu0 }
 0x194   : > { %v1649_v15 = vpop.f32.mrf.mxu1  ;;  %v1645_v16 = vadd.f32 %v1644_v14, %v1626_v10 }
 0x195   : > { %v1650_v17 = vadd.f32 %v1649_v15, %v1631_v11 }
 0x196   : > { %v1653_v20 = vmax.f32 %v1645_v16, 0.0 }
 0x197   : > { %v1655_v21 = vmax.f32 %v1650_v17, 0.0  ;;  %1670 = sbr.rel (!%p2424_p6) target bundleno = 422 (0x1a6), region = 73 }
 0x198   : > { %v2276_v22 = vpack.c.bf16 %v1653_v20, %v1652_v18 }
 0x199   : > { %v2281_v23 = vpack.c.bf16 %v1655_v21, %v1654_v19 }
 0x19a   : > { %2277 = vst [vmem:[%s784_s30] sm:$0xff] %v2276_v22  }
 0x19b   : > { %2283 = vst [vmem:[%s784_s30 + $0x8] sm:$0xff] %v2281_v23  }
 0x1a1   : > { %v1692_v24 = vld [vmem:[%s784_s30] sm:$0xf]  ;;  %v1694_v25 = vld [vmem:[%s784_s30 + $0x4] sm:$0xf] }
 0x1a2   : > { %v1696_v26 = vld [vmem:[%s784_s30 + $0x8] sm:$0xf]  ;;  %1693 = vst [vmem:[%s1675_s4] sm:$0xf] %v1692_v24  ;;  %v1698_v27 = vld [vmem:[%s784_s30 + $0xc] sm:$0xf] }
 0x1a3   : > { %1695 = vst [vmem:[%s1675_s4 + $0x8] sm:$0xf] %v1694_v25 }
 0x1a4   : > { %1697 = vst [vmem:[%s1675_s4 + $0x10] sm:$0xf] %v1696_v26 }
 0x1a5   : > { %1699 = vst [vmem:[%s1675_s4 + $0x18] sm:$0xf] %v1698_v27 }
 0x1a6 PF: > { %s12_s13 = sadd.s32 1, %s2372_s13   ;;  %s2943_s9 = smov %s2360_s10 }
 0x1a7   : > { %p9_p11 = scmp.ge.s32.totalorder %s12_s13, 4   ;;  %s2944_s10 = smov %s2429_s19 }
 0x1a8   : > { %s2945_s11 = smov %s2368_s12  ;;  %s2946_s12 = smov %s2948_s14 }
 0x1a9   :  { %11 = sbr.rel (!%p9_p11) target bundleno = 3 (0x3), region = 148 }

// kernel: base_cnn_forward.9
= control target key start
LH: loop header
LB: loop body
LE: loop exit
PB: predicated region body
PF: predicated region fallthrough
CT: control target
= control target key end

     0   :  { %s3090_s1 = inlined_call_operand.vmem [shape: bf16[1152,128], index: 1, kind: input, shape index: {}]   ;;  %s3091_s0 = inlined_call_operand.vmem [shape: bf16[128,1152], index: 0, kind: input, shape index: {}]   ;;  %s3092_s2 = inlined_call_operand.vmem [shape: bf16[128,128], index: 2, kind: output, shape index: {}]  }
   0x1   :  { %v2183_v0 = vld [vmem:[%s3090_s1 + $0x38] sm:$0xff]  ;;  %v2182_v1 = vld [vmem:[%s3090_s1 + $0x30] sm:$0xff]  ;;  %v2181_v2 = vld [vmem:[%s3090_s1 + $0x28] sm:$0xff] }
   0x2   :  { %2295 = vmatpush.bf16.msra.mxu1 %v2183_v0  ;;  %2296 = vmatpush.bf16.msra.mxu2 %v2183_v0  ;;  %v2180_v3 = vld [vmem:[%s3090_s1 + $0x20] sm:$0xff]  ;;  %v2179_v4 = vld [vmem:[%s3090_s1 + $0x18] sm:$0xff]  ;;  %v2178_v5 = vld [vmem:[%s3090_s1 + $0x10] sm:$0xff] }
   0x3   :  { %2297 = vmatpush.bf16.msra.mxu3 %v2183_v0  ;;  %1035 = vmatpush.bf16.msra.mxu0 %v2183_v0  ;;  %v2177_v6 = vld [vmem:[%s3090_s1 + $0x8] sm:$0xff]  ;;  %v2176_v7 = vld [vmem:[%s3090_s1] sm:$0xff]  ;;  %v1602_v8 = vld [vmem:[%s3091_s0 + $0x90] sm:$0xf] }
   0x4   :  { %v2126_v9 = vld [vmem:[%s3091_s0 + $0xb0] sm:$0xf0]  ;;  %v1674_v10 = vld [vmem:[%s3091_s0 + $0x120] sm:$0xf]  ;;  %v2144_v11 = vld [vmem:[%s3091_s0 + $0x140] sm:$0xf0] }
   0x5   :  { %v1746_v12 = vld [vmem:[%s3091_s0 + $0x1b0] sm:$0xf]  ;;  %v2162_v13 = vld [vmem:[%s3091_s0 + $0x1d0] sm:$0xf0]  ;;  %v1530_v14 = vld [vmem:[%s3091_s0] sm:$0xf]  ;;  %v1603_v18 = vor.u32 %v2126_v9, %v1602_v8  ;;  %v1675_v19 = vor.u32 %v2144_v11, %v1674_v10 }
   0x6   :  { %2298 = vmatpush.bf16.msra.mxu1 %v2182_v1  ;;  %2299 = vmatpush.bf16.msra.mxu2 %v2182_v1  ;;  %v2108_v15 = vld [vmem:[%s3091_s0 + $0x20] sm:$0xf0]  ;;  %v2199_v16 = vld [vmem:[%s3090_s1 + $0xb8] sm:$0xff]  ;;  %v1747_v20 = vor.u32 %v2162_v13, %v1746_v12  ;;  %v2198_v24 = vld [vmem:[%s3090_s1 + $0xb0] sm:$0xff] }
   0x7   :  { %2300 = vmatpush.bf16.msra.mxu3 %v2182_v1  ;;  %1036 = vmatpush.bf16.msra.mxu0 %v2182_v1  ;;  %v2191_v17 = vld [vmem:[%s3090_s1 + $0x78] sm:$0xff]  ;;  %v1531_v21 = vor.u32 %v2108_v15, %v1530_v14  ;;  %v2190_v25 = vld [vmem:[%s3090_s1 + $0x70] sm:$0xff]  ;;  %v2197_v28 = vld [vmem:[%s3090_s1 + $0xa8] sm:$0xff] }
   0x8   :  { %v2207_v22 = vld [vmem:[%s3090_s1 + $0xf8] sm:$0xff]  ;;  %v2206_v26 = vld [vmem:[%s3090_s1 + $0xf0] sm:$0xff]  ;;  %v2189_v29 = vld [vmem:[%s3090_s1 + $0x68] sm:$0xff] }
   0x9   :  { %v2215_v23 = vld [vmem:[%s3090_s1 + $0x138] sm:$0xff]  ;;  %v2214_v27 = vld [vmem:[%s3090_s1 + $0x130] sm:$0xff]  ;;  %v2205_v30 = vld [vmem:[%s3090_s1 + $0xe8] sm:$0xff] }
   0xa   :  { %2301 = vmatpush.bf16.msra.mxu1 %v2181_v2  ;;  %2302 = vmatpush.bf16.msra.mxu2 %v2181_v2  ;;  %v2213_v31 = vld [vmem:[%s3090_s1 + $0x128] sm:$0xff]  ;;  %v2196_v32 = vld [vmem:[%s3090_s1 + $0xa0] sm:$0xff]  ;;  %v1638_v36 = vld [vmem:[%s3091_s0 + $0xd8] sm:$0xf] }
   0xb   :  { %2303 = vmatpush.bf16.msra.mxu3 %v2181_v2  ;;  %1037 = vmatpush.bf16.msra.mxu0 %v2181_v2  ;;  %v2188_v33 = vld [vmem:[%s3090_s1 + $0x60] sm:$0xff]  ;;  %v2135_v37 = vld [vmem:[%s3091_s0 + $0xf8] sm:$0xf0]  ;;  %v1710_v38 = vld [vmem:[%s3091_s0 + $0x168] sm:$0xf] }
   0xc   :  { %v2204_v34 = vld [vmem:[%s3090_s1 + $0xe0] sm:$0xff]  ;;  %v2153_v39 = vld [vmem:[%s3091_s0 + $0x188] sm:$0xf0]  ;;  %v1782_v40 = vld [vmem:[%s3091_s0 + $0x1f8] sm:$0xf]  ;;  %v1639_v46 = vor.u32 %v2135_v37, %v1638_v36 }
   0xd   :  { %v2212_v35 = vld [vmem:[%s3090_s1 + $0x120] sm:$0xff]  ;;  %v2171_v41 = vld [vmem:[%s3091_s0 + $0x218] sm:$0xf0]  ;;  %v1566_v42 = vld [vmem:[%s3091_s0 + $0x48] sm:$0xf]  ;;  %v1711_v47 = vor.u32 %v2153_v39, %v1710_v38 }
   0xe   :  { %2304 = vmatpush.bf16.msra.mxu1 %v2180_v3  ;;  %2305 = vmatpush.bf16.msra.mxu2 %v2180_v3  ;;  %v2117_v43 = vld [vmem:[%s3091_s0 + $0x68] sm:$0xf0]  ;;  %v2195_v44 = vld [vmem:[%s3090_s1 + $0x98] sm:$0xff]  ;;  %v1783_v48 = vor.u32 %v2171_v41, %v1782_v40  ;;  %v2194_v52 = vld [vmem:[%s3090_s1 + $0x90] sm:$0xff] }
   0xf   :  { %2306 = vmatpush.bf16.msra.mxu3 %v2180_v3  ;;  %1038 = vmatpush.bf16.msra.mxu0 %v2180_v3  ;;  %v2187_v45 = vld [vmem:[%s3090_s1 + $0x58] sm:$0xff]  ;;  %v1567_v49 = vor.u32 %v2117_v43, %v1566_v42  ;;  %v2186_v53 = vld [vmem:[%s3090_s1 + $0x50] sm:$0xff]  ;;  %v2193_v56 = vld [vmem:[%s3090_s1 + $0x88] sm:$0xff] }
  0x10   :  { %v2203_v50 = vld [vmem:[%s3090_s1 + $0xd8] sm:$0xff]  ;;  %v2202_v54 = vld [vmem:[%s3090_s1 + $0xd0] sm:$0xff]  ;;  %v2185_v57 = vld [vmem:[%s3090_s1 + $0x48] sm:$0xff] }
  0x11   :  { %v2211_v51 = vld [vmem:[%s3090_s1 + $0x118] sm:$0xff]  ;;  %v2210_v55 = vld [vmem:[%s3090_s1 + $0x110] sm:$0xff]  ;;  %v2201_v58 = vld [vmem:[%s3090_s1 + $0xc8] sm:$0xff] }
  0x12   :  { %2307 = vmatpush.bf16.msra.mxu1 %v2179_v4  ;;  %2308 = vmatpush.bf16.msra.mxu2 %v2179_v4  ;;  %v2209_v59 = vld [vmem:[%s3090_s1 + $0x108] sm:$0xff]  ;;  %v2192_v60 = vld [vmem:[%s3090_s1 + $0x80] sm:$0xff]  ;;  %v2231_v2 = vld [vmem:[%s3090_s1 + $0x1b8] sm:$0xff] }
  0x13   :  { %2309 = vmatpush.bf16.msra.mxu3 %v2179_v4  ;;  %1039 = vmatpush.bf16.msra.mxu0 %v2179_v4  ;;  %v2184_v61 = vld [vmem:[%s3090_s1 + $0x40] sm:$0xff]  ;;  %v1532_v1 = vld [vmem:[%s3091_s0 + $0x24] sm:$0xf0]  ;;  %v2223_v3 = vld [vmem:[%s3090_s1 + $0x178] sm:$0xff] }
  0x14   :  { %v2104_v62 = vld [vmem:[%s3091_s0 + $0x4] sm:$0xf]  ;;  %v1538_v4 = vld [vmem:[%s3091_s0 + $0x8] sm:$0xf]  ;;  %v1546_v8 = vld [vmem:[%s3091_s0 + $0x10] sm:$0xf] }
  0x15   :  { %v2200_v63 = vld [vmem:[%s3090_s1 + $0xc0] sm:$0xff]  ;;  %v2110_v9 = vld [vmem:[%s3091_s0 + $0x30] sm:$0xf0]  ;;  %v2239_v10 = vld [vmem:[%s3090_s1 + $0x1f8] sm:$0xff]  ;;  %v1535_v12 = vor.u32 %v2104_v62, %v1532_v1 }
  0x16   :  { %2310 = vmatpush.bf16.msra.mxu1 %v2178_v5  ;;  %2311 = vmatpush.bf16.msra.mxu2 %v2178_v5  ;;  %v2208_v0 = vld [vmem:[%s3090_s1 + $0x100] sm:$0xff]  ;;  %v2247_v11 = vld [vmem:[%s3090_s1 + $0x238] sm:$0xff]  ;;  %v1547_v15 = vor.u32 %v2110_v9, %v1546_v8  ;;  %v2122_v40 = vld [vmem:[%s3091_s0 + $0x94] sm:$0xf] }
  0x17   :  { %2312 = vmatpush.bf16.msra.mxu3 %v2178_v5  ;;  %1040 = vmatpush.bf16.msra.mxu0 %v2178_v5  ;;  %v2109_v5 = vld [vmem:[%s3091_s0 + $0x28] sm:$0xf0]  ;;  %v2228_v36 = vld [vmem:[%s3090_s1 + $0x1a0] sm:$0xff]  ;;  %v1604_v41 = vld [vmem:[%s3091_s0 + $0xb4] sm:$0xf0] }
  0x18   :  { %v1539_v13 = vor.u32 %v2109_v5, %v1538_v4  ;;  %v2236_v37 = vld [vmem:[%s3090_s1 + $0x1e0] sm:$0xff]  ;;  %v1610_v42 = vld [vmem:[%s3091_s0 + $0x98] sm:$0xf]  ;;  %v2127_v43 = vld [vmem:[%s3091_s0 + $0xb8] sm:$0xf0] }
  0x19   :  { %v2220_v38 = vld [vmem:[%s3090_s1 + $0x160] sm:$0xff]  ;;  %v1654_v62 = vld [vmem:[%s3091_s0 + $0xe8] sm:$0xf]  ;;  %v2226_v4 = vld [vmem:[%s3090_s1 + $0x190] sm:$0xff] }
  0x1a   :  { %2313 = vmatpush.bf16.msra.mxu1 %v2177_v6  ;;  %2314 = vmatpush.bf16.msra.mxu2 %v2177_v6  ;;  %v2244_v39 = vld [vmem:[%s3090_s1 + $0x220] sm:$0xff]  ;;  %v2234_v5 = vld [vmem:[%s3090_s1 + $0x1d0] sm:$0xff]  ;;  %v1676_v9 = vld [vmem:[%s3091_s0 + $0x144] sm:$0xf0] }
  0x1b   :  { %2315 = vmatpush.bf16.msra.mxu3 %v2177_v6  ;;  %1041 = vmatpush.bf16.msra.mxu0 %v2177_v6  ;;  %v2105_v6 = vld [vmem:[%s3091_s0 + $0xc] sm:$0xf]  ;;  %v2140_v8 = vld [vmem:[%s3091_s0 + $0x124] sm:$0xf] }
  0x1e   :  { %2316 = vmatpush.bf16.msra.mxu1 %v2176_v7  ;;  %2317 = vmatpush.bf16.msra.mxu2 %v2176_v7 }
  0x1f   :  { %2318 = vmatpush.bf16.msra.mxu3 %v2176_v7  ;;  %1042 = vmatpush.bf16.msra.mxu0 %v2176_v7  ;;  %v1540_v7 = vld [vmem:[%s3091_s0 + $0x2c] sm:$0xf0] }
  0x20   :  { %v1543_v14 = vor.u32 %v2105_v6, %v1540_v7  ;;  %v2218_v6 = vld [vmem:[%s3090_s1 + $0x150] sm:$0xff] }
  0x21   :  { %1053 = vmatmul.bf16.vlgmr.msra.gmra.mxu1 %v1603_v18  ;;  %1063 = vmatmul.bf16.vlgmr.msra.gmra.mxu2 %v1675_v19  ;;  %v2238_v18 = vld [vmem:[%s3090_s1 + $0x1f0] sm:$0xff] }
  0x22   :  { %1133 = vmatpush.bf16.msrb.mxu2 %v2199_v16  ;;  %1084 = vmatpush.bf16.msrb.mxu1 %v2191_v17  ;;  %v2230_v16 = vld [vmem:[%s3090_s1 + $0x1b0] sm:$0xff] }
  0x23   :  { %1073 = vmatmul.bf16.vlgmr.msra.gmra.mxu3 %v1747_v20  ;;  %1043 = vmatmul.bf16.vlgmr.msra.gmra.mxu0 %v1531_v21  ;;  %v2222_v17 = vld [vmem:[%s3090_s1 + $0x170] sm:$0xff]  ;;  %v2229_v20 = vld [vmem:[%s3090_s1 + $0x1a8] sm:$0xff] }
  0x24   :  { %1182 = vmatpush.bf16.msrb.mxu3 %v2207_v22  ;;  %1231 = vmatpush.bf16.msrb.mxu0 %v2215_v23  ;;  %v2246_v19 = vld [vmem:[%s3090_s1 + $0x230] sm:$0xff]  ;;  %v2221_v21 = vld [vmem:[%s3090_s1 + $0x168] sm:$0xff] }
  0x25   :  { %v2237_v22 = vld [vmem:[%s3090_s1 + $0x1e8] sm:$0xff]  ;;  %v2242_v7 = vld [vmem:[%s3090_s1 + $0x210] sm:$0xff] }
  0x26   :  { %1134 = vmatpush.bf16.msrb.mxu2 %v2198_v24  ;;  %1085 = vmatpush.bf16.msrb.mxu1 %v2190_v25  ;;  %v2245_v23 = vld [vmem:[%s3090_s1 + $0x228] sm:$0xff]  ;;  %v1568_v25 = vld [vmem:[%s3091_s0 + $0x6c] sm:$0xf0] }
  0x27   :  { %v2113_v24 = vld [vmem:[%s3091_s0 + $0x4c] sm:$0xf] }
  0x28   :  { %1183 = vmatpush.bf16.msrb.mxu3 %v2206_v26  ;;  %1232 = vmatpush.bf16.msrb.mxu0 %v2214_v27  ;;  %v1574_v26 = vld [vmem:[%s3091_s0 + $0x50] sm:$0xf]  ;;  %v2118_v27 = vld [vmem:[%s3091_s0 + $0x70] sm:$0xf0] }
  0x2a   :  { %1135 = vmatpush.bf16.msrb.mxu2 %v2197_v28  ;;  %1086 = vmatpush.bf16.msrb.mxu1 %v2189_v29  ;;  %v2114_v28 = vld [vmem:[%s3091_s0 + $0x54] sm:$0xf]  ;;  %v1576_v29 = vld [vmem:[%s3091_s0 + $0x74] sm:$0xf0] }
  0x2c   :  { %1184 = vmatpush.bf16.msrb.mxu3 %v2205_v30  ;;  %1233 = vmatpush.bf16.msrb.mxu0 %v2213_v31  ;;  %v1582_v30 = vld [vmem:[%s3091_s0 + $0x58] sm:$0xf]  ;;  %v2119_v31 = vld [vmem:[%s3091_s0 + $0x78] sm:$0xf0] }
  0x2e   :  { %1136 = vmatpush.bf16.msrb.mxu2 %v2196_v32  ;;  %1087 = vmatpush.bf16.msrb.mxu1 %v2188_v33  ;;  %v1571_v32 = vor.u32 %v2113_v24, %v1568_v25  ;;  %v1575_v33 = vor.u32 %v2118_v27, %v1574_v26  ;;  %v2149_v24 = vld [vmem:[%s3091_s0 + $0x16c] sm:$0xf]  ;;  %v1712_v25 = vld [vmem:[%s3091_s0 + $0x18c] sm:$0xf0]  ;;  %v2154_v27 = vld [vmem:[%s3091_s0 + $0x190] sm:$0xf0] }
  0x2f   :  { %v1718_v26 = vld [vmem:[%s3091_s0 + $0x170] sm:$0xf] }
  0x30   :  { %1185 = vmatpush.bf16.msrb.mxu3 %v2204_v34  ;;  %1234 = vmatpush.bf16.msrb.mxu0 %v2212_v35  ;;  %v1579_v34 = vor.u32 %v2114_v28, %v1576_v29  ;;  %v1583_v35 = vor.u32 %v2119_v31, %v1582_v30  ;;  %v2150_v28 = vld [vmem:[%s3091_s0 + $0x174] sm:$0xf]  ;;  %v1720_v29 = vld [vmem:[%s3091_s0 + $0x194] sm:$0xf0]  ;;  %v2155_v31 = vld [vmem:[%s3091_s0 + $0x198] sm:$0xf0] }
  0x31   :  { %1058 = vmatmul.bf16.gmra.mxu1 %v1639_v46  ;;  %1068 = vmatmul.bf16.gmra.mxu2 %v1711_v47  ;;  %v1618_v46 = vld [vmem:[%s3091_s0 + $0xa0] sm:$0xf]  ;;  %v2128_v47 = vld [vmem:[%s3091_s0 + $0xc0] sm:$0xf0]  ;;  %v1726_v30 = vld [vmem:[%s3091_s0 + $0x178] sm:$0xf] }
  0x32   :  { %1137 = vmatpush.bf16.msrb.mxu2 %v2195_v44  ;;  %1088 = vmatpush.bf16.msrb.mxu1 %v2187_v45  ;;  %v2123_v44 = vld [vmem:[%s3091_s0 + $0x9c] sm:$0xf]  ;;  %v1612_v45 = vld [vmem:[%s3091_s0 + $0xbc] sm:$0xf0] }
  0x33   :  { %1078 = vmatmul.bf16.gmra.mxu3 %v1783_v48  ;;  %1048 = vmatmul.bf16.gmra.mxu0 %v1567_v49  ;;  %v1607_v48 = vor.u32 %v2122_v40, %v1604_v41  ;;  %v1611_v49 = vor.u32 %v2127_v43, %v1610_v42  ;;  %v2158_v40 = vld [vmem:[%s3091_s0 + $0x1b4] sm:$0xf]  ;;  %v1748_v41 = vld [vmem:[%s3091_s0 + $0x1d4] sm:$0xf0]  ;;  %v2163_v43 = vld [vmem:[%s3091_s0 + $0x1d8] sm:$0xf0] }
  0x34   :  { %1186 = vmatpush.bf16.msrb.mxu3 %v2203_v50  ;;  %1235 = vmatpush.bf16.msrb.mxu0 %v2211_v51  ;;  %v1615_v50 = vor.u32 %v2123_v44, %v1612_v45  ;;  %v1619_v51 = vor.u32 %v2128_v47, %v1618_v46  ;;  %v1754_v42 = vld [vmem:[%s3091_s0 + $0x1b8] sm:$0xf]  ;;  %v2159_v44 = vld [vmem:[%s3091_s0 + $0x1bc] sm:$0xf]  ;;  %v1756_v45 = vld [vmem:[%s3091_s0 + $0x1dc] sm:$0xf0] }
  0x35   :  { %v1762_v46 = vld [vmem:[%s3091_s0 + $0x1c0] sm:$0xf]  ;;  %v2164_v47 = vld [vmem:[%s3091_s0 + $0x1e0] sm:$0xf0] }
  0x36   :  { %1138 = vmatpush.bf16.msrb.mxu2 %v2194_v52  ;;  %1089 = vmatpush.bf16.msrb.mxu1 %v2186_v53  ;;  %v2227_v52 = vld [vmem:[%s3090_s1 + $0x198] sm:$0xff] }
  0x37   :  { %v2235_v53 = vld [vmem:[%s3090_s1 + $0x1d8] sm:$0xff] }
  0x38   :  { %1187 = vmatpush.bf16.msrb.mxu3 %v2202_v54  ;;  %1236 = vmatpush.bf16.msrb.mxu0 %v2210_v55  ;;  %v2219_v54 = vld [vmem:[%s3090_s1 + $0x158] sm:$0xff] }
  0x39   :  { %v2243_v55 = vld [vmem:[%s3090_s1 + $0x218] sm:$0xff] }
  0x3a   :  { %1139 = vmatpush.bf16.msrb.mxu2 %v2193_v56  ;;  %1090 = vmatpush.bf16.msrb.mxu1 %v2185_v57  ;;  %v2131_v56 = vld [vmem:[%s3091_s0 + $0xdc] sm:$0xf]  ;;  %v1640_v57 = vld [vmem:[%s3091_s0 + $0xfc] sm:$0xf0] }
  0x3c   :  { %1188 = vmatpush.bf16.msrb.mxu3 %v2201_v58  ;;  %1237 = vmatpush.bf16.msrb.mxu0 %v2209_v59  ;;  %v1646_v58 = vld [vmem:[%s3091_s0 + $0xe0] sm:$0xf]  ;;  %v2136_v59 = vld [vmem:[%s3091_s0 + $0x100] sm:$0xf0] }
  0x3d   :  { %v1647_v1 = vor.u32 %v2136_v59, %v1646_v58  ;;  %v2167_v58 = vld [vmem:[%s3091_s0 + $0x1fc] sm:$0xf]  ;;  %v1784_v59 = vld [vmem:[%s3091_s0 + $0x21c] sm:$0xf0] }
  0x3e   :  { %1140 = vmatpush.bf16.msrb.mxu2 %v2192_v60  ;;  %1091 = vmatpush.bf16.msrb.mxu1 %v2184_v61  ;;  %v2132_v60 = vld [vmem:[%s3091_s0 + $0xe4] sm:$0xf]  ;;  %v1648_v61 = vld [vmem:[%s3091_s0 + $0x104] sm:$0xf0] }
  0x40   :  { %1189 = vmatpush.bf16.msrb.mxu3 %v2200_v63  ;;  %1238 = vmatpush.bf16.msrb.mxu0 %v2208_v0  ;;  %v2137_v63 = vld [vmem:[%s3091_s0 + $0x108] sm:$0xf0]  ;;  %v1643_v0 = vor.u32 %v2131_v56, %v1640_v57 }
  0x41   :  { %1092 = vmatmul.bf16.vlgmr.msrb.gmra.mxu1 %v1535_v12  ;;  %1141 = vmatmul.bf16.vlgmr.msrb.gmra.mxu2 %v1539_v13  ;;  %v2141_v12 = vld [vmem:[%s3091_s0 + $0x12c] sm:$0xf]  ;;  %v1684_v13 = vld [vmem:[%s3091_s0 + $0x14c] sm:$0xf0] }
  0x42   :  { %1329 = vmatpush.bf16.msra.mxu2 %v2231_v2  ;;  %1280 = vmatpush.bf16.msra.mxu1 %v2223_v3  ;;  %v1651_v2 = vor.u32 %v2132_v60, %v1648_v61  ;;  %v1655_v3 = vor.u32 %v2137_v63, %v1654_v62  ;;  %v1790_v60 = vld [vmem:[%s3091_s0 + $0x200] sm:$0xf]  ;;  %v2172_v61 = vld [vmem:[%s3091_s0 + $0x220] sm:$0xf0]  ;;  %v1792_v63 = vld [vmem:[%s3091_s0 + $0x224] sm:$0xf0] }
  0x43   :  { %1190 = vmatmul.bf16.vlgmr.msrb.gmra.mxu3 %v1543_v14  ;;  %1239 = vmatmul.bf16.vlgmr.msrb.gmra.mxu0 %v1547_v15  ;;  %v1690_v14 = vld [vmem:[%s3091_s0 + $0x130] sm:$0xf]  ;;  %v2146_v15 = vld [vmem:[%s3091_s0 + $0x150] sm:$0xf0]  ;;  %v2168_v62 = vld [vmem:[%s3091_s0 + $0x204] sm:$0xf] }
  0x44   :  { %1378 = vmatpush.bf16.msra.mxu3 %v2239_v10  ;;  %1427 = vmatpush.bf16.msra.mxu0 %v2247_v11  ;;  %v1682_v10 = vld [vmem:[%s3091_s0 + $0x128] sm:$0xf]  ;;  %v2145_v11 = vld [vmem:[%s3091_s0 + $0x148] sm:$0xf0] }
  0x46   :  { %1330 = vmatpush.bf16.msra.mxu2 %v2230_v16  ;;  %1281 = vmatpush.bf16.msra.mxu1 %v2222_v17  ;;  %v1679_v16 = vor.u32 %v2140_v8, %v1676_v9  ;;  %v1683_v17 = vor.u32 %v2145_v11, %v1682_v10 }
  0x48   :  { %1379 = vmatpush.bf16.msra.mxu3 %v2238_v18  ;;  %1428 = vmatpush.bf16.msra.mxu0 %v2246_v19  ;;  %v1687_v18 = vor.u32 %v2141_v12, %v1684_v13  ;;  %v1691_v19 = vor.u32 %v2146_v15, %v1690_v14  ;;  %v2106_v14 = vld [vmem:[%s3091_s0 + $0x14] sm:$0xf]  ;;  %v1548_v15 = vld [vmem:[%s3091_s0 + $0x34] sm:$0xf0] }
  0x4a   :  { %1331 = vmatpush.bf16.msra.mxu2 %v2229_v20  ;;  %1282 = vmatpush.bf16.msra.mxu1 %v2221_v21  ;;  %v2225_v20 = vld [vmem:[%s3090_s1 + $0x188] sm:$0xff] }
  0x4b   :  { %v2233_v21 = vld [vmem:[%s3090_s1 + $0x1c8] sm:$0xff] }
  0x4c   :  { %1380 = vmatpush.bf16.msra.mxu3 %v2237_v22  ;;  %1429 = vmatpush.bf16.msra.mxu0 %v2245_v23  ;;  %v2217_v22 = vld [vmem:[%s3090_s1 + $0x148] sm:$0xff] }
  0x4d   :  { %v2241_v23 = vld [vmem:[%s3090_s1 + $0x208] sm:$0xff] }
  0x4e   :  { %1332 = vmatpush.bf16.msra.mxu2 %v2228_v36  ;;  %1283 = vmatpush.bf16.msra.mxu1 %v2220_v38  ;;  %v2224_v36 = vld [vmem:[%s3090_s1 + $0x180] sm:$0xff] }
  0x4f   :  { %v2216_v38 = vld [vmem:[%s3090_s1 + $0x140] sm:$0xff] }
  0x50   :  { %1381 = vmatpush.bf16.msra.mxu3 %v2236_v37  ;;  %1430 = vmatpush.bf16.msra.mxu0 %v2244_v39  ;;  %v2232_v37 = vld [vmem:[%s3090_s1 + $0x1c0] sm:$0xff] }
  0x51   :  { %1097 = vmatmul.bf16.gmra.mxu1 %v1571_v32  ;;  %1146 = vmatmul.bf16.gmra.mxu2 %v1575_v33  ;;  %v1715_v32 = vor.u32 %v2149_v24, %v1712_v25  ;;  %v1719_v33 = vor.u32 %v2154_v27, %v1718_v26  ;;  %v2240_v39 = vld [vmem:[%s3090_s1 + $0x200] sm:$0xff]  ;;  %v1551_v24 = vor.u32 %v2106_v14, %v1548_v15 }
  0x52   :  { %1333 = vmatpush.bf16.msra.mxu2 %v2227_v52  ;;  %1284 = vmatpush.bf16.msra.mxu1 %v2219_v54  ;;  %v1763_v52 = vor.u32 %v2164_v47, %v1762_v46  ;;  %v2121_v46 = vld [vmem:[%s3091_s0 + $0x88] sm:$0xf0]  ;;  %v2124_v14 = vld [vmem:[%s3091_s0 + $0xa4] sm:$0xf] }
  0x53   :  { %1195 = vmatmul.bf16.gmra.mxu3 %v1579_v34  ;;  %1244 = vmatmul.bf16.gmra.mxu0 %v1583_v35  ;;  %v1723_v34 = vor.u32 %v2150_v28, %v1720_v29  ;;  %v1727_v35 = vor.u32 %v2155_v31, %v1726_v30 }
  0x54   :  { %1382 = vmatpush.bf16.msra.mxu3 %v2235_v53  ;;  %1431 = vmatpush.bf16.msra.mxu0 %v2243_v55 }
  0x56   :  { %1334 = vmatpush.bf16.msra.mxu2 %v2226_v4  ;;  %1285 = vmatpush.bf16.msra.mxu1 %v2218_v6  ;;  %v1787_v4 = vor.u32 %v2167_v58, %v1784_v59 }
  0x58   :  { %1383 = vmatpush.bf16.msra.mxu3 %v2234_v5  ;;  %1432 = vmatpush.bf16.msra.mxu0 %v2242_v7  ;;  %v1791_v5 = vor.u32 %v2172_v61, %v1790_v60  ;;  %v1795_v7 = vor.u32 %v2168_v62, %v1792_v63 }
  0x5a   :  { %1335 = vmatpush.bf16.msra.mxu2 %v2225_v20  ;;  %1286 = vmatpush.bf16.msra.mxu1 %v2217_v22  ;;  %v1562_v20 = vld [vmem:[%s3091_s0 + $0x20] sm:$0xf] }
  0x5c   :  { %1384 = vmatpush.bf16.msra.mxu3 %v2233_v21  ;;  %1433 = vmatpush.bf16.msra.mxu0 %v2241_v23  ;;  %v2112_v21 = vld [vmem:[%s3091_s0 + $0x40] sm:$0xf0] }
  0x5d   :  { %v1563_v28 = vor.u32 %v2112_v21, %v1562_v20  ;;  %v2130_v20 = vld [vmem:[%s3091_s0 + $0xd0] sm:$0xf0] }
  0x5e   :  { %1336 = vmatpush.bf16.msra.mxu2 %v2224_v36  ;;  %1287 = vmatpush.bf16.msra.mxu1 %v2216_v38  ;;  %v2115_v38 = vld [vmem:[%s3091_s0 + $0x5c] sm:$0xf] }
  0x60   :  { %1385 = vmatpush.bf16.msra.mxu3 %v2232_v37  ;;  %1434 = vmatpush.bf16.msra.mxu0 %v2240_v39  ;;  %v1584_v39 = vld [vmem:[%s3091_s0 + $0x7c] sm:$0xf0] }
  0x61   :  { %1102 = vmatmul.bf16.gmra.mxu1 %v1607_v48  ;;  %1151 = vmatmul.bf16.gmra.mxu2 %v1611_v49  ;;  %v1751_v48 = vor.u32 %v2158_v40, %v1748_v41  ;;  %v1755_v49 = vor.u32 %v2163_v43, %v1754_v42  ;;  %v1590_v41 = vld [vmem:[%s3091_s0 + $0x60] sm:$0xf]  ;;  %v2120_v42 = vld [vmem:[%s3091_s0 + $0x80] sm:$0xf0] }
  0x62   :  { %v2116_v43 = vld [vmem:[%s3091_s0 + $0x64] sm:$0xf] }
  0x63   :  { %1200 = vmatmul.bf16.gmra.mxu3 %v1615_v50  ;;  %1249 = vmatmul.bf16.gmra.mxu0 %v1619_v51  ;;  %v1759_v51 = vor.u32 %v2159_v44, %v1756_v45  ;;  %v1592_v44 = vld [vmem:[%s3091_s0 + $0x84] sm:$0xf0] }
  0x64   :  { %v1598_v45 = vld [vmem:[%s3091_s0 + $0x68] sm:$0xf] }
  0x65   :  { %v1599_v58 = vor.u32 %v2121_v46, %v1598_v45  ;;  %v1662_v45 = vld [vmem:[%s3091_s0 + $0xf0] sm:$0xf]  ;;  %v2138_v46 = vld [vmem:[%s3091_s0 + $0x110] sm:$0xf0] }
  0x71   :  { %1107 = vmatmul.bf16.gmra.mxu1 %v1643_v0  ;;  %1156 = vmatmul.bf16.gmra.mxu2 %v1647_v1  ;;  %v1798_v0 = vld [vmem:[%s3091_s0 + $0x208] sm:$0xf]  ;;  %v2173_v1 = vld [vmem:[%s3091_s0 + $0x228] sm:$0xf0] }
  0x72   :  { %v1799_v8 = vor.u32 %v2173_v1, %v1798_v0 }
  0x73   :  { %1205 = vmatmul.bf16.gmra.mxu3 %v1651_v2  ;;  %1254 = vmatmul.bf16.gmra.mxu0 %v1655_v3 }
  0x81   :  { %1112 = vmatmul.bf16.gmra.mxu1 %v1679_v16  ;;  %1161 = vmatmul.bf16.gmra.mxu2 %v1683_v17  ;;  %v1554_v16 = vld [vmem:[%s3091_s0 + $0x18] sm:$0xf]  ;;  %v2111_v17 = vld [vmem:[%s3091_s0 + $0x38] sm:$0xf0] }
  0x82   :  { %v1555_v25 = vor.u32 %v2111_v17, %v1554_v16  ;;  %v1626_v16 = vld [vmem:[%s3091_s0 + $0xa8] sm:$0xf]  ;;  %v2129_v17 = vld [vmem:[%s3091_s0 + $0xc8] sm:$0xf0] }
  0x83   :  { %1210 = vmatmul.bf16.gmra.mxu3 %v1687_v18  ;;  %1259 = vmatmul.bf16.gmra.mxu0 %v1691_v19  ;;  %v2107_v18 = vld [vmem:[%s3091_s0 + $0x1c] sm:$0xf]  ;;  %v1556_v19 = vld [vmem:[%s3091_s0 + $0x3c] sm:$0xf0] }
  0x84   :  { %v1559_v27 = vor.u32 %v2107_v18, %v1556_v19  ;;  %v1628_v18 = vld [vmem:[%s3091_s0 + $0xcc] sm:$0xf0] }
  0x85   :  { %v1634_v19 = vld [vmem:[%s3091_s0 + $0xb0] sm:$0xf] }
  0x91   :  { %1117 = vmatmul.bf16.gmra.mxu1 %v1715_v32  ;;  %1166 = vmatmul.bf16.gmra.mxu2 %v1719_v33 }
  0x93   :  { %1215 = vmatmul.bf16.gmra.mxu3 %v1723_v34  ;;  %1264 = vmatmul.bf16.gmra.mxu0 %v1727_v35 }
  0x9e   :  { %v2766_v50 = vpop.f32.mrf.mxu1 }
  0xa0   :  { %v1044_v53 = vpop.f32.mrf.mxu0 }
  0xa1   :  { %1122 = vmatmul.bf16.gmra.mxu1 %v1751_v48  ;;  %1171 = vmatmul.bf16.gmra.mxu2 %v1755_v49 }
  0xa3   :  { %1220 = vmatmul.bf16.gmra.mxu3 %v1759_v51  ;;  %1269 = vmatmul.bf16.gmra.mxu0 %v1763_v52  ;;  %v1587_v51 = vor.u32 %v2115_v38, %v1584_v39  ;;  %v1591_v52 = vor.u32 %v2120_v42, %v1590_v41 }
  0xa4   :  { %v2768_v54 = vpop.f32.mrf.mxu2 }
  0xa6   :  { %v2770_v55 = vpop.f32.mrf.mxu3  ;;  %v2772_v56 = vpop.f32.mrf.mxu1 }
  0xa8   :  { %v1046_v57 = vpop.f32.mrf.mxu0 }
  0xac   :  { %v2798_v2 = vpop.f32.mrf.mxu2 }
  0xae   :  { %v2800_v3 = vpop.f32.mrf.mxu3  ;;  %v2802_v6 = vpop.f32.mrf.mxu1 }
  0xb0   :  { %v1049_v9 = vpop.f32.mrf.mxu0 }
  0xb1   :  { %1127 = vmatmul.bf16.gmra.mxu1 %v1787_v4  ;;  %1176 = vmatmul.bf16.gmra.mxu2 %v1791_v5 }
  0xb3   :  { %1225 = vmatmul.bf16.gmra.mxu3 %v1795_v7  ;;  %1274 = vmatmul.bf16.gmra.mxu0 %v1799_v8 }
  0xb4   :  { %v2804_v10 = vpop.f32.mrf.mxu2 }
  0xb6   :  { %v2806_v11 = vpop.f32.mrf.mxu3  ;;  %v2808_v12 = vpop.f32.mrf.mxu1 }
  0xb8   :  { %v1051_v13 = vpop.f32.mrf.mxu0 }
  0xbc   :  { %v2834_v22 = vpop.f32.mrf.mxu2 }
  0xbe   :  { %v2836_v23 = vpop.f32.mrf.mxu3  ;;  %v1093_v26 = vpop.f32.mrf.mxu1 }
  0xbf   :  { %v1094_v29 = vadd.f32 %v1093_v26, %v1044_v53 }
  0xc0   :  { %v1240_v30 = vpop.f32.mrf.mxu0 }
  0xc1   :  { %1288 = vmatmul.bf16.vlgmr.msra.gmra.mxu1 %v1551_v24  ;;  %1337 = vmatmul.bf16.vlgmr.msra.gmra.mxu2 %v1555_v25 }
  0xc3   :  { %1386 = vmatmul.bf16.vlgmr.msra.gmra.mxu3 %v1559_v27  ;;  %1435 = vmatmul.bf16.vlgmr.msra.gmra.mxu0 %v1563_v28  ;;  %v1627_v27 = vor.u32 %v2129_v17, %v1626_v16 }
  0xc4   :  { %v1142_v31 = vpop.f32.mrf.mxu2 }
  0xc5   :  { %v1143_v32 = vadd.f32 %v1142_v31, %v1094_v29 }
  0xc6   :  { %v1191_v33 = vpop.f32.mrf.mxu3  ;;  %v1095_v34 = vpop.f32.mrf.mxu1 }
  0xc7   :  { %v1192_v35 = vadd.f32 %v1191_v33, %v1143_v32  ;;  %v1096_v36 = vadd.f32 %v1095_v34, %v1046_v57  ;;  %v1595_v57 = vor.u32 %v2116_v43, %v1592_v44  ;;  %v2133_v43 = vld [vmem:[%s3091_s0 + $0xec] sm:$0xf] }
  0xc8   :  { %v1242_v37 = vpop.f32.mrf.mxu0 }
  0xc9   :  { %v2844_v40 = vadd.f32 %v1240_v30, %v1192_v35  ;;  %v1635_v30 = vor.u32 %v2130_v20, %v1634_v19  ;;  %v1698_v19 = vld [vmem:[%s3091_s0 + $0x138] sm:$0xf]  ;;  %v2147_v20 = vld [vmem:[%s3091_s0 + $0x158] sm:$0xf0] }
  0xcc   :  { %v1144_v47 = vpop.f32.mrf.mxu2 }
  0xcd   :  { %v1145_v48 = vadd.f32 %v1144_v47, %v1096_v36  ;;  %v1664_v47 = vld [vmem:[%s3091_s0 + $0x114] sm:$0xf0] }
  0xce   :  { %v1193_v49 = vpop.f32.mrf.mxu3  ;;  %v1098_v53 = vpop.f32.mrf.mxu1 }
  0xcf   :  { %v1194_v59 = vadd.f32 %v1193_v49, %v1145_v48  ;;  %v1099_v60 = vadd.f32 %v1098_v53, %v1049_v9  ;;  %v1620_v9 = vld [vmem:[%s3091_s0 + $0xc4] sm:$0xf0]  ;;  %v1670_v48 = vld [vmem:[%s3091_s0 + $0xf8] sm:$0xf]  ;;  %v2139_v49 = vld [vmem:[%s3091_s0 + $0x118] sm:$0xf0] }
  0xd0   :  { %v1245_v61 = vpop.f32.mrf.mxu0  ;;  %v1623_v26 = vor.u32 %v2124_v14, %v1620_v9 }
  0xd1   :  { %1293 = vmatmul.bf16.gmra.mxu1 %v1587_v51  ;;  %1342 = vmatmul.bf16.gmra.mxu2 %v1591_v52  ;;  %v2864_v62 = vadd.f32 %v1242_v37, %v1194_v59 }
  0xd3   :  { %1391 = vmatmul.bf16.gmra.mxu3 %v1595_v57  ;;  %1440 = vmatmul.bf16.gmra.mxu0 %v1599_v58  ;;  %v1663_v58 = vor.u32 %v2138_v46, %v1662_v45  ;;  %v2151_v46 = vld [vmem:[%s3091_s0 + $0x17c] sm:$0xf] }
  0xd4   :  { %v1147_v63 = vpop.f32.mrf.mxu2 }
  0xd5   :  { %v1148_v0 = vadd.f32 %v1147_v63, %v1099_v60 }
  0xd6   :  { %v1196_v1 = vpop.f32.mrf.mxu3  ;;  %v1100_v4 = vpop.f32.mrf.mxu1 }
  0xd7   :  { %v1197_v5 = vadd.f32 %v1196_v1, %v1148_v0  ;;  %v1101_v7 = vadd.f32 %v1100_v4, %v1051_v13  ;;  %v2125_v13 = vld [vmem:[%s3091_s0 + $0xac] sm:$0xf] }
  0xd8   :  { %v1247_v8 = vpop.f32.mrf.mxu0  ;;  %v1631_v29 = vor.u32 %v2125_v13, %v1628_v18  ;;  %v2142_v13 = vld [vmem:[%s3091_s0 + $0x134] sm:$0xf] }
  0xd9   :  { %v2872_v15 = vadd.f32 %v1245_v61, %v1197_v5  ;;  %v1671_v61 = vor.u32 %v2139_v49, %v1670_v48  ;;  %v2156_v48 = vld [vmem:[%s3091_s0 + $0x1a0] sm:$0xf0] }
  0xda   :  { %v2152_v49 = vld [vmem:[%s3091_s0 + $0x184] sm:$0xf] }
  0xdc   :  { %v1149_v21 = vpop.f32.mrf.mxu2 }
  0xdd   :  { %v1150_v24 = vadd.f32 %v1149_v21, %v1101_v7  ;;  %v1700_v21 = vld [vmem:[%s3091_s0 + $0x15c] sm:$0xf0] }
  0xde   :  { %v1198_v25 = vpop.f32.mrf.mxu3  ;;  %v1103_v28 = vpop.f32.mrf.mxu1 }
  0xdf   :  { %v1199_v31 = vadd.f32 %v1198_v25, %v1150_v24  ;;  %v1104_v32 = vadd.f32 %v1103_v28, %v2766_v50  ;;  %v1656_v50 = vld [vmem:[%s3091_s0 + $0x10c] sm:$0xf0]  ;;  %v1706_v24 = vld [vmem:[%s3091_s0 + $0x140] sm:$0xf]  ;;  %v2148_v25 = vld [vmem:[%s3091_s0 + $0x160] sm:$0xf0] }
  0xe0   :  { %v1250_v33 = vpop.f32.mrf.mxu0  ;;  %v1659_v57 = vor.u32 %v2133_v43, %v1656_v50 }
  0xe1   :  { %1298 = vmatmul.bf16.gmra.mxu1 %v1623_v26  ;;  %1347 = vmatmul.bf16.gmra.mxu2 %v1627_v27  ;;  %v2893_v34 = vadd.f32 %v1247_v8, %v1199_v31 }
  0xe3   :  { %1396 = vmatmul.bf16.gmra.mxu3 %v1631_v29  ;;  %1445 = vmatmul.bf16.gmra.mxu0 %v1635_v30  ;;  %v1699_v30 = vor.u32 %v2147_v20, %v1698_v19  ;;  %v2160_v20 = vld [vmem:[%s3091_s0 + $0x1c4] sm:$0xf] }
  0xe4   :  { %v1152_v35 = vpop.f32.mrf.mxu2 }
  0xe5   :  { %v1153_v36 = vadd.f32 %v1152_v35, %v1104_v32 }
  0xe6   :  { %v1201_v37 = vpop.f32.mrf.mxu3  ;;  %v1105_v38 = vpop.f32.mrf.mxu1 }
  0xe7   :  { %v1202_v39 = vadd.f32 %v1201_v37, %v1153_v36  ;;  %v1106_v41 = vadd.f32 %v1105_v38, %v2772_v56  ;;  %v2134_v56 = vld [vmem:[%s3091_s0 + $0xf4] sm:$0xf] }
  0xe8   :  { %v1252_v42 = vpop.f32.mrf.mxu0  ;;  %v1667_v60 = vor.u32 %v2134_v56, %v1664_v47  ;;  %v1728_v56 = vld [vmem:[%s3091_s0 + $0x19c] sm:$0xf0] }
  0xe9   :  { %v2902_v44 = vadd.f32 %v1250_v33, %v1202_v39  ;;  %v1707_v33 = vor.u32 %v2148_v25, %v1706_v24  ;;  %v2165_v24 = vld [vmem:[%s3091_s0 + $0x1e8] sm:$0xf0] }
  0xea   :  { %v2161_v25 = vld [vmem:[%s3091_s0 + $0x1cc] sm:$0xf] }
  0xec   :  { %v1154_v51 = vpop.f32.mrf.mxu2 }
  0xed   :  { %v1155_v52 = vadd.f32 %v1154_v51, %v1106_v41 }
  0xee   :  { %v1203_v53 = vpop.f32.mrf.mxu3  ;;  %v1108_v59 = vpop.f32.mrf.mxu1 }
  0xef   :  { %v1204_v63 = vadd.f32 %v1203_v53, %v1155_v52  ;;  %v1109_v0 = vadd.f32 %v1108_v59, %v2802_v6  ;;  %v1692_v6 = vld [vmem:[%s3091_s0 + $0x154] sm:$0xf0]  ;;  %v1736_v52 = vld [vmem:[%s3091_s0 + $0x1a4] sm:$0xf0] }
  0xf0   :  { %v1255_v1 = vpop.f32.mrf.mxu0  ;;  %v1695_v29 = vor.u32 %v2142_v13, %v1692_v6  ;;  %v1742_v53 = vld [vmem:[%s3091_s0 + $0x188] sm:$0xf] }
  0xf1   :  { %1303 = vmatmul.bf16.gmra.mxu1 %v1659_v57  ;;  %1352 = vmatmul.bf16.gmra.mxu2 %v1663_v58  ;;  %v2923_v4 = vadd.f32 %v1252_v42, %v1204_v63  ;;  %v2157_v57 = vld [vmem:[%s3091_s0 + $0x1a8] sm:$0xf0] }
  0xf3   :  { %1401 = vmatmul.bf16.gmra.mxu3 %v1667_v60  ;;  %1450 = vmatmul.bf16.gmra.mxu0 %v1671_v61  ;;  %v1731_v61 = vor.u32 %v2151_v46, %v1728_v56 }
  0xf4   :  { %v1157_v5 = vpop.f32.mrf.mxu2 }
  0xf5   :  { %v1158_v7 = vadd.f32 %v1157_v5, %v1109_v0 }
  0xf6   :  { %v1206_v8 = vpop.f32.mrf.mxu3  ;;  %v1110_v14 = vpop.f32.mrf.mxu1 }
  0xf7   :  { %v1207_v9 = vadd.f32 %v1206_v8, %v1158_v7  ;;  %v1111_v16 = vadd.f32 %v1110_v14, %v2808_v12  ;;  %v2143_v12 = vld [vmem:[%s3091_s0 + $0x13c] sm:$0xf] }
  0xf8   :  { %v1257_v17 = vpop.f32.mrf.mxu0  ;;  %v1703_v32 = vor.u32 %v2143_v12, %v1700_v21  ;;  %v1764_v12 = vld [vmem:[%s3091_s0 + $0x1e4] sm:$0xf0] }
  0xf9   :  { %v2932_v18 = vadd.f32 %v1255_v1, %v1207_v9  ;;  %v1739_v1 = vor.u32 %v2152_v49, %v1736_v52  ;;  %v2169_v49 = vld [vmem:[%s3091_s0 + $0x20c] sm:$0xf] }
  0xfc   :  { %v1159_v26 = vpop.f32.mrf.mxu2 }
  0xfd   :  { %v1160_v27 = vadd.f32 %v1159_v26, %v1111_v16 }
  0xfe   :  { %v1208_v28 = vpop.f32.mrf.mxu3  ;;  %v1113_v31 = vpop.f32.mrf.mxu1 }
  0xff   :  { %v1209_v35 = vadd.f32 %v1208_v28, %v1160_v27  ;;  %v1114_v38 = vadd.f32 %v1113_v31, %v2768_v54  ;;  %v1734_v54 = vld [vmem:[%s3091_s0 + $0x180] sm:$0xf]  ;;  %v1772_v27 = vld [vmem:[%s3091_s0 + $0x1ec] sm:$0xf0] }
 0x100   :  { %v1260_v36 = vpop.f32.mrf.mxu0  ;;  %v1735_v63 = vor.u32 %v2156_v48, %v1734_v54  ;;  %v1778_v28 = vld [vmem:[%s3091_s0 + $0x1d0] sm:$0xf] }
 0x101   :  { %1308 = vmatmul.bf16.gmra.mxu1 %v1695_v29  ;;  %1357 = vmatmul.bf16.gmra.mxu2 %v1699_v30  ;;  %v2952_v37 = vadd.f32 %v1257_v17, %v1209_v35  ;;  %v2166_v29 = vld [vmem:[%s3091_s0 + $0x1f0] sm:$0xf0] }
 0x103   :  { %1406 = vmatmul.bf16.gmra.mxu3 %v1703_v32  ;;  %1455 = vmatmul.bf16.gmra.mxu0 %v1707_v33  ;;  %v1767_v33 = vor.u32 %v2160_v20, %v1764_v12 }
 0x104   :  { %v1162_v39 = vpop.f32.mrf.mxu2 }
 0x105   :  { %v1163_v41 = vadd.f32 %v1162_v39, %v1114_v38  ;;  %v1775_v38 = vor.u32 %v2161_v25, %v1772_v27 }
 0x106   :  { %v1211_v42 = vpop.f32.mrf.mxu3  ;;  %v1115_v43 = vpop.f32.mrf.mxu1 }
 0x107   :  { %v1212_v50 = vadd.f32 %v1211_v42, %v1163_v41  ;;  %v1116_v51 = vadd.f32 %v1115_v43, %v2798_v2  ;;  %v1743_v2 = vor.u32 %v2157_v57, %v1742_v53  ;;  %v2174_v53 = vld [vmem:[%s3091_s0 + $0x230] sm:$0xf0] }
 0x108   :  { %v1262_v45 = vpop.f32.mrf.mxu0  ;;  %v2170_v57 = vld [vmem:[%s3091_s0 + $0x214] sm:$0xf] }
 0x109   :  { %v2961_v47 = vadd.f32 %v1260_v36, %v1212_v50 }
 0x10c   :  { %v1164_v58 = vpop.f32.mrf.mxu2 }
 0x10d   :  { %v1165_v59 = vadd.f32 %v1164_v58, %v1116_v51  ;;  %v1800_v51 = vld [vmem:[%s3091_s0 + $0x22c] sm:$0xf0] }
 0x10e   :  { %v1213_v60 = vpop.f32.mrf.mxu3  ;;  %v1118_v0 = vpop.f32.mrf.mxu1 }
 0x10f   :  { %v1214_v5 = vadd.f32 %v1213_v60, %v1165_v59  ;;  %v1119_v14 = vadd.f32 %v1118_v0, %v2804_v10  ;;  %v1770_v10 = vld [vmem:[%s3091_s0 + $0x1c8] sm:$0xf]  ;;  %v1808_v59 = vld [vmem:[%s3091_s0 + $0x234] sm:$0xf0] }
 0x110   :  { %v1265_v7 = vpop.f32.mrf.mxu0  ;;  %v1771_v35 = vor.u32 %v2165_v24, %v1770_v10  ;;  %v1814_v60 = vld [vmem:[%s3091_s0 + $0x218] sm:$0xf] }
 0x111   :  { %1313 = vmatmul.bf16.gmra.mxu1 %v1731_v61  ;;  %1362 = vmatmul.bf16.gmra.mxu2 %v1735_v63  ;;  %v2982_v8 = vadd.f32 %v1262_v45, %v1214_v5  ;;  %v2175_v61 = vld [vmem:[%s3091_s0 + $0x238] sm:$0xf0] }
 0x113   :  { %1411 = vmatmul.bf16.gmra.mxu3 %v1739_v1  ;;  %1460 = vmatmul.bf16.gmra.mxu0 %v1743_v2  ;;  %v1803_v2 = vor.u32 %v2169_v49, %v1800_v51 }
 0x114   :  { %v1167_v9 = vpop.f32.mrf.mxu2 }
 0x115   :  { %v1168_v16 = vadd.f32 %v1167_v9, %v1119_v14  ;;  %v1811_v14 = vor.u32 %v2170_v57, %v1808_v59 }
 0x116   :  { %v1216_v17 = vpop.f32.mrf.mxu3  ;;  %v1120_v13 = vpop.f32.mrf.mxu1 }
 0x117   :  { %v1217_v6 = vadd.f32 %v1216_v17, %v1168_v16  ;;  %v1121_v26 = vadd.f32 %v1120_v13, %v2834_v22  ;;  %v1779_v22 = vor.u32 %v2166_v29, %v1778_v28 }
 0x118   :  { %v1267_v19 = vpop.f32.mrf.mxu0 }
 0x119   :  { %v2991_v21 = vadd.f32 %v1265_v7, %v1217_v6 }
 0x11c   :  { %v1169_v30 = vpop.f32.mrf.mxu2 }
 0x11d   :  { %v1170_v31 = vadd.f32 %v1169_v30, %v1121_v26 }
 0x11e   :  { %v1218_v32 = vpop.f32.mrf.mxu3  ;;  %v1123_v36 = vpop.f32.mrf.mxu1 }
 0x11f   :  { %v1219_v39 = vadd.f32 %v1218_v32, %v1170_v31  ;;  %v1124_v43 = vadd.f32 %v1123_v36, %v2770_v55  ;;  %v1806_v55 = vld [vmem:[%s3091_s0 + $0x210] sm:$0xf] }
 0x120   :  { %v1270_v41 = vpop.f32.mrf.mxu0  ;;  %v1807_v5 = vor.u32 %v2174_v53, %v1806_v55 }
 0x121   :  { %1318 = vmatmul.bf16.gmra.mxu1 %v1767_v33  ;;  %1367 = vmatmul.bf16.gmra.mxu2 %v1771_v35  ;;  %v3012_v42 = vadd.f32 %v1267_v19, %v1219_v39 }
 0x123   :  { %1416 = vmatmul.bf16.gmra.mxu3 %v1775_v38  ;;  %1465 = vmatmul.bf16.gmra.mxu0 %v1779_v22 }
 0x124   :  { %v1172_v50 = vpop.f32.mrf.mxu2 }
 0x125   :  { %v1173_v45 = vadd.f32 %v1172_v50, %v1124_v43 }
 0x126   :  { %v1221_v46 = vpop.f32.mrf.mxu3  ;;  %v1125_v56 = vpop.f32.mrf.mxu1 }
 0x127   :  { %v1222_v54 = vadd.f32 %v1221_v46, %v1173_v45  ;;  %v1126_v58 = vadd.f32 %v1125_v56, %v2800_v3  ;;  %v1815_v3 = vor.u32 %v2175_v61, %v1814_v60 }
 0x128   :  { %v1272_v48 = vpop.f32.mrf.mxu0 }
 0x129   :  { %v3021_v52 = vadd.f32 %v1270_v41, %v1222_v54 }
 0x12c   :  { %v1174_v63 = vpop.f32.mrf.mxu2 }
 0x12d   :  { %v1175_v0 = vadd.f32 %v1174_v63, %v1126_v58 }
 0x12e   :  { %v1223_v1 = vpop.f32.mrf.mxu3  ;;  %v1128_v7 = vpop.f32.mrf.mxu1 }
 0x12f   :  { %v1224_v9 = vadd.f32 %v1223_v1, %v1175_v0  ;;  %v1129_v13 = vadd.f32 %v1128_v7, %v2806_v11 }
 0x130   :  { %v1275_v16 = vpop.f32.mrf.mxu0 }
 0x131   :  { %1323 = vmatmul.bf16.gmra.mxu1 %v1803_v2  ;;  %1372 = vmatmul.bf16.gmra.mxu2 %v1807_v5  ;;  %v3042_v17 = vadd.f32 %v1272_v48, %v1224_v9 }
 0x133   :  { %1421 = vmatmul.bf16.gmra.mxu3 %v1811_v14  ;;  %1470 = vmatmul.bf16.gmra.mxu0 %v1815_v3 }
 0x134   :  { %v1177_v6 = vpop.f32.mrf.mxu2 }
 0x135   :  { %v1178_v19 = vadd.f32 %v1177_v6, %v1129_v13 }
 0x136   :  { %v1226_v20 = vpop.f32.mrf.mxu3  ;;  %v1130_v12 = vpop.f32.mrf.mxu1 }
 0x137   :  { %v1227_v10 = vadd.f32 %v1226_v20, %v1178_v19  ;;  %v1131_v26 = vadd.f32 %v1130_v12, %v2836_v23 }
 0x138   :  { %v1277_v24 = vpop.f32.mrf.mxu0 }
 0x139   :  { %v3045_v25 = vadd.f32 %v1275_v16, %v1227_v10 }
 0x13c   :  { %v1179_v27 = vpop.f32.mrf.mxu2 }
 0x13d   :  { %v1180_v28 = vadd.f32 %v1179_v27, %v1131_v26 }
 0x13e   :  { %v1228_v29 = vpop.f32.mrf.mxu3  ;;  %v1289_v30 = vpop.f32.mrf.mxu1 }
 0x13f   :  { %v1229_v31 = vadd.f32 %v1228_v29, %v1180_v28  ;;  %v1290_v11 = vadd.f32 %v1289_v30, %v2844_v40 }
 0x140   :  { %v1436_v32 = vpop.f32.mrf.mxu0 }
 0x141   :  { %v3048_v33 = vadd.f32 %v1277_v24, %v1229_v31 }
 0x144   :  { %v1338_v35 = vpop.f32.mrf.mxu2 }
 0x145   :  { %v1339_v22 = vadd.f32 %v1338_v35, %v1290_v11 }
 0x146   :  { %v1387_v36 = vpop.f32.mrf.mxu3  ;;  %v1291_v38 = vpop.f32.mrf.mxu1 }
 0x147   :  { %v1388_v41 = vadd.f32 %v1387_v36, %v1339_v22  ;;  %v1292_v43 = vadd.f32 %v1291_v38, %v2864_v62 }
 0x148   :  { %v1438_v39 = vpop.f32.mrf.mxu0 }
 0x149   :  { %v1437_v56 = vadd.f32 %v1436_v32, %v1388_v41 }
 0x14b   :  { %v1476_v51 = vmax.f32 %v1437_v56, 0.0 }
 0x14c   :  { %v1340_v50 = vpop.f32.mrf.mxu2 }
 0x14d   :  { %v1341_v23 = vadd.f32 %v1340_v50, %v1292_v43 }
 0x14e   :  { %v1389_v45 = vpop.f32.mrf.mxu3  ;;  %v1294_v46 = vpop.f32.mrf.mxu1 }
 0x14f   :  { %v1390_v54 = vadd.f32 %v1389_v45, %v1341_v23  ;;  %v1295_v40 = vadd.f32 %v1294_v46, %v2872_v15 }
 0x150   :  { %v1441_v48 = vpop.f32.mrf.mxu0 }
 0x151   :  { %v1439_v49 = vadd.f32 %v1438_v39, %v1390_v54 }
 0x153   :  { %v1477_v55 = vmax.f32 %v1439_v49, 0.0 }
 0x154   :  { %v1343_v53 = vpop.f32.mrf.mxu2 }
 0x155   :  { %v2251_v57 = vpack.c.bf16 %v1477_v55, %v1476_v51  ;;  %v1344_v62 = vadd.f32 %v1343_v53, %v1295_v40 }
 0x156   :  { %v1392_v58 = vpop.f32.mrf.mxu3  ;;  %v1296_v59 = vpop.f32.mrf.mxu1 }
 0x157   :  { %2252 = vst [vmem:[%s3092_s2] sm:$0xff] %v2251_v57   ;;  %v1393_v61 = vadd.f32 %v1392_v58, %v1344_v62  ;;  %v1297_v63 = vadd.f32 %v1296_v59, %v2893_v34 }
 0x158   :  { %v1443_v60 = vpop.f32.mrf.mxu0 }
 0x159   :  { %v1442_v7 = vadd.f32 %v1441_v48, %v1393_v61 }
 0x15b   :  { %v1478_v15 = vmax.f32 %v1442_v7, 0.0 }
 0x15c   :  { %v1345_v0 = vpop.f32.mrf.mxu2 }
 0x15d   :  { %v1346_v1 = vadd.f32 %v1345_v0, %v1297_v63 }
 0x15e   :  { %v1394_v2 = vpop.f32.mrf.mxu3  ;;  %v1299_v5 = vpop.f32.mrf.mxu1 }
 0x15f   :  { %v1395_v14 = vadd.f32 %v1394_v2, %v1346_v1  ;;  %v1300_v19 = vadd.f32 %v1299_v5, %v2902_v44 }
 0x160   :  { %v1446_v3 = vpop.f32.mrf.mxu0 }
 0x161   :  { %v1444_v9 = vadd.f32 %v1443_v60, %v1395_v14 }
 0x163   :  { %v1479_v16 = vmax.f32 %v1444_v9, 0.0 }
 0x164   :  { %v1348_v13 = vpop.f32.mrf.mxu2 }
 0x165   :  { %v2256_v6 = vpack.c.bf16 %v1479_v16, %v1478_v15  ;;  %v1349_v34 = vadd.f32 %v1348_v13, %v1300_v19 }
 0x166   :  { %v1397_v20 = vpop.f32.mrf.mxu3  ;;  %v1301_v12 = vpop.f32.mrf.mxu1 }
 0x167   :  { %2288 = vst [vmem:[%s3092_s2 + $0x8] sm:$0xff] %v2256_v6   ;;  %v1398_v24 = vadd.f32 %v1397_v20, %v1349_v34  ;;  %v1302_v26 = vadd.f32 %v1301_v12, %v2923_v4 }
 0x168   :  { %v1448_v10 = vpop.f32.mrf.mxu0 }
 0x169   :  { %v1447_v31 = vadd.f32 %v1446_v3, %v1398_v24 }
 0x16b   :  { %v1480_v44 = vmax.f32 %v1447_v31, 0.0 }
 0x16c   :  { %v1350_v27 = vpop.f32.mrf.mxu2 }
 0x16d   :  { %v1351_v28 = vadd.f32 %v1350_v27, %v1302_v26 }
 0x16e   :  { %v1399_v29 = vpop.f32.mrf.mxu3  ;;  %v1304_v30 = vpop.f32.mrf.mxu1 }
 0x16f   :  { %v1400_v32 = vadd.f32 %v1399_v29, %v1351_v28  ;;  %v1305_v39 = vadd.f32 %v1304_v30, %v2932_v18 }
 0x170   :  { %v1451_v35 = vpop.f32.mrf.mxu0 }
 0x171   :  { %v1449_v11 = vadd.f32 %v1448_v10, %v1400_v32 }
 0x173   :  { %v1481_v36 = vmax.f32 %v1449_v11, 0.0 }
 0x174   :  { %v1353_v38 = vpop.f32.mrf.mxu2 }
 0x175   :  { %v2261_v22 = vpack.c.bf16 %v1481_v36, %v1480_v44  ;;  %v1354_v4 = vadd.f32 %v1353_v38, %v1305_v39 }
 0x176   :  { %v1402_v41 = vpop.f32.mrf.mxu3  ;;  %v1306_v43 = vpop.f32.mrf.mxu1 }
 0x177   :  { %2289 = vst [vmem:[%s3092_s2 + $0x10] sm:$0xff] %v2261_v22   ;;  %v1403_v23 = vadd.f32 %v1402_v41, %v1354_v4  ;;  %v1307_v45 = vadd.f32 %v1306_v43, %v2952_v37 }
 0x178   :  { %v1453_v50 = vpop.f32.mrf.mxu0 }
 0x179   :  { %v1452_v49 = vadd.f32 %v1451_v35, %v1403_v23 }
 0x17b   :  { %v1482_v18 = vmax.f32 %v1452_v49, 0.0 }
 0x17c   :  { %v1355_v46 = vpop.f32.mrf.mxu2 }
 0x17d   :  { %v1356_v56 = vadd.f32 %v1355_v46, %v1307_v45 }
 0x17e   :  { %v1404_v54 = vpop.f32.mrf.mxu3  ;;  %v1309_v48 = vpop.f32.mrf.mxu1 }
 0x17f   :  { %v1405_v51 = vadd.f32 %v1404_v54, %v1356_v56  ;;  %v1310_v59 = vadd.f32 %v1309_v48, %v2961_v47 }
 0x180   :  { %v1456_v55 = vpop.f32.mrf.mxu0 }
 0x181   :  { %v1454_v53 = vadd.f32 %v1453_v50, %v1405_v51 }
 0x183   :  { %v1483_v57 = vmax.f32 %v1454_v53, 0.0 }
 0x184   :  { %v1358_v40 = vpop.f32.mrf.mxu2 }
 0x185   :  { %v2266_v58 = vpack.c.bf16 %v1483_v57, %v1482_v18  ;;  %v1359_v37 = vadd.f32 %v1358_v40, %v1310_v59 }
 0x186   :  { %v1407_v62 = vpop.f32.mrf.mxu3  ;;  %v1311_v60 = vpop.f32.mrf.mxu1 }
 0x187   :  { %2290 = vst [vmem:[%s3092_s2 + $0x18] sm:$0xff] %v2266_v58   ;;  %v1408_v63 = vadd.f32 %v1407_v62, %v1359_v37  ;;  %v1312_v0 = vadd.f32 %v1311_v60, %v2982_v8 }
 0x188   :  { %v1458_v61 = vpop.f32.mrf.mxu0 }
 0x189   :  { %v1457_v14 = vadd.f32 %v1456_v55, %v1408_v63 }
 0x18b   :  { %v1484_v47 = vmax.f32 %v1457_v14, 0.0 }
 0x18c   :  { %v1360_v1 = vpop.f32.mrf.mxu2 }
 0x18d   :  { %v1361_v2 = vadd.f32 %v1360_v1, %v1312_v0 }
 0x18e   :  { %v1409_v5 = vpop.f32.mrf.mxu3  ;;  %v1314_v7 = vpop.f32.mrf.mxu1 }
 0x18f   :  { %v1410_v3 = vadd.f32 %v1409_v5, %v1361_v2  ;;  %v1315_v19 = vadd.f32 %v1314_v7, %v2991_v21 }
 0x190   :  { %v1461_v9 = vpop.f32.mrf.mxu0 }
 0x191   :  { %v1459_v15 = vadd.f32 %v1458_v61, %v1410_v3 }
 0x193   :  { %v1485_v16 = vmax.f32 %v1459_v15, 0.0 }
 0x194   :  { %v1363_v13 = vpop.f32.mrf.mxu2 }
 0x195   :  { %v2271_v6 = vpack.c.bf16 %v1485_v16, %v1484_v47  ;;  %v1364_v8 = vadd.f32 %v1363_v13, %v1315_v19 }
 0x196   :  { %v1412_v20 = vpop.f32.mrf.mxu3  ;;  %v1316_v12 = vpop.f32.mrf.mxu1 }
 0x197   :  { %2291 = vst [vmem:[%s3092_s2 + $0x20] sm:$0xff] %v2271_v6   ;;  %v1413_v10 = vadd.f32 %v1412_v20, %v1364_v8  ;;  %v1317_v24 = vadd.f32 %v1316_v12, %v3012_v42 }
 0x198   :  { %v1463_v34 = vpop.f32.mrf.mxu0 }
 0x199   :  { %v1462_v30 = vadd.f32 %v1461_v9, %v1413_v10 }
 0x19b   :  { %v1486_v21 = vmax.f32 %v1462_v30, 0.0 }
 0x19c   :  { %v1365_v26 = vpop.f32.mrf.mxu2 }
 0x19d   :  { %v1366_v27 = vadd.f32 %v1365_v26, %v1317_v24 }
 0x19e   :  { %v1414_v28 = vpop.f32.mrf.mxu3  ;;  %v1319_v29 = vpop.f32.mrf.mxu1 }
 0x19f   :  { %v1415_v31 = vadd.f32 %v1414_v28, %v1366_v27  ;;  %v1320_v38 = vadd.f32 %v1319_v29, %v3021_v52 }
 0x1a0   :  { %v1466_v35 = vpop.f32.mrf.mxu0 }
 0x1a1   :  { %v1464_v32 = vadd.f32 %v1463_v34, %v1415_v31 }
 0x1a3   :  { %v1487_v11 = vmax.f32 %v1464_v32, 0.0 }
 0x1a4   :  { %v1368_v44 = vpop.f32.mrf.mxu2 }
 0x1a5   :  { %v2276_v36 = vpack.c.bf16 %v1487_v11, %v1486_v21  ;;  %v1369_v42 = vadd.f32 %v1368_v44, %v1320_v38 }
 0x1a6   :  { %v1417_v22 = vpop.f32.mrf.mxu3  ;;  %v1321_v39 = vpop.f32.mrf.mxu1 }
 0x1a7   :  { %2292 = vst [vmem:[%s3092_s2 + $0x28] sm:$0xff] %v2276_v36   ;;  %v1418_v41 = vadd.f32 %v1417_v22, %v1369_v42  ;;  %v1322_v43 = vadd.f32 %v1321_v39, %v3042_v17 }
 0x1a8   :  { %v1468_v4 = vpop.f32.mrf.mxu0 }
 0x1a9   :  { %v1467_v56 = vadd.f32 %v1466_v35, %v1418_v41 }
 0x1ab   :  { %v1488_v49 = vmax.f32 %v1467_v56, 0.0 }
 0x1ac   :  { %v1370_v50 = vpop.f32.mrf.mxu2 }
 0x1ad   :  { %v1371_v23 = vadd.f32 %v1370_v50, %v1322_v43 }
 0x1ae   :  { %v1419_v45 = vpop.f32.mrf.mxu3  ;;  %v1324_v46 = vpop.f32.mrf.mxu1 }
 0x1af   :  { %v1420_v54 = vadd.f32 %v1419_v45, %v1371_v23  ;;  %v1325_v53 = vadd.f32 %v1324_v46, %v3045_v25 }
 0x1b0   :  { %v1471_v57 = vpop.f32.mrf.mxu0 }
 0x1b1   :  { %v1469_v48 = vadd.f32 %v1468_v4, %v1420_v54 }
 0x1b3   :  { %v1489_v52 = vmax.f32 %v1469_v48, 0.0 }
 0x1b4   :  { %v1373_v51 = vpop.f32.mrf.mxu2 }
 0x1b5   :  { %v2281_v55 = vpack.c.bf16 %v1489_v52, %v1488_v49  ;;  %v1374_v17 = vadd.f32 %v1373_v51, %v1325_v53 }
 0x1b6   :  { %v1422_v18 = vpop.f32.mrf.mxu3  ;;  %v1326_v40 = vpop.f32.mrf.mxu1 }
 0x1b7   :  { %2293 = vst [vmem:[%s3092_s2 + $0x30] sm:$0xff] %v2281_v55   ;;  %v1423_v58 = vadd.f32 %v1422_v18, %v1374_v17  ;;  %v1327_v59 = vadd.f32 %v1326_v40, %v3048_v33 }
 0x1b8   :  { %v1473_v0 = vpop.f32.mrf.mxu0 }
 0x1b9   :  { %v1472_v61 = vadd.f32 %v1471_v57, %v1423_v58 }
 0x1bb   :  { %v1490_v2 = vmax.f32 %v1472_v61, 0.0 }
 0x1bc   :  { %v1375_v62 = vpop.f32.mrf.mxu2 }
 0x1bd   :  { %v1376_v60 = vadd.f32 %v1375_v62, %v1327_v59 }
 0x1be   :  { %v1424_v37 = vpop.f32.mrf.mxu3 }
 0x1bf   :  { %v1425_v63 = vadd.f32 %v1424_v37, %v1376_v60 }
 0x1c1   :  { %v1474_v1 = vadd.f32 %v1473_v0, %v1425_v63 }
 0x1c3   :  { %v1491_v25 = vmax.f32 %v1474_v1, 0.0 }
 0x1c5   :  { %v2286_v5 = vpack.c.bf16 %v1491_v25, %v1490_v2 }
 0x1c7   :  { %2294 = vst [vmem:[%s3092_s2 + $0x38] sm:$0xff] %v2286_v5  }

// kernel: base_cnn_forward.11
= control target key start
LH: loop header
LB: loop body
LE: loop exit
PB: predicated region body
PF: predicated region fallthrough
CT: control target
= control target key end

     0   :  { %s5437_s9 = smov 0   ;;  %s5439_s10 = smov 0   ;;  %s6465_s0 = inlined_call_operand.vmem [shape: bf16[32,2304], index: 0, kind: input, shape index: {}]   ;;  %s6466_s1 = inlined_call_operand.vmem [shape: bf16[2304,256], index: 1, kind: input, shape index: {}]   ;;  %s6467_s2 = inlined_call_operand.vmem [shape: f32[32,256], index: 2, kind: output, shape index: {}]  }
   0x1   :  { %s5441_s11 = smov 0   ;;  %s5443_s12 = smov 0  }
   0x2   :  { %s5445_s13 = smov 0  }
   0x3 LB: > { %s21_s14 = sadd.s32 1, %s5416_s12  ;;  %s4412_s15 = sadd.s32 4294967295, %s5420_s13   ;;  %s5420_s13 = sphi %s5445_s13, %s12_s13   ;;  %s5416_s12 = sphi %s5443_s12, %s6472_s12   ;;  %s5412_s11 = sphi %s5441_s11, %s6471_s11   ;;  %s5408_s10 = sphi %s5439_s10, %s6470_s10   ;;  %s5404_s9 = sphi %s5437_s9, %s6469_s9  }
   0x4   : > { %p22_p0 = scmp.ge.s32.totalorder %s21_s14, 2  ;;  %p64_p1 = scmp.ne.s32.totalorder %s5408_s10, %s5404_s9 }
   0x5   : > { %p65_p2 = scmp.eq.s32.totalorder %s5420_s13, 0  ;;  %p96_p4 = scmp.eq.s32.totalorder %s4412_s15, 1 }
   0x6   : > { %s6474_s14 = smov (%p22_p0, %s21_s14), 0  ;;  %s57_s17 = sadd.s32 1, %s5408_s10 }
   0x7   : > { %p66_p3 = por %p65_p2, %p64_p1  ;;  %s54_s16 = ssub.s32 %s5416_s12, %s6474_s14 }
   0x8   : > { %p55_p5 = scmp.eq.s32.totalorder %s54_s16, 0  ;;  %p5472_p6 = por %p96_p4, %p64_p1 }
   0x9   : > { %p4416_p7 = scmp.ge.s32.totalorder %s5420_s13, 2 }
   0xa   : > { %s5477_s19 = scalar_select %p55_p5, %s5408_s10, %s57_s17  }
   0xb   : > { %128 = sbr.rel (%p4416_p7) target bundleno = 309 (0x135), region = 20 }
  0x10   : > { %131 = sbr.rel (!%p66_p3) target bundleno = 309 (0x135), region = 24  ;;  %s133_s20 = sand.u32 (%p66_p3), 1, %s5408_s10  }
  0x11   : > { %s4417_s21 = sshll.u32 (%p66_p3), %s5416_s12, 2  ;;  %s5340_s22 = smul.u32 (%p66_p3), 1152, %s133_s20 }
  0x12   : > { %s5485_s25 = scalar_lea.vmem (%p66_p3), %s6466_s1, %s4417_s21 }
  0x13   : > { %v154_v0 = vld [vmem:[%s5485_s25] sm:$0xf] (%p66_p3)  ;;  %v156_v1 = vld [vmem:[%s5485_s25 + $0x8] sm:$0xf] (%p66_p3)  ;;  %v158_v2 = vld [vmem:[%s5485_s25 + $0x10] sm:$0xf] (%p66_p3) }
  0x14   : > { %s5490_s26 = scalar_lea.vmem (%p66_p3), [#allocation2], %s5340_s22  ;;  %v160_v3 = vld [vmem:[%s5485_s25 + $0x18] sm:$0xf] (%p66_p3)  ;;  %v162_v4 = vld [vmem:[%s5485_s25 + $0x20] sm:$0xf] (%p66_p3) }
  0x15   : > { %155 = vst [vmem:[%s5490_s26] sm:$0xf] %v154_v0  ;;  %v164_v5 = vld [vmem:[%s5485_s25 + $0x28] sm:$0xf]  ;;  %v166_v6 = vld [vmem:[%s5485_s25 + $0x30] sm:$0xf] }
  0x16   : > { %157 = vst [vmem:[%s5490_s26 + $0x4] sm:$0xf] %v156_v1  ;;  %v168_v7 = vld [vmem:[%s5485_s25 + $0x38] sm:$0xf]  ;;  %v170_v8 = vld [vmem:[%s5485_s25 + $0x40] sm:$0xf] }
  0x17   : > { %159 = vst [vmem:[%s5490_s26 + $0x8] sm:$0xf] %v158_v2  ;;  %v172_v9 = vld [vmem:[%s5485_s25 + $0x48] sm:$0xf]  ;;  %v174_v10 = vld [vmem:[%s5485_s25 + $0x50] sm:$0xf] }
  0x18   : > { %161 = vst [vmem:[%s5490_s26 + $0xc] sm:$0xf] %v160_v3  ;;  %v176_v11 = vld [vmem:[%s5485_s25 + $0x58] sm:$0xf]  ;;  %v178_v12 = vld [vmem:[%s5485_s25 + $0x60] sm:$0xf] }
  0x19   : > { %163 = vst [vmem:[%s5490_s26 + $0x10] sm:$0xf] %v162_v4  ;;  %v180_v13 = vld [vmem:[%s5485_s25 + $0x68] sm:$0xf]  ;;  %v182_v14 = vld [vmem:[%s5485_s25 + $0x70] sm:$0xf] }
  0x1a   : > { %165 = vst [vmem:[%s5490_s26 + $0x14] sm:$0xf] %v164_v5  ;;  %v184_v15 = vld [vmem:[%s5485_s25 + $0x78] sm:$0xf]  ;;  %v186_v16 = vld [vmem:[%s5485_s25 + $0x80] sm:$0xf] }
  0x1b   : > { %167 = vst [vmem:[%s5490_s26 + $0x18] sm:$0xf] %v166_v6  ;;  %v188_v17 = vld [vmem:[%s5485_s25 + $0x88] sm:$0xf]  ;;  %v190_v18 = vld [vmem:[%s5485_s25 + $0x90] sm:$0xf] }
  0x1c   : > { %169 = vst [vmem:[%s5490_s26 + $0x1c] sm:$0xf] %v168_v7  ;;  %v192_v19 = vld [vmem:[%s5485_s25 + $0x98] sm:$0xf]  ;;  %v194_v20 = vld [vmem:[%s5485_s25 + $0xa0] sm:$0xf] }
  0x1d   : > { %171 = vst [vmem:[%s5490_s26 + $0x20] sm:$0xf] %v170_v8  ;;  %v196_v21 = vld [vmem:[%s5485_s25 + $0xa8] sm:$0xf]  ;;  %v198_v22 = vld [vmem:[%s5485_s25 + $0xb0] sm:$0xf] }
  0x1e   : > { %173 = vst [vmem:[%s5490_s26 + $0x24] sm:$0xf] %v172_v9  ;;  %v200_v23 = vld [vmem:[%s5485_s25 + $0xb8] sm:$0xf]  ;;  %v202_v24 = vld [vmem:[%s5485_s25 + $0xc0] sm:$0xf] }
  0x1f   : > { %175 = vst [vmem:[%s5490_s26 + $0x28] sm:$0xf] %v174_v10  ;;  %v204_v25 = vld [vmem:[%s5485_s25 + $0xc8] sm:$0xf]  ;;  %v206_v26 = vld [vmem:[%s5485_s25 + $0xd0] sm:$0xf] }
  0x20   : > { %177 = vst [vmem:[%s5490_s26 + $0x2c] sm:$0xf] %v176_v11  ;;  %v208_v27 = vld [vmem:[%s5485_s25 + $0xd8] sm:$0xf]  ;;  %v210_v28 = vld [vmem:[%s5485_s25 + $0xe0] sm:$0xf] }
  0x21   : > { %179 = vst [vmem:[%s5490_s26 + $0x30] sm:$0xf] %v178_v12  ;;  %v212_v29 = vld [vmem:[%s5485_s25 + $0xe8] sm:$0xf]  ;;  %v214_v30 = vld [vmem:[%s5485_s25 + $0xf0] sm:$0xf] }
  0x22   : > { %181 = vst [vmem:[%s5490_s26 + $0x34] sm:$0xf] %v180_v13  ;;  %v216_v31 = vld [vmem:[%s5485_s25 + $0xf8] sm:$0xf]  ;;  %v218_v32 = vld [vmem:[%s5485_s25 + $0x100] sm:$0xf] }
  0x23   : > { %183 = vst [vmem:[%s5490_s26 + $0x38] sm:$0xf] %v182_v14  ;;  %v220_v33 = vld [vmem:[%s5485_s25 + $0x108] sm:$0xf]  ;;  %v222_v34 = vld [vmem:[%s5485_s25 + $0x110] sm:$0xf] }
  0x24   : > { %185 = vst [vmem:[%s5490_s26 + $0x3c] sm:$0xf] %v184_v15  ;;  %v224_v35 = vld [vmem:[%s5485_s25 + $0x118] sm:$0xf]  ;;  %v226_v36 = vld [vmem:[%s5485_s25 + $0x120] sm:$0xf] }
  0x25   : > { %187 = vst [vmem:[%s5490_s26 + $0x40] sm:$0xf] %v186_v16  ;;  %v228_v37 = vld [vmem:[%s5485_s25 + $0x128] sm:$0xf]  ;;  %v230_v38 = vld [vmem:[%s5485_s25 + $0x130] sm:$0xf] }
  0x26   : > { %189 = vst [vmem:[%s5490_s26 + $0x44] sm:$0xf] %v188_v17  ;;  %v232_v39 = vld [vmem:[%s5485_s25 + $0x138] sm:$0xf]  ;;  %v234_v40 = vld [vmem:[%s5485_s25 + $0x140] sm:$0xf] }
  0x27   : > { %191 = vst [vmem:[%s5490_s26 + $0x48] sm:$0xf] %v190_v18  ;;  %v236_v41 = vld [vmem:[%s5485_s25 + $0x148] sm:$0xf]  ;;  %v238_v42 = vld [vmem:[%s5485_s25 + $0x150] sm:$0xf] }
  0x28   : > { %193 = vst [vmem:[%s5490_s26 + $0x4c] sm:$0xf] %v192_v19  ;;  %v240_v43 = vld [vmem:[%s5485_s25 + $0x158] sm:$0xf]  ;;  %v242_v44 = vld [vmem:[%s5485_s25 + $0x160] sm:$0xf] }
  0x29   : > { %195 = vst [vmem:[%s5490_s26 + $0x50] sm:$0xf] %v194_v20  ;;  %v244_v45 = vld [vmem:[%s5485_s25 + $0x168] sm:$0xf]  ;;  %v246_v46 = vld [vmem:[%s5485_s25 + $0x170] sm:$0xf] }
  0x2a   : > { %197 = vst [vmem:[%s5490_s26 + $0x54] sm:$0xf] %v196_v21  ;;  %v248_v47 = vld [vmem:[%s5485_s25 + $0x178] sm:$0xf]  ;;  %v250_v48 = vld [vmem:[%s5485_s25 + $0x180] sm:$0xf] }
  0x2b   : > { %199 = vst [vmem:[%s5490_s26 + $0x58] sm:$0xf] %v198_v22  ;;  %v252_v49 = vld [vmem:[%s5485_s25 + $0x188] sm:$0xf]  ;;  %v254_v50 = vld [vmem:[%s5485_s25 + $0x190] sm:$0xf] }
  0x2c   : > { %201 = vst [vmem:[%s5490_s26 + $0x5c] sm:$0xf] %v200_v23  ;;  %v256_v51 = vld [vmem:[%s5485_s25 + $0x198] sm:$0xf]  ;;  %v258_v52 = vld [vmem:[%s5485_s25 + $0x1a0] sm:$0xf] }
  0x2d   : > { %203 = vst [vmem:[%s5490_s26 + $0x60] sm:$0xf] %v202_v24  ;;  %v260_v53 = vld [vmem:[%s5485_s25 + $0x1a8] sm:$0xf]  ;;  %v262_v54 = vld [vmem:[%s5485_s25 + $0x1b0] sm:$0xf] }
  0x2e   : > { %205 = vst [vmem:[%s5490_s26 + $0x64] sm:$0xf] %v204_v25  ;;  %v264_v55 = vld [vmem:[%s5485_s25 + $0x1b8] sm:$0xf]  ;;  %v266_v56 = vld [vmem:[%s5485_s25 + $0x1c0] sm:$0xf] }
  0x2f   : > { %207 = vst [vmem:[%s5490_s26 + $0x68] sm:$0xf] %v206_v26  ;;  %v268_v57 = vld [vmem:[%s5485_s25 + $0x1c8] sm:$0xf]  ;;  %v270_v58 = vld [vmem:[%s5485_s25 + $0x1d0] sm:$0xf] }
  0x30   : > { %209 = vst [vmem:[%s5490_s26 + $0x6c] sm:$0xf] %v208_v27  ;;  %v272_v59 = vld [vmem:[%s5485_s25 + $0x1d8] sm:$0xf]  ;;  %v274_v60 = vld [vmem:[%s5485_s25 + $0x1e0] sm:$0xf] }
  0x31   : > { %211 = vst [vmem:[%s5490_s26 + $0x70] sm:$0xf] %v210_v28  ;;  %v276_v61 = vld [vmem:[%s5485_s25 + $0x1e8] sm:$0xf]  ;;  %v278_v62 = vld [vmem:[%s5485_s25 + $0x1f0] sm:$0xf] }
  0x32   : > { %213 = vst [vmem:[%s5490_s26 + $0x74] sm:$0xf] %v212_v29  ;;  %v280_v63 = vld [vmem:[%s5485_s25 + $0x1f8] sm:$0xf]  ;;  %v282_v0 = vld [vmem:[%s5485_s25 + $0x200] sm:$0xf] }
  0x33   : > { %215 = vst [vmem:[%s5490_s26 + $0x78] sm:$0xf] %v214_v30  ;;  %v284_v1 = vld [vmem:[%s5485_s25 + $0x208] sm:$0xf]  ;;  %v286_v2 = vld [vmem:[%s5485_s25 + $0x210] sm:$0xf] }
  0x34   : > { %217 = vst [vmem:[%s5490_s26 + $0x7c] sm:$0xf] %v216_v31  ;;  %v288_v3 = vld [vmem:[%s5485_s25 + $0x218] sm:$0xf]  ;;  %v290_v4 = vld [vmem:[%s5485_s25 + $0x220] sm:$0xf] }
  0x35   : > { %219 = vst [vmem:[%s5490_s26 + $0x80] sm:$0xf] %v218_v32  ;;  %v292_v5 = vld [vmem:[%s5485_s25 + $0x228] sm:$0xf]  ;;  %v294_v6 = vld [vmem:[%s5485_s25 + $0x230] sm:$0xf] }
  0x36   : > { %221 = vst [vmem:[%s5490_s26 + $0x84] sm:$0xf] %v220_v33  ;;  %v296_v7 = vld [vmem:[%s5485_s25 + $0x238] sm:$0xf]  ;;  %v298_v8 = vld [vmem:[%s5485_s25 + $0x240] sm:$0xf] }
  0x37   : > { %223 = vst [vmem:[%s5490_s26 + $0x88] sm:$0xf] %v222_v34  ;;  %v300_v9 = vld [vmem:[%s5485_s25 + $0x248] sm:$0xf]  ;;  %v302_v10 = vld [vmem:[%s5485_s25 + $0x250] sm:$0xf] }
  0x38   : > { %225 = vst [vmem:[%s5490_s26 + $0x8c] sm:$0xf] %v224_v35  ;;  %v304_v11 = vld [vmem:[%s5485_s25 + $0x258] sm:$0xf]  ;;  %v306_v12 = vld [vmem:[%s5485_s25 + $0x260] sm:$0xf] }
  0x39   : > { %227 = vst [vmem:[%s5490_s26 + $0x90] sm:$0xf] %v226_v36  ;;  %v308_v13 = vld [vmem:[%s5485_s25 + $0x268] sm:$0xf]  ;;  %v310_v14 = vld [vmem:[%s5485_s25 + $0x270] sm:$0xf] }
  0x3a   : > { %229 = vst [vmem:[%s5490_s26 + $0x94] sm:$0xf] %v228_v37  ;;  %v312_v15 = vld [vmem:[%s5485_s25 + $0x278] sm:$0xf]  ;;  %v314_v16 = vld [vmem:[%s5485_s25 + $0x280] sm:$0xf] }
  0x3b   : > { %231 = vst [vmem:[%s5490_s26 + $0x98] sm:$0xf] %v230_v38  ;;  %v316_v17 = vld [vmem:[%s5485_s25 + $0x288] sm:$0xf]  ;;  %v318_v18 = vld [vmem:[%s5485_s25 + $0x290] sm:$0xf] }
  0x3c   : > { %233 = vst [vmem:[%s5490_s26 + $0x9c] sm:$0xf] %v232_v39  ;;  %v320_v19 = vld [vmem:[%s5485_s25 + $0x298] sm:$0xf]  ;;  %v322_v20 = vld [vmem:[%s5485_s25 + $0x2a0] sm:$0xf] }
  0x3d   : > { %235 = vst [vmem:[%s5490_s26 + $0xa0] sm:$0xf] %v234_v40  ;;  %v324_v21 = vld [vmem:[%s5485_s25 + $0x2a8] sm:$0xf]  ;;  %v326_v22 = vld [vmem:[%s5485_s25 + $0x2b0] sm:$0xf] }
  0x3e   : > { %237 = vst [vmem:[%s5490_s26 + $0xa4] sm:$0xf] %v236_v41  ;;  %v328_v23 = vld [vmem:[%s5485_s25 + $0x2b8] sm:$0xf]  ;;  %v330_v24 = vld [vmem:[%s5485_s25 + $0x2c0] sm:$0xf] }
  0x3f   : > { %239 = vst [vmem:[%s5490_s26 + $0xa8] sm:$0xf] %v238_v42  ;;  %v332_v25 = vld [vmem:[%s5485_s25 + $0x2c8] sm:$0xf]  ;;  %v334_v26 = vld [vmem:[%s5485_s25 + $0x2d0] sm:$0xf] }
  0x40   : > { %241 = vst [vmem:[%s5490_s26 + $0xac] sm:$0xf] %v240_v43  ;;  %v336_v27 = vld [vmem:[%s5485_s25 + $0x2d8] sm:$0xf]  ;;  %v338_v28 = vld [vmem:[%s5485_s25 + $0x2e0] sm:$0xf] }
  0x41   : > { %243 = vst [vmem:[%s5490_s26 + $0xb0] sm:$0xf] %v242_v44  ;;  %v340_v29 = vld [vmem:[%s5485_s25 + $0x2e8] sm:$0xf]  ;;  %v342_v30 = vld [vmem:[%s5485_s25 + $0x2f0] sm:$0xf] }
  0x42   : > { %245 = vst [vmem:[%s5490_s26 + $0xb4] sm:$0xf] %v244_v45  ;;  %v344_v31 = vld [vmem:[%s5485_s25 + $0x2f8] sm:$0xf]  ;;  %v346_v32 = vld [vmem:[%s5485_s25 + $0x300] sm:$0xf] }
  0x43   : > { %247 = vst [vmem:[%s5490_s26 + $0xb8] sm:$0xf] %v246_v46  ;;  %v348_v33 = vld [vmem:[%s5485_s25 + $0x308] sm:$0xf]  ;;  %v350_v34 = vld [vmem:[%s5485_s25 + $0x310] sm:$0xf] }
  0x44   : > { %249 = vst [vmem:[%s5490_s26 + $0xbc] sm:$0xf] %v248_v47  ;;  %v352_v35 = vld [vmem:[%s5485_s25 + $0x318] sm:$0xf]  ;;  %v354_v36 = vld [vmem:[%s5485_s25 + $0x320] sm:$0xf] }
  0x45   : > { %251 = vst [vmem:[%s5490_s26 + $0xc0] sm:$0xf] %v250_v48  ;;  %v356_v37 = vld [vmem:[%s5485_s25 + $0x328] sm:$0xf]  ;;  %v358_v38 = vld [vmem:[%s5485_s25 + $0x330] sm:$0xf] }
  0x46   : > { %253 = vst [vmem:[%s5490_s26 + $0xc4] sm:$0xf] %v252_v49  ;;  %v360_v39 = vld [vmem:[%s5485_s25 + $0x338] sm:$0xf]  ;;  %v362_v40 = vld [vmem:[%s5485_s25 + $0x340] sm:$0xf] }
  0x47   : > { %255 = vst [vmem:[%s5490_s26 + $0xc8] sm:$0xf] %v254_v50  ;;  %v364_v41 = vld [vmem:[%s5485_s25 + $0x348] sm:$0xf]  ;;  %v366_v42 = vld [vmem:[%s5485_s25 + $0x350] sm:$0xf] }
  0x48   : > { %257 = vst [vmem:[%s5490_s26 + $0xcc] sm:$0xf] %v256_v51  ;;  %v368_v43 = vld [vmem:[%s5485_s25 + $0x358] sm:$0xf]  ;;  %v370_v44 = vld [vmem:[%s5485_s25 + $0x360] sm:$0xf] }
  0x49   : > { %259 = vst [vmem:[%s5490_s26 + $0xd0] sm:$0xf] %v258_v52  ;;  %v372_v45 = vld [vmem:[%s5485_s25 + $0x368] sm:$0xf]  ;;  %v374_v46 = vld [vmem:[%s5485_s25 + $0x370] sm:$0xf] }
  0x4a   : > { %261 = vst [vmem:[%s5490_s26 + $0xd4] sm:$0xf] %v260_v53  ;;  %v376_v47 = vld [vmem:[%s5485_s25 + $0x378] sm:$0xf]  ;;  %v378_v48 = vld [vmem:[%s5485_s25 + $0x380] sm:$0xf] }
  0x4b   : > { %263 = vst [vmem:[%s5490_s26 + $0xd8] sm:$0xf] %v262_v54  ;;  %v380_v49 = vld [vmem:[%s5485_s25 + $0x388] sm:$0xf]  ;;  %v382_v50 = vld [vmem:[%s5485_s25 + $0x390] sm:$0xf] }
  0x4c   : > { %265 = vst [vmem:[%s5490_s26 + $0xdc] sm:$0xf] %v264_v55  ;;  %v384_v51 = vld [vmem:[%s5485_s25 + $0x398] sm:$0xf]  ;;  %v386_v52 = vld [vmem:[%s5485_s25 + $0x3a0] sm:$0xf] }
  0x4d   : > { %267 = vst [vmem:[%s5490_s26 + $0xe0] sm:$0xf] %v266_v56  ;;  %v388_v53 = vld [vmem:[%s5485_s25 + $0x3a8] sm:$0xf]  ;;  %v390_v54 = vld [vmem:[%s5485_s25 + $0x3b0] sm:$0xf] }
  0x4e   : > { %269 = vst [vmem:[%s5490_s26 + $0xe4] sm:$0xf] %v268_v57  ;;  %v392_v55 = vld [vmem:[%s5485_s25 + $0x3b8] sm:$0xf]  ;;  %v394_v56 = vld [vmem:[%s5485_s25 + $0x3c0] sm:$0xf] }
  0x4f   : > { %271 = vst [vmem:[%s5490_s26 + $0xe8] sm:$0xf] %v270_v58  ;;  %v396_v57 = vld [vmem:[%s5485_s25 + $0x3c8] sm:$0xf]  ;;  %v398_v58 = vld [vmem:[%s5485_s25 + $0x3d0] sm:$0xf] }
  0x50   : > { %273 = vst [vmem:[%s5490_s26 + $0xec] sm:$0xf] %v272_v59  ;;  %v400_v59 = vld [vmem:[%s5485_s25 + $0x3d8] sm:$0xf] }
  0x51   : > { %275 = vst [vmem:[%s5490_s26 + $0xf0] sm:$0xf] %v274_v60  ;;  %v402_v60 = vld [vmem:[%s5485_s25 + $0x3e0] sm:$0xf] }
  0x52   : > { %277 = vst [vmem:[%s5490_s26 + $0xf4] sm:$0xf] %v276_v61  ;;  %v404_v61 = vld [vmem:[%s5485_s25 + $0x3e8] sm:$0xf] }
  0x53   : > { %279 = vst [vmem:[%s5490_s26 + $0xf8] sm:$0xf] %v278_v62  ;;  %v406_v62 = vld [vmem:[%s5485_s25 + $0x3f0] sm:$0xf] }
  0x54   : > { %281 = vst [vmem:[%s5490_s26 + $0xfc] sm:$0xf] %v280_v63  ;;  %v408_v63 = vld [vmem:[%s5485_s25 + $0x3f8] sm:$0xf] }
  0x55   : > { %283 = vst [vmem:[%s5490_s26 + $0x100] sm:$0xf] %v282_v0  ;;  %v410_v0 = vld [vmem:[%s5485_s25 + $0x400] sm:$0xf] }
  0x56   : > { %285 = vst [vmem:[%s5490_s26 + $0x104] sm:$0xf] %v284_v1  ;;  %v412_v1 = vld [vmem:[%s5485_s25 + $0x408] sm:$0xf] }
  0x57   : > { %287 = vst [vmem:[%s5490_s26 + $0x108] sm:$0xf] %v286_v2  ;;  %v414_v2 = vld [vmem:[%s5485_s25 + $0x410] sm:$0xf] }
  0x58   : > { %289 = vst [vmem:[%s5490_s26 + $0x10c] sm:$0xf] %v288_v3  ;;  %v416_v3 = vld [vmem:[%s5485_s25 + $0x418] sm:$0xf] }
  0x59   : > { %291 = vst [vmem:[%s5490_s26 + $0x110] sm:$0xf] %v290_v4  ;;  %v418_v4 = vld [vmem:[%s5485_s25 + $0x420] sm:$0xf] }
  0x5a   : > { %293 = vst [vmem:[%s5490_s26 + $0x114] sm:$0xf] %v292_v5  ;;  %v420_v5 = vld [vmem:[%s5485_s25 + $0x428] sm:$0xf] }
  0x5b   : > { %295 = vst [vmem:[%s5490_s26 + $0x118] sm:$0xf] %v294_v6  ;;  %v422_v6 = vld [vmem:[%s5485_s25 + $0x430] sm:$0xf] }
  0x5c   : > { %297 = vst [vmem:[%s5490_s26 + $0x11c] sm:$0xf] %v296_v7  ;;  %v424_v7 = vld [vmem:[%s5485_s25 + $0x438] sm:$0xf] }
  0x5d   : > { %299 = vst [vmem:[%s5490_s26 + $0x120] sm:$0xf] %v298_v8  ;;  %v426_v8 = vld [vmem:[%s5485_s25 + $0x440] sm:$0xf] }
  0x5e   : > { %301 = vst [vmem:[%s5490_s26 + $0x124] sm:$0xf] %v300_v9  ;;  %v428_v9 = vld [vmem:[%s5485_s25 + $0x448] sm:$0xf] }
  0x5f   : > { %303 = vst [vmem:[%s5490_s26 + $0x128] sm:$0xf] %v302_v10  ;;  %v430_v10 = vld [vmem:[%s5485_s25 + $0x450] sm:$0xf] }
  0x60   : > { %305 = vst [vmem:[%s5490_s26 + $0x12c] sm:$0xf] %v304_v11  ;;  %v432_v11 = vld [vmem:[%s5485_s25 + $0x458] sm:$0xf] }
  0x61   : > { %307 = vst [vmem:[%s5490_s26 + $0x130] sm:$0xf] %v306_v12  ;;  %v434_v12 = vld [vmem:[%s5485_s25 + $0x460] sm:$0xf] }
  0x62   : > { %309 = vst [vmem:[%s5490_s26 + $0x134] sm:$0xf] %v308_v13  ;;  %v436_v13 = vld [vmem:[%s5485_s25 + $0x468] sm:$0xf] }
  0x63   : > { %311 = vst [vmem:[%s5490_s26 + $0x138] sm:$0xf] %v310_v14  ;;  %v438_v14 = vld [vmem:[%s5485_s25 + $0x470] sm:$0xf] }
  0x64   : > { %313 = vst [vmem:[%s5490_s26 + $0x13c] sm:$0xf] %v312_v15  ;;  %v440_v15 = vld [vmem:[%s5485_s25 + $0x478] sm:$0xf] }
  0x65   : > { %315 = vst [vmem:[%s5490_s26 + $0x140] sm:$0xf] %v314_v16  ;;  %v442_v16 = vld [vmem:[%s5485_s25 + $0x480] sm:$0xf] }
  0x66   : > { %317 = vst [vmem:[%s5490_s26 + $0x144] sm:$0xf] %v316_v17  ;;  %v444_v17 = vld [vmem:[%s5485_s25 + $0x488] sm:$0xf] }
  0x67   : > { %319 = vst [vmem:[%s5490_s26 + $0x148] sm:$0xf] %v318_v18  ;;  %v446_v18 = vld [vmem:[%s5485_s25 + $0x490] sm:$0xf] }
  0x68   : > { %321 = vst [vmem:[%s5490_s26 + $0x14c] sm:$0xf] %v320_v19  ;;  %v448_v19 = vld [vmem:[%s5485_s25 + $0x498] sm:$0xf] }
  0x69   : > { %323 = vst [vmem:[%s5490_s26 + $0x150] sm:$0xf] %v322_v20  ;;  %v450_v20 = vld [vmem:[%s5485_s25 + $0x4a0] sm:$0xf] }
  0x6a   : > { %325 = vst [vmem:[%s5490_s26 + $0x154] sm:$0xf] %v324_v21  ;;  %v452_v21 = vld [vmem:[%s5485_s25 + $0x4a8] sm:$0xf] }
  0x6b   : > { %327 = vst [vmem:[%s5490_s26 + $0x158] sm:$0xf] %v326_v22  ;;  %v454_v22 = vld [vmem:[%s5485_s25 + $0x4b0] sm:$0xf] }
  0x6c   : > { %329 = vst [vmem:[%s5490_s26 + $0x15c] sm:$0xf] %v328_v23  ;;  %v456_v23 = vld [vmem:[%s5485_s25 + $0x4b8] sm:$0xf] }
  0x6d   : > { %331 = vst [vmem:[%s5490_s26 + $0x160] sm:$0xf] %v330_v24  ;;  %v458_v24 = vld [vmem:[%s5485_s25 + $0x4c0] sm:$0xf] }
  0x6e   : > { %333 = vst [vmem:[%s5490_s26 + $0x164] sm:$0xf] %v332_v25  ;;  %v460_v25 = vld [vmem:[%s5485_s25 + $0x4c8] sm:$0xf] }
  0x6f   : > { %335 = vst [vmem:[%s5490_s26 + $0x168] sm:$0xf] %v334_v26  ;;  %v462_v26 = vld [vmem:[%s5485_s25 + $0x4d0] sm:$0xf] }
  0x70   : > { %337 = vst [vmem:[%s5490_s26 + $0x16c] sm:$0xf] %v336_v27  ;;  %v464_v27 = vld [vmem:[%s5485_s25 + $0x4d8] sm:$0xf] }
  0x71   : > { %339 = vst [vmem:[%s5490_s26 + $0x170] sm:$0xf] %v338_v28  ;;  %v466_v28 = vld [vmem:[%s5485_s25 + $0x4e0] sm:$0xf] }
  0x72   : > { %341 = vst [vmem:[%s5490_s26 + $0x174] sm:$0xf] %v340_v29  ;;  %v468_v29 = vld [vmem:[%s5485_s25 + $0x4e8] sm:$0xf] }
  0x73   : > { %343 = vst [vmem:[%s5490_s26 + $0x178] sm:$0xf] %v342_v30  ;;  %v470_v30 = vld [vmem:[%s5485_s25 + $0x4f0] sm:$0xf] }
  0x74   : > { %345 = vst [vmem:[%s5490_s26 + $0x17c] sm:$0xf] %v344_v31  ;;  %v472_v31 = vld [vmem:[%s5485_s25 + $0x4f8] sm:$0xf] }
  0x75   : > { %347 = vst [vmem:[%s5490_s26 + $0x180] sm:$0xf] %v346_v32  ;;  %v474_v32 = vld [vmem:[%s5485_s25 + $0x500] sm:$0xf] }
  0x76   : > { %349 = vst [vmem:[%s5490_s26 + $0x184] sm:$0xf] %v348_v33  ;;  %v476_v33 = vld [vmem:[%s5485_s25 + $0x508] sm:$0xf] }
  0x77   : > { %351 = vst [vmem:[%s5490_s26 + $0x188] sm:$0xf] %v350_v34  ;;  %v478_v34 = vld [vmem:[%s5485_s25 + $0x510] sm:$0xf] }
  0x78   : > { %353 = vst [vmem:[%s5490_s26 + $0x18c] sm:$0xf] %v352_v35  ;;  %v480_v35 = vld [vmem:[%s5485_s25 + $0x518] sm:$0xf] }
  0x79   : > { %355 = vst [vmem:[%s5490_s26 + $0x190] sm:$0xf] %v354_v36  ;;  %v482_v36 = vld [vmem:[%s5485_s25 + $0x520] sm:$0xf] }
  0x7a   : > { %357 = vst [vmem:[%s5490_s26 + $0x194] sm:$0xf] %v356_v37  ;;  %v484_v37 = vld [vmem:[%s5485_s25 + $0x528] sm:$0xf] }
  0x7b   : > { %359 = vst [vmem:[%s5490_s26 + $0x198] sm:$0xf] %v358_v38  ;;  %v486_v38 = vld [vmem:[%s5485_s25 + $0x530] sm:$0xf] }
  0x7c   : > { %361 = vst [vmem:[%s5490_s26 + $0x19c] sm:$0xf] %v360_v39  ;;  %v488_v39 = vld [vmem:[%s5485_s25 + $0x538] sm:$0xf] }
  0x7d   : > { %363 = vst [vmem:[%s5490_s26 + $0x1a0] sm:$0xf] %v362_v40  ;;  %v490_v40 = vld [vmem:[%s5485_s25 + $0x540] sm:$0xf] }
  0x7e   : > { %365 = vst [vmem:[%s5490_s26 + $0x1a4] sm:$0xf] %v364_v41  ;;  %v492_v41 = vld [vmem:[%s5485_s25 + $0x548] sm:$0xf] }
  0x7f   : > { %367 = vst [vmem:[%s5490_s26 + $0x1a8] sm:$0xf] %v366_v42  ;;  %v494_v42 = vld [vmem:[%s5485_s25 + $0x550] sm:$0xf] }
  0x80   : > { %369 = vst [vmem:[%s5490_s26 + $0x1ac] sm:$0xf] %v368_v43  ;;  %v496_v43 = vld [vmem:[%s5485_s25 + $0x558] sm:$0xf] }
  0x81   : > { %371 = vst [vmem:[%s5490_s26 + $0x1b0] sm:$0xf] %v370_v44  ;;  %v498_v44 = vld [vmem:[%s5485_s25 + $0x560] sm:$0xf] }
  0x82   : > { %373 = vst [vmem:[%s5490_s26 + $0x1b4] sm:$0xf] %v372_v45  ;;  %v500_v45 = vld [vmem:[%s5485_s25 + $0x568] sm:$0xf] }
  0x83   : > { %375 = vst [vmem:[%s5490_s26 + $0x1b8] sm:$0xf] %v374_v46  ;;  %v502_v46 = vld [vmem:[%s5485_s25 + $0x570] sm:$0xf] }
  0x84   : > { %377 = vst [vmem:[%s5490_s26 + $0x1bc] sm:$0xf] %v376_v47  ;;  %v504_v47 = vld [vmem:[%s5485_s25 + $0x578] sm:$0xf] }
  0x85   : > { %379 = vst [vmem:[%s5490_s26 + $0x1c0] sm:$0xf] %v378_v48  ;;  %v506_v48 = vld [vmem:[%s5485_s25 + $0x580] sm:$0xf] }
  0x86   : > { %381 = vst [vmem:[%s5490_s26 + $0x1c4] sm:$0xf] %v380_v49  ;;  %v508_v49 = vld [vmem:[%s5485_s25 + $0x588] sm:$0xf] }
  0x87   : > { %383 = vst [vmem:[%s5490_s26 + $0x1c8] sm:$0xf] %v382_v50  ;;  %v510_v50 = vld [vmem:[%s5485_s25 + $0x590] sm:$0xf] }
  0x88   : > { %385 = vst [vmem:[%s5490_s26 + $0x1cc] sm:$0xf] %v384_v51  ;;  %v512_v51 = vld [vmem:[%s5485_s25 + $0x598] sm:$0xf] }
  0x89   : > { %387 = vst [vmem:[%s5490_s26 + $0x1d0] sm:$0xf] %v386_v52  ;;  %v514_v52 = vld [vmem:[%s5485_s25 + $0x5a0] sm:$0xf] }
  0x8a   : > { %389 = vst [vmem:[%s5490_s26 + $0x1d4] sm:$0xf] %v388_v53  ;;  %v516_v53 = vld [vmem:[%s5485_s25 + $0x5a8] sm:$0xf] }
  0x8b   : > { %391 = vst [vmem:[%s5490_s26 + $0x1d8] sm:$0xf] %v390_v54  ;;  %v518_v54 = vld [vmem:[%s5485_s25 + $0x5b0] sm:$0xf] }
  0x8c   : > { %393 = vst [vmem:[%s5490_s26 + $0x1dc] sm:$0xf] %v392_v55  ;;  %v520_v55 = vld [vmem:[%s5485_s25 + $0x5b8] sm:$0xf] }
  0x8d   : > { %395 = vst [vmem:[%s5490_s26 + $0x1e0] sm:$0xf] %v394_v56  ;;  %v522_v56 = vld [vmem:[%s5485_s25 + $0x5c0] sm:$0xf] }
  0x8e   : > { %397 = vst [vmem:[%s5490_s26 + $0x1e4] sm:$0xf] %v396_v57  ;;  %v524_v57 = vld [vmem:[%s5485_s25 + $0x5c8] sm:$0xf] }
  0x8f   : > { %399 = vst [vmem:[%s5490_s26 + $0x1e8] sm:$0xf] %v398_v58  ;;  %v526_v58 = vld [vmem:[%s5485_s25 + $0x5d0] sm:$0xf] }
  0x90   : > { %401 = vst [vmem:[%s5490_s26 + $0x1ec] sm:$0xf] %v400_v59  ;;  %v528_v59 = vld [vmem:[%s5485_s25 + $0x5d8] sm:$0xf] }
  0x91   : > { %403 = vst [vmem:[%s5490_s26 + $0x1f0] sm:$0xf] %v402_v60  ;;  %v530_v60 = vld [vmem:[%s5485_s25 + $0x5e0] sm:$0xf] }
  0x92   : > { %405 = vst [vmem:[%s5490_s26 + $0x1f4] sm:$0xf] %v404_v61  ;;  %v532_v61 = vld [vmem:[%s5485_s25 + $0x5e8] sm:$0xf] }
  0x93   : > { %407 = vst [vmem:[%s5490_s26 + $0x1f8] sm:$0xf] %v406_v62  ;;  %v534_v62 = vld [vmem:[%s5485_s25 + $0x5f0] sm:$0xf] }
  0x94   : > { %409 = vst [vmem:[%s5490_s26 + $0x1fc] sm:$0xf] %v408_v63  ;;  %v536_v63 = vld [vmem:[%s5485_s25 + $0x5f8] sm:$0xf] }
  0x95   : > { %411 = vst [vmem:[%s5490_s26 + $0x200] sm:$0xf] %v410_v0  ;;  %v538_v0 = vld [vmem:[%s5485_s25 + $0x600] sm:$0xf] }
  0x96   : > { %413 = vst [vmem:[%s5490_s26 + $0x204] sm:$0xf] %v412_v1  ;;  %v540_v1 = vld [vmem:[%s5485_s25 + $0x608] sm:$0xf] }
  0x97   : > { %415 = vst [vmem:[%s5490_s26 + $0x208] sm:$0xf] %v414_v2  ;;  %v542_v2 = vld [vmem:[%s5485_s25 + $0x610] sm:$0xf] }
  0x98   : > { %417 = vst [vmem:[%s5490_s26 + $0x20c] sm:$0xf] %v416_v3  ;;  %v544_v3 = vld [vmem:[%s5485_s25 + $0x618] sm:$0xf] }
  0x99   : > { %419 = vst [vmem:[%s5490_s26 + $0x210] sm:$0xf] %v418_v4  ;;  %v546_v4 = vld [vmem:[%s5485_s25 + $0x620] sm:$0xf] }
  0x9a   : > { %421 = vst [vmem:[%s5490_s26 + $0x214] sm:$0xf] %v420_v5  ;;  %v548_v5 = vld [vmem:[%s5485_s25 + $0x628] sm:$0xf] }
  0x9b   : > { %423 = vst [vmem:[%s5490_s26 + $0x218] sm:$0xf] %v422_v6  ;;  %v550_v6 = vld [vmem:[%s5485_s25 + $0x630] sm:$0xf] }
  0x9c   : > { %425 = vst [vmem:[%s5490_s26 + $0x21c] sm:$0xf] %v424_v7  ;;  %v552_v7 = vld [vmem:[%s5485_s25 + $0x638] sm:$0xf] }
  0x9d   : > { %427 = vst [vmem:[%s5490_s26 + $0x220] sm:$0xf] %v426_v8  ;;  %v554_v8 = vld [vmem:[%s5485_s25 + $0x640] sm:$0xf] }
  0x9e   : > { %429 = vst [vmem:[%s5490_s26 + $0x224] sm:$0xf] %v428_v9  ;;  %v556_v9 = vld [vmem:[%s5485_s25 + $0x648] sm:$0xf] }
  0x9f   : > { %431 = vst [vmem:[%s5490_s26 + $0x228] sm:$0xf] %v430_v10  ;;  %v558_v10 = vld [vmem:[%s5485_s25 + $0x650] sm:$0xf] }
  0xa0   : > { %433 = vst [vmem:[%s5490_s26 + $0x22c] sm:$0xf] %v432_v11  ;;  %v560_v11 = vld [vmem:[%s5485_s25 + $0x658] sm:$0xf] }
  0xa1   : > { %435 = vst [vmem:[%s5490_s26 + $0x230] sm:$0xf] %v434_v12  ;;  %v562_v12 = vld [vmem:[%s5485_s25 + $0x660] sm:$0xf] }
  0xa2   : > { %437 = vst [vmem:[%s5490_s26 + $0x234] sm:$0xf] %v436_v13  ;;  %v564_v13 = vld [vmem:[%s5485_s25 + $0x668] sm:$0xf] }
  0xa3   : > { %439 = vst [vmem:[%s5490_s26 + $0x238] sm:$0xf] %v438_v14  ;;  %v566_v14 = vld [vmem:[%s5485_s25 + $0x670] sm:$0xf] }
  0xa4   : > { %441 = vst [vmem:[%s5490_s26 + $0x23c] sm:$0xf] %v440_v15  ;;  %v568_v15 = vld [vmem:[%s5485_s25 + $0x678] sm:$0xf] }
  0xa5   : > { %443 = vst [vmem:[%s5490_s26 + $0x240] sm:$0xf] %v442_v16  ;;  %v570_v16 = vld [vmem:[%s5485_s25 + $0x680] sm:$0xf] }
  0xa6   : > { %445 = vst [vmem:[%s5490_s26 + $0x244] sm:$0xf] %v444_v17  ;;  %v572_v17 = vld [vmem:[%s5485_s25 + $0x688] sm:$0xf] }
  0xa7   : > { %447 = vst [vmem:[%s5490_s26 + $0x248] sm:$0xf] %v446_v18  ;;  %v574_v18 = vld [vmem:[%s5485_s25 + $0x690] sm:$0xf] }
  0xa8   : > { %449 = vst [vmem:[%s5490_s26 + $0x24c] sm:$0xf] %v448_v19  ;;  %v576_v19 = vld [vmem:[%s5485_s25 + $0x698] sm:$0xf] }
  0xa9   : > { %451 = vst [vmem:[%s5490_s26 + $0x250] sm:$0xf] %v450_v20  ;;  %v578_v20 = vld [vmem:[%s5485_s25 + $0x6a0] sm:$0xf] }
  0xaa   : > { %453 = vst [vmem:[%s5490_s26 + $0x254] sm:$0xf] %v452_v21  ;;  %v580_v21 = vld [vmem:[%s5485_s25 + $0x6a8] sm:$0xf] }
  0xab   : > { %455 = vst [vmem:[%s5490_s26 + $0x258] sm:$0xf] %v454_v22  ;;  %v582_v22 = vld [vmem:[%s5485_s25 + $0x6b0] sm:$0xf] }
  0xac   : > { %457 = vst [vmem:[%s5490_s26 + $0x25c] sm:$0xf] %v456_v23  ;;  %v584_v23 = vld [vmem:[%s5485_s25 + $0x6b8] sm:$0xf] }
  0xad   : > { %459 = vst [vmem:[%s5490_s26 + $0x260] sm:$0xf] %v458_v24  ;;  %v586_v24 = vld [vmem:[%s5485_s25 + $0x6c0] sm:$0xf] }
  0xae   : > { %461 = vst [vmem:[%s5490_s26 + $0x264] sm:$0xf] %v460_v25  ;;  %v588_v25 = vld [vmem:[%s5485_s25 + $0x6c8] sm:$0xf] }
  0xaf   : > { %463 = vst [vmem:[%s5490_s26 + $0x268] sm:$0xf] %v462_v26  ;;  %v590_v26 = vld [vmem:[%s5485_s25 + $0x6d0] sm:$0xf] }
  0xb0   : > { %465 = vst [vmem:[%s5490_s26 + $0x26c] sm:$0xf] %v464_v27  ;;  %v592_v27 = vld [vmem:[%s5485_s25 + $0x6d8] sm:$0xf] }
  0xb1   : > { %467 = vst [vmem:[%s5490_s26 + $0x270] sm:$0xf] %v466_v28  ;;  %v594_v28 = vld [vmem:[%s5485_s25 + $0x6e0] sm:$0xf] }
  0xb2   : > { %469 = vst [vmem:[%s5490_s26 + $0x274] sm:$0xf] %v468_v29  ;;  %v596_v29 = vld [vmem:[%s5485_s25 + $0x6e8] sm:$0xf] }
  0xb3   : > { %471 = vst [vmem:[%s5490_s26 + $0x278] sm:$0xf] %v470_v30  ;;  %v598_v30 = vld [vmem:[%s5485_s25 + $0x6f0] sm:$0xf] }
  0xb4   : > { %473 = vst [vmem:[%s5490_s26 + $0x27c] sm:$0xf] %v472_v31  ;;  %v600_v31 = vld [vmem:[%s5485_s25 + $0x6f8] sm:$0xf] }
  0xb5   : > { %475 = vst [vmem:[%s5490_s26 + $0x280] sm:$0xf] %v474_v32  ;;  %v602_v32 = vld [vmem:[%s5485_s25 + $0x700] sm:$0xf] }
  0xb6   : > { %477 = vst [vmem:[%s5490_s26 + $0x284] sm:$0xf] %v476_v33  ;;  %v604_v33 = vld [vmem:[%s5485_s25 + $0x708] sm:$0xf] }
  0xb7   : > { %479 = vst [vmem:[%s5490_s26 + $0x288] sm:$0xf] %v478_v34  ;;  %v606_v34 = vld [vmem:[%s5485_s25 + $0x710] sm:$0xf] }
  0xb8   : > { %481 = vst [vmem:[%s5490_s26 + $0x28c] sm:$0xf] %v480_v35  ;;  %v608_v35 = vld [vmem:[%s5485_s25 + $0x718] sm:$0xf] }
  0xb9   : > { %483 = vst [vmem:[%s5490_s26 + $0x290] sm:$0xf] %v482_v36  ;;  %v610_v36 = vld [vmem:[%s5485_s25 + $0x720] sm:$0xf] }
  0xba   : > { %485 = vst [vmem:[%s5490_s26 + $0x294] sm:$0xf] %v484_v37  ;;  %v612_v37 = vld [vmem:[%s5485_s25 + $0x728] sm:$0xf] }
  0xbb   : > { %487 = vst [vmem:[%s5490_s26 + $0x298] sm:$0xf] %v486_v38  ;;  %v614_v38 = vld [vmem:[%s5485_s25 + $0x730] sm:$0xf] }
  0xbc   : > { %489 = vst [vmem:[%s5490_s26 + $0x29c] sm:$0xf] %v488_v39  ;;  %v616_v39 = vld [vmem:[%s5485_s25 + $0x738] sm:$0xf] }
  0xbd   : > { %491 = vst [vmem:[%s5490_s26 + $0x2a0] sm:$0xf] %v490_v40  ;;  %v618_v40 = vld [vmem:[%s5485_s25 + $0x740] sm:$0xf] }
  0xbe   : > { %493 = vst [vmem:[%s5490_s26 + $0x2a4] sm:$0xf] %v492_v41  ;;  %v620_v41 = vld [vmem:[%s5485_s25 + $0x748] sm:$0xf] }
  0xbf   : > { %495 = vst [vmem:[%s5490_s26 + $0x2a8] sm:$0xf] %v494_v42  ;;  %v622_v42 = vld [vmem:[%s5485_s25 + $0x750] sm:$0xf] }
  0xc0   : > { %497 = vst [vmem:[%s5490_s26 + $0x2ac] sm:$0xf] %v496_v43  ;;  %v624_v43 = vld [vmem:[%s5485_s25 + $0x758] sm:$0xf] }
  0xc1   : > { %499 = vst [vmem:[%s5490_s26 + $0x2b0] sm:$0xf] %v498_v44  ;;  %v626_v44 = vld [vmem:[%s5485_s25 + $0x760] sm:$0xf] }
  0xc2   : > { %501 = vst [vmem:[%s5490_s26 + $0x2b4] sm:$0xf] %v500_v45  ;;  %v628_v45 = vld [vmem:[%s5485_s25 + $0x768] sm:$0xf] }
  0xc3   : > { %503 = vst [vmem:[%s5490_s26 + $0x2b8] sm:$0xf] %v502_v46  ;;  %v630_v46 = vld [vmem:[%s5485_s25 + $0x770] sm:$0xf] }
  0xc4   : > { %505 = vst [vmem:[%s5490_s26 + $0x2bc] sm:$0xf] %v504_v47  ;;  %v632_v47 = vld [vmem:[%s5485_s25 + $0x778] sm:$0xf] }
  0xc5   : > { %507 = vst [vmem:[%s5490_s26 + $0x2c0] sm:$0xf] %v506_v48  ;;  %v634_v48 = vld [vmem:[%s5485_s25 + $0x780] sm:$0xf] }
  0xc6   : > { %509 = vst [vmem:[%s5490_s26 + $0x2c4] sm:$0xf] %v508_v49  ;;  %v636_v49 = vld [vmem:[%s5485_s25 + $0x788] sm:$0xf] }
  0xc7   : > { %511 = vst [vmem:[%s5490_s26 + $0x2c8] sm:$0xf] %v510_v50  ;;  %v638_v50 = vld [vmem:[%s5485_s25 + $0x790] sm:$0xf] }
  0xc8   : > { %513 = vst [vmem:[%s5490_s26 + $0x2cc] sm:$0xf] %v512_v51  ;;  %v640_v51 = vld [vmem:[%s5485_s25 + $0x798] sm:$0xf] }
  0xc9   : > { %515 = vst [vmem:[%s5490_s26 + $0x2d0] sm:$0xf] %v514_v52  ;;  %v642_v52 = vld [vmem:[%s5485_s25 + $0x7a0] sm:$0xf] }
  0xca   : > { %517 = vst [vmem:[%s5490_s26 + $0x2d4] sm:$0xf] %v516_v53  ;;  %v644_v53 = vld [vmem:[%s5485_s25 + $0x7a8] sm:$0xf] }
  0xcb   : > { %519 = vst [vmem:[%s5490_s26 + $0x2d8] sm:$0xf] %v518_v54  ;;  %v646_v54 = vld [vmem:[%s5485_s25 + $0x7b0] sm:$0xf] }
  0xcc   : > { %521 = vst [vmem:[%s5490_s26 + $0x2dc] sm:$0xf] %v520_v55  ;;  %v648_v55 = vld [vmem:[%s5485_s25 + $0x7b8] sm:$0xf] }
  0xcd   : > { %523 = vst [vmem:[%s5490_s26 + $0x2e0] sm:$0xf] %v522_v56  ;;  %v650_v56 = vld [vmem:[%s5485_s25 + $0x7c0] sm:$0xf] }
  0xce   : > { %525 = vst [vmem:[%s5490_s26 + $0x2e4] sm:$0xf] %v524_v57  ;;  %v652_v57 = vld [vmem:[%s5485_s25 + $0x7c8] sm:$0xf] }
  0xcf   : > { %527 = vst [vmem:[%s5490_s26 + $0x2e8] sm:$0xf] %v526_v58  ;;  %v654_v58 = vld [vmem:[%s5485_s25 + $0x7d0] sm:$0xf] }
  0xd0   : > { %529 = vst [vmem:[%s5490_s26 + $0x2ec] sm:$0xf] %v528_v59  ;;  %v656_v59 = vld [vmem:[%s5485_s25 + $0x7d8] sm:$0xf] }
  0xd1   : > { %531 = vst [vmem:[%s5490_s26 + $0x2f0] sm:$0xf] %v530_v60  ;;  %v658_v60 = vld [vmem:[%s5485_s25 + $0x7e0] sm:$0xf] }
  0xd2   : > { %533 = vst [vmem:[%s5490_s26 + $0x2f4] sm:$0xf] %v532_v61  ;;  %v660_v61 = vld [vmem:[%s5485_s25 + $0x7e8] sm:$0xf] }
  0xd3   : > { %535 = vst [vmem:[%s5490_s26 + $0x2f8] sm:$0xf] %v534_v62  ;;  %v662_v62 = vld [vmem:[%s5485_s25 + $0x7f0] sm:$0xf] }
  0xd4   : > { %537 = vst [vmem:[%s5490_s26 + $0x2fc] sm:$0xf] %v536_v63  ;;  %v664_v63 = vld [vmem:[%s5485_s25 + $0x7f8] sm:$0xf] }
  0xd5   : > { %539 = vst [vmem:[%s5490_s26 + $0x300] sm:$0xf] %v538_v0  ;;  %v666_v0 = vld [vmem:[%s5485_s25 + $0x800] sm:$0xf] }
  0xd6   : > { %541 = vst [vmem:[%s5490_s26 + $0x304] sm:$0xf] %v540_v1  ;;  %v668_v1 = vld [vmem:[%s5485_s25 + $0x808] sm:$0xf] }
  0xd7   : > { %543 = vst [vmem:[%s5490_s26 + $0x308] sm:$0xf] %v542_v2  ;;  %v670_v2 = vld [vmem:[%s5485_s25 + $0x810] sm:$0xf] }
  0xd8   : > { %545 = vst [vmem:[%s5490_s26 + $0x30c] sm:$0xf] %v544_v3  ;;  %v672_v3 = vld [vmem:[%s5485_s25 + $0x818] sm:$0xf] }
  0xd9   : > { %547 = vst [vmem:[%s5490_s26 + $0x310] sm:$0xf] %v546_v4  ;;  %v674_v4 = vld [vmem:[%s5485_s25 + $0x820] sm:$0xf] }
  0xda   : > { %549 = vst [vmem:[%s5490_s26 + $0x314] sm:$0xf] %v548_v5  ;;  %v676_v5 = vld [vmem:[%s5485_s25 + $0x828] sm:$0xf] }
  0xdb   : > { %551 = vst [vmem:[%s5490_s26 + $0x318] sm:$0xf] %v550_v6  ;;  %v678_v6 = vld [vmem:[%s5485_s25 + $0x830] sm:$0xf] }
  0xdc   : > { %553 = vst [vmem:[%s5490_s26 + $0x31c] sm:$0xf] %v552_v7  ;;  %v680_v7 = vld [vmem:[%s5485_s25 + $0x838] sm:$0xf] }
  0xdd   : > { %555 = vst [vmem:[%s5490_s26 + $0x320] sm:$0xf] %v554_v8  ;;  %v682_v8 = vld [vmem:[%s5485_s25 + $0x840] sm:$0xf] }
  0xde   : > { %557 = vst [vmem:[%s5490_s26 + $0x324] sm:$0xf] %v556_v9  ;;  %v684_v9 = vld [vmem:[%s5485_s25 + $0x848] sm:$0xf] }
  0xdf   : > { %559 = vst [vmem:[%s5490_s26 + $0x328] sm:$0xf] %v558_v10  ;;  %v686_v10 = vld [vmem:[%s5485_s25 + $0x850] sm:$0xf] }
  0xe0   : > { %561 = vst [vmem:[%s5490_s26 + $0x32c] sm:$0xf] %v560_v11  ;;  %v688_v11 = vld [vmem:[%s5485_s25 + $0x858] sm:$0xf] }
  0xe1   : > { %563 = vst [vmem:[%s5490_s26 + $0x330] sm:$0xf] %v562_v12  ;;  %v690_v12 = vld [vmem:[%s5485_s25 + $0x860] sm:$0xf] }
  0xe2   : > { %565 = vst [vmem:[%s5490_s26 + $0x334] sm:$0xf] %v564_v13  ;;  %v692_v13 = vld [vmem:[%s5485_s25 + $0x868] sm:$0xf] }
  0xe3   : > { %567 = vst [vmem:[%s5490_s26 + $0x338] sm:$0xf] %v566_v14  ;;  %v694_v14 = vld [vmem:[%s5485_s25 + $0x870] sm:$0xf] }
  0xe4   : > { %569 = vst [vmem:[%s5490_s26 + $0x33c] sm:$0xf] %v568_v15  ;;  %v696_v15 = vld [vmem:[%s5485_s25 + $0x878] sm:$0xf] }
  0xe5   : > { %571 = vst [vmem:[%s5490_s26 + $0x340] sm:$0xf] %v570_v16  ;;  %v698_v16 = vld [vmem:[%s5485_s25 + $0x880] sm:$0xf] }
  0xe6   : > { %573 = vst [vmem:[%s5490_s26 + $0x344] sm:$0xf] %v572_v17  ;;  %v700_v17 = vld [vmem:[%s5485_s25 + $0x888] sm:$0xf] }
  0xe7   : > { %575 = vst [vmem:[%s5490_s26 + $0x348] sm:$0xf] %v574_v18  ;;  %v702_v18 = vld [vmem:[%s5485_s25 + $0x890] sm:$0xf] }
  0xe8   : > { %577 = vst [vmem:[%s5490_s26 + $0x34c] sm:$0xf] %v576_v19  ;;  %v704_v19 = vld [vmem:[%s5485_s25 + $0x898] sm:$0xf] }
  0xe9   : > { %579 = vst [vmem:[%s5490_s26 + $0x350] sm:$0xf] %v578_v20  ;;  %v706_v20 = vld [vmem:[%s5485_s25 + $0x8a0] sm:$0xf] }
  0xea   : > { %581 = vst [vmem:[%s5490_s26 + $0x354] sm:$0xf] %v580_v21  ;;  %v708_v21 = vld [vmem:[%s5485_s25 + $0x8a8] sm:$0xf] }
  0xeb   : > { %583 = vst [vmem:[%s5490_s26 + $0x358] sm:$0xf] %v582_v22  ;;  %v710_v22 = vld [vmem:[%s5485_s25 + $0x8b0] sm:$0xf] }
  0xec   : > { %585 = vst [vmem:[%s5490_s26 + $0x35c] sm:$0xf] %v584_v23  ;;  %v712_v23 = vld [vmem:[%s5485_s25 + $0x8b8] sm:$0xf] }
  0xed   : > { %587 = vst [vmem:[%s5490_s26 + $0x360] sm:$0xf] %v586_v24  ;;  %v714_v24 = vld [vmem:[%s5485_s25 + $0x8c0] sm:$0xf] }
  0xee   : > { %589 = vst [vmem:[%s5490_s26 + $0x364] sm:$0xf] %v588_v25  ;;  %v716_v25 = vld [vmem:[%s5485_s25 + $0x8c8] sm:$0xf] }
  0xef   : > { %591 = vst [vmem:[%s5490_s26 + $0x368] sm:$0xf] %v590_v26  ;;  %v718_v26 = vld [vmem:[%s5485_s25 + $0x8d0] sm:$0xf] }
  0xf0   : > { %593 = vst [vmem:[%s5490_s26 + $0x36c] sm:$0xf] %v592_v27  ;;  %v720_v27 = vld [vmem:[%s5485_s25 + $0x8d8] sm:$0xf] }
  0xf1   : > { %595 = vst [vmem:[%s5490_s26 + $0x370] sm:$0xf] %v594_v28  ;;  %v722_v28 = vld [vmem:[%s5485_s25 + $0x8e0] sm:$0xf] }
  0xf2   : > { %597 = vst [vmem:[%s5490_s26 + $0x374] sm:$0xf] %v596_v29  ;;  %v724_v29 = vld [vmem:[%s5485_s25 + $0x8e8] sm:$0xf] }
  0xf3   : > { %599 = vst [vmem:[%s5490_s26 + $0x378] sm:$0xf] %v598_v30  ;;  %v726_v30 = vld [vmem:[%s5485_s25 + $0x8f0] sm:$0xf] }
  0xf4   : > { %601 = vst [vmem:[%s5490_s26 + $0x37c] sm:$0xf] %v600_v31  ;;  %v728_v31 = vld [vmem:[%s5485_s25 + $0x8f8] sm:$0xf] }
  0xf5   : > { %603 = vst [vmem:[%s5490_s26 + $0x380] sm:$0xf] %v602_v32 }
  0xf6   : > { %605 = vst [vmem:[%s5490_s26 + $0x384] sm:$0xf] %v604_v33 }
  0xf7   : > { %607 = vst [vmem:[%s5490_s26 + $0x388] sm:$0xf] %v606_v34 }
  0xf8   : > { %609 = vst [vmem:[%s5490_s26 + $0x38c] sm:$0xf] %v608_v35 }
  0xf9   : > { %611 = vst [vmem:[%s5490_s26 + $0x390] sm:$0xf] %v610_v36 }
  0xfa   : > { %613 = vst [vmem:[%s5490_s26 + $0x394] sm:$0xf] %v612_v37 }
  0xfb   : > { %615 = vst [vmem:[%s5490_s26 + $0x398] sm:$0xf] %v614_v38 }
  0xfc   : > { %617 = vst [vmem:[%s5490_s26 + $0x39c] sm:$0xf] %v616_v39 }
  0xfd   : > { %619 = vst [vmem:[%s5490_s26 + $0x3a0] sm:$0xf] %v618_v40 }
  0xfe   : > { %621 = vst [vmem:[%s5490_s26 + $0x3a4] sm:$0xf] %v620_v41 }
  0xff   : > { %623 = vst [vmem:[%s5490_s26 + $0x3a8] sm:$0xf] %v622_v42 }
 0x100   : > { %625 = vst [vmem:[%s5490_s26 + $0x3ac] sm:$0xf] %v624_v43 }
 0x101   : > { %627 = vst [vmem:[%s5490_s26 + $0x3b0] sm:$0xf] %v626_v44 }
 0x102   : > { %629 = vst [vmem:[%s5490_s26 + $0x3b4] sm:$0xf] %v628_v45 }
 0x103   : > { %631 = vst [vmem:[%s5490_s26 + $0x3b8] sm:$0xf] %v630_v46 }
 0x104   : > { %633 = vst [vmem:[%s5490_s26 + $0x3bc] sm:$0xf] %v632_v47 }
 0x105   : > { %635 = vst [vmem:[%s5490_s26 + $0x3c0] sm:$0xf] %v634_v48 }
 0x106   : > { %637 = vst [vmem:[%s5490_s26 + $0x3c4] sm:$0xf] %v636_v49 }
 0x107   : > { %639 = vst [vmem:[%s5490_s26 + $0x3c8] sm:$0xf] %v638_v50 }
 0x108   : > { %641 = vst [vmem:[%s5490_s26 + $0x3cc] sm:$0xf] %v640_v51 }
 0x109   : > { %643 = vst [vmem:[%s5490_s26 + $0x3d0] sm:$0xf] %v642_v52 }
 0x10a   : > { %645 = vst [vmem:[%s5490_s26 + $0x3d4] sm:$0xf] %v644_v53 }
 0x10b   : > { %647 = vst [vmem:[%s5490_s26 + $0x3d8] sm:$0xf] %v646_v54 }
 0x10c   : > { %649 = vst [vmem:[%s5490_s26 + $0x3dc] sm:$0xf] %v648_v55 }
 0x10d   : > { %651 = vst [vmem:[%s5490_s26 + $0x3e0] sm:$0xf] %v650_v56 }
 0x10e   : > { %653 = vst [vmem:[%s5490_s26 + $0x3e4] sm:$0xf] %v652_v57 }
 0x10f   : > { %655 = vst [vmem:[%s5490_s26 + $0x3e8] sm:$0xf] %v654_v58 }
 0x110   : > { %657 = vst [vmem:[%s5490_s26 + $0x3ec] sm:$0xf] %v656_v59 }
 0x111   : > { %659 = vst [vmem:[%s5490_s26 + $0x3f0] sm:$0xf] %v658_v60 }
 0x112   : > { %661 = vst [vmem:[%s5490_s26 + $0x3f4] sm:$0xf] %v660_v61 }
 0x113   : > { %663 = vst [vmem:[%s5490_s26 + $0x3f8] sm:$0xf] %v662_v62 }
 0x114   : > { %665 = vst [vmem:[%s5490_s26 + $0x3fc] sm:$0xf] %v664_v63 }
 0x115   : > { %667 = vst [vmem:[%s5490_s26 + $0x400] sm:$0xf] %v666_v0 }
 0x116   : > { %669 = vst [vmem:[%s5490_s26 + $0x404] sm:$0xf] %v668_v1 }
 0x117   : > { %671 = vst [vmem:[%s5490_s26 + $0x408] sm:$0xf] %v670_v2 }
 0x118   : > { %673 = vst [vmem:[%s5490_s26 + $0x40c] sm:$0xf] %v672_v3 }
 0x119   : > { %675 = vst [vmem:[%s5490_s26 + $0x410] sm:$0xf] %v674_v4 }
 0x11a   : > { %677 = vst [vmem:[%s5490_s26 + $0x414] sm:$0xf] %v676_v5 }
 0x11b   : > { %679 = vst [vmem:[%s5490_s26 + $0x418] sm:$0xf] %v678_v6 }
 0x11c   : > { %681 = vst [vmem:[%s5490_s26 + $0x41c] sm:$0xf] %v680_v7 }
 0x11d   : > { %683 = vst [vmem:[%s5490_s26 + $0x420] sm:$0xf] %v682_v8 }
 0x11e   : > { %685 = vst [vmem:[%s5490_s26 + $0x424] sm:$0xf] %v684_v9 }
 0x11f   : > { %687 = vst [vmem:[%s5490_s26 + $0x428] sm:$0xf] %v686_v10 }
 0x120   : > { %689 = vst [vmem:[%s5490_s26 + $0x42c] sm:$0xf] %v688_v11 }
 0x121   : > { %691 = vst [vmem:[%s5490_s26 + $0x430] sm:$0xf] %v690_v12 }
 0x122   : > { %693 = vst [vmem:[%s5490_s26 + $0x434] sm:$0xf] %v692_v13 }
 0x123   : > { %695 = vst [vmem:[%s5490_s26 + $0x438] sm:$0xf] %v694_v14 }
 0x124   : > { %697 = vst [vmem:[%s5490_s26 + $0x43c] sm:$0xf] %v696_v15 }
 0x125   : > { %699 = vst [vmem:[%s5490_s26 + $0x440] sm:$0xf] %v698_v16 }
 0x126   : > { %701 = vst [vmem:[%s5490_s26 + $0x444] sm:$0xf] %v700_v17 }
 0x127   : > { %703 = vst [vmem:[%s5490_s26 + $0x448] sm:$0xf] %v702_v18 }
 0x128   : > { %705 = vst [vmem:[%s5490_s26 + $0x44c] sm:$0xf] %v704_v19 }
 0x129   : > { %707 = vst [vmem:[%s5490_s26 + $0x450] sm:$0xf] %v706_v20 }
 0x12a   : > { %709 = vst [vmem:[%s5490_s26 + $0x454] sm:$0xf] %v708_v21 }
 0x12b   : > { %711 = vst [vmem:[%s5490_s26 + $0x458] sm:$0xf] %v710_v22 }
 0x12c   : > { %713 = vst [vmem:[%s5490_s26 + $0x45c] sm:$0xf] %v712_v23 }
 0x12d   : > { %715 = vst [vmem:[%s5490_s26 + $0x460] sm:$0xf] %v714_v24 }
 0x12e   : > { %717 = vst [vmem:[%s5490_s26 + $0x464] sm:$0xf] %v716_v25 }
 0x12f   : > { %719 = vst [vmem:[%s5490_s26 + $0x468] sm:$0xf] %v718_v26 }
 0x130   : > { %721 = vst [vmem:[%s5490_s26 + $0x46c] sm:$0xf] %v720_v27 }
 0x131   : > { %723 = vst [vmem:[%s5490_s26 + $0x470] sm:$0xf] %v722_v28 }
 0x132   : > { %725 = vst [vmem:[%s5490_s26 + $0x474] sm:$0xf] %v724_v29 }
 0x133   : > { %727 = vst [vmem:[%s5490_s26 + $0x478] sm:$0xf] %v726_v30 }
 0x134   : > { %729 = vst [vmem:[%s5490_s26 + $0x47c] sm:$0xf] %v728_v31 }
 0x135 PF: > { %p4418_p8 = scmp.ge.s32.totalorder %s5420_s13, 1  ;;  %p2506_p9 = scmp.lt.s32.totalorder %s5420_s13, 3 }
 0x137   : > { %p2507_p10 = pnand %p4418_p8, %p2506_p9 }
 0x138   : > { %s2513_s27 = sand.u32 (!%p2507_p10), 1, %s5404_s9  }
 0x139   : > { %2510 = sbr.rel (%p2507_p10) target bundleno = 635 (0x27b), region = 76 }
 0x13a   : > { %s5341_s28 = smul.u32 (!%p2507_p10), 1152, %s2513_s27 }
 0x13c   : > { %s6070_s29 = scalar_lea.vmem (!%p2507_p10), [#allocation2], %s5341_s28  ;;  %s4419_s28 = sshll.u32 (!%p2507_p10), %s2513_s27, 5 }
 0x13d   : > { %s6434_s30 = scalar_lea.vmem (!%p2507_p10), [#allocation3], %s4419_s28 }
 0x13e   : > { %v5187_v32 = vld [vmem:[%s6070_s29 + $0x38] sm:$0xff]  ;;  %v5186_v36 = vld [vmem:[%s6070_s29 + $0x30] sm:$0xff]  ;;  %v5185_v40 = vld [vmem:[%s6070_s29 + $0x28] sm:$0xff]  ;;  %s5141_s9 = sshll.u32 (%p5472_p6), %s5412_s11, 3 }
 0x13f   : > { %v5195_v33 = vld [vmem:[%s6070_s29 + $0x78] sm:$0xff]  ;;  %3915 = vmatpush.bf16.msra.mxu0 %v5187_v32  ;;  %v5194_v37 = vld [vmem:[%s6070_s29 + $0x70] sm:$0xff]  ;;  %v5193_v41 = vld [vmem:[%s6070_s29 + $0x68] sm:$0xff]  ;;  %s4276_s4 = scalar_lea.vmem (%p5472_p6), %s6467_s2, %s5141_s9 }
 0x140   : > { %v5203_v34 = vld [vmem:[%s6070_s29 + $0xb8] sm:$0xff]  ;;  %3934 = vmatpush.bf16.msra.mxu1 %v5195_v33  ;;  %v5202_v38 = vld [vmem:[%s6070_s29 + $0xb0] sm:$0xff]  ;;  %v5201_v42 = vld [vmem:[%s6070_s29 + $0xa8] sm:$0xff] }
 0x141   : > { %v5211_v35 = vld [vmem:[%s6070_s29 + $0xf8] sm:$0xff]  ;;  %3953 = vmatpush.bf16.msra.mxu2 %v5203_v34  ;;  %v5210_v39 = vld [vmem:[%s6070_s29 + $0xf0] sm:$0xff]  ;;  %v5209_v43 = vld [vmem:[%s6070_s29 + $0xe8] sm:$0xff] }
 0x142   : > { %3972 = vmatpush.bf16.msra.mxu3 %v5211_v35  ;;  %v5184_v44 = vld [vmem:[%s6070_s29 + $0x20] sm:$0xff]  ;;  %v5183_v48 = vld [vmem:[%s6070_s29 + $0x18] sm:$0xff]  ;;  %v5182_v52 = vld [vmem:[%s6070_s29 + $0x10] sm:$0xff] }
 0x143   : > { %3916 = vmatpush.bf16.msra.mxu0 %v5186_v36  ;;  %v5192_v45 = vld [vmem:[%s6070_s29 + $0x60] sm:$0xff]  ;;  %v5191_v49 = vld [vmem:[%s6070_s29 + $0x58] sm:$0xff]  ;;  %v5190_v53 = vld [vmem:[%s6070_s29 + $0x50] sm:$0xff] }
 0x144   : > { %3935 = vmatpush.bf16.msra.mxu1 %v5194_v37  ;;  %v5200_v46 = vld [vmem:[%s6070_s29 + $0xa0] sm:$0xff]  ;;  %v5199_v50 = vld [vmem:[%s6070_s29 + $0x98] sm:$0xff]  ;;  %v5198_v54 = vld [vmem:[%s6070_s29 + $0x90] sm:$0xff] }
 0x145   : > { %3954 = vmatpush.bf16.msra.mxu2 %v5202_v38  ;;  %v5208_v47 = vld [vmem:[%s6070_s29 + $0xe0] sm:$0xff]  ;;  %v5207_v51 = vld [vmem:[%s6070_s29 + $0xd8] sm:$0xff]  ;;  %v5206_v55 = vld [vmem:[%s6070_s29 + $0xd0] sm:$0xff] }
 0x146   : > { %3973 = vmatpush.bf16.msra.mxu3 %v5210_v39  ;;  %v5181_v56 = vld [vmem:[%s6070_s29 + $0x8] sm:$0xff]  ;;  %v5180_v60 = vld [vmem:[%s6070_s29] sm:$0xff]  ;;  %v5154_v5 = vld [vmem:[%s6465_s0 + $0x4c] sm:$0xf0] }
 0x147   : > { %3917 = vmatpush.bf16.msra.mxu0 %v5185_v40  ;;  %v5189_v57 = vld [vmem:[%s6070_s29 + $0x48] sm:$0xff]  ;;  %v4422_v61 = vld [vmem:[%s6465_s0] sm:$0xf]  ;;  %v5144_v2 = vld [vmem:[%s6465_s0 + $0x4] sm:$0xf] }
 0x148   : > { %3936 = vmatpush.bf16.msra.mxu1 %v5193_v41  ;;  %v5197_v58 = vld [vmem:[%s6070_s29 + $0x88] sm:$0xff]  ;;  %v5188_v63 = vld [vmem:[%s6070_s29 + $0x40] sm:$0xff]  ;;  %v4432_v7 = vld [vmem:[%s6465_s0 + $0x50] sm:$0xf0] }
 0x149   : > { %3955 = vmatpush.bf16.msra.mxu2 %v5201_v42  ;;  %v5205_v59 = vld [vmem:[%s6070_s29 + $0xc8] sm:$0xff]  ;;  %v5196_v0 = vld [vmem:[%s6070_s29 + $0x80] sm:$0xff]  ;;  %v5235_v8 = vld [vmem:[%s6070_s29 + $0x1b8] sm:$0xff] }
 0x14a   : > { %3974 = vmatpush.bf16.msra.mxu3 %v5209_v43  ;;  %v5153_v62 = vld [vmem:[%s6465_s0 + $0x44] sm:$0xf0]  ;;  %v5204_v1 = vld [vmem:[%s6070_s29 + $0xc0] sm:$0xff]  ;;  %v4424_v3 = vld [vmem:[%s6465_s0 + $0x48] sm:$0xf0] }
 0x14b   : > { %3918 = vmatpush.bf16.msra.mxu0 %v5184_v44  ;;  %v4430_v4 = vld [vmem:[%s6465_s0 + $0x8] sm:$0xf]  ;;  %v5145_v6 = vld [vmem:[%s6465_s0 + $0xc] sm:$0xf]  ;;  %v5219_v9 = vld [vmem:[%s6070_s29 + $0x138] sm:$0xff]  ;;  %v4423_v10 = vor.u32 %v5153_v62, %v4422_v61  ;;  %v4427_v11 = vor.u32 %v5144_v2, %v4424_v3 }
 0x14c   : > { %3937 = vmatpush.bf16.msra.mxu1 %v5192_v45  ;;  %v4431_v12 = vor.u32 %v5154_v5, %v4430_v4  ;;  %v4435_v13 = vor.u32 %v5145_v6, %v4432_v7  ;;  %v5227_v14 = vld [vmem:[%s6070_s29 + $0x178] sm:$0xff]  ;;  %v5234_v16 = vld [vmem:[%s6070_s29 + $0x1b0] sm:$0xff]  ;;  %v5233_v20 = vld [vmem:[%s6070_s29 + $0x1a8] sm:$0xff] }
 0x14d   : > { %3956 = vmatpush.bf16.msra.mxu2 %v5200_v46  ;;  %v5243_v15 = vld [vmem:[%s6070_s29 + $0x1f8] sm:$0xff]  ;;  %v5218_v17 = vld [vmem:[%s6070_s29 + $0x130] sm:$0xff]  ;;  %v5217_v21 = vld [vmem:[%s6070_s29 + $0x128] sm:$0xff] }
 0x14e   : > { %3975 = vmatpush.bf16.msra.mxu3 %v5208_v47  ;;  %v5226_v18 = vld [vmem:[%s6070_s29 + $0x170] sm:$0xff]  ;;  %v5225_v22 = vld [vmem:[%s6070_s29 + $0x168] sm:$0xff]  ;;  %v5232_v24 = vld [vmem:[%s6070_s29 + $0x1a0] sm:$0xff] }
 0x14f   : > { %3919 = vmatpush.bf16.msra.mxu0 %v5183_v48  ;;  %v5242_v19 = vld [vmem:[%s6070_s29 + $0x1f0] sm:$0xff]  ;;  %v5241_v23 = vld [vmem:[%s6070_s29 + $0x1e8] sm:$0xff]  ;;  %v5216_v25 = vld [vmem:[%s6070_s29 + $0x120] sm:$0xff] }
 0x150   : > { %3938 = vmatpush.bf16.msra.mxu1 %v5191_v49  ;;  %v5224_v26 = vld [vmem:[%s6070_s29 + $0x160] sm:$0xff]  ;;  %v4494_v28 = vld [vmem:[%s6465_s0 + $0x90] sm:$0xf]  ;;  %v5171_v29 = vld [vmem:[%s6465_s0 + $0xd4] sm:$0xf0] }
 0x151   : > { %3957 = vmatpush.bf16.msra.mxu2 %v5199_v50  ;;  %v5240_v27 = vld [vmem:[%s6070_s29 + $0x1e0] sm:$0xff]  ;;  %v5162_v30 = vld [vmem:[%s6465_s0 + $0x94] sm:$0xf]  ;;  %v4496_v31 = vld [vmem:[%s6465_s0 + $0xd8] sm:$0xf0]  ;;  %v4495_v38 = vor.u32 %v5171_v29, %v4494_v28 }
 0x152   : > { %3976 = vmatpush.bf16.msra.mxu3 %v5207_v51  ;;  %v4502_v32 = vld [vmem:[%s6465_s0 + $0x98] sm:$0xf]  ;;  %v5172_v33 = vld [vmem:[%s6465_s0 + $0xdc] sm:$0xf0]  ;;  %v5163_v34 = vld [vmem:[%s6465_s0 + $0x9c] sm:$0xf]  ;;  %v4499_v39 = vor.u32 %v5162_v30, %v4496_v31 }
 0x153   : > { %3920 = vmatpush.bf16.msra.mxu0 %v5182_v52  ;;  %v4504_v35 = vld [vmem:[%s6465_s0 + $0xe0] sm:$0xf0]  ;;  %v5231_v36 = vld [vmem:[%s6070_s29 + $0x198] sm:$0xff]  ;;  %v4503_v40 = vor.u32 %v5172_v33, %v4502_v32  ;;  %v5230_v44 = vld [vmem:[%s6070_s29 + $0x190] sm:$0xff] }
 0x154   : > { %3939 = vmatpush.bf16.msra.mxu1 %v5190_v53  ;;  %v5215_v37 = vld [vmem:[%s6070_s29 + $0x118] sm:$0xff]  ;;  %v4507_v41 = vor.u32 %v5163_v34, %v4504_v35  ;;  %v5214_v45 = vld [vmem:[%s6070_s29 + $0x110] sm:$0xff]  ;;  %v5229_v48 = vld [vmem:[%s6070_s29 + $0x188] sm:$0xff] }
 0x155   : > { %3958 = vmatpush.bf16.msra.mxu2 %v5198_v54  ;;  %v5223_v42 = vld [vmem:[%s6070_s29 + $0x158] sm:$0xff]  ;;  %v5222_v46 = vld [vmem:[%s6070_s29 + $0x150] sm:$0xff]  ;;  %v5213_v49 = vld [vmem:[%s6070_s29 + $0x108] sm:$0xff] }
 0x156   : > { %3977 = vmatpush.bf16.msra.mxu3 %v5206_v55  ;;  %v5239_v43 = vld [vmem:[%s6070_s29 + $0x1d8] sm:$0xff]  ;;  %v5238_v47 = vld [vmem:[%s6070_s29 + $0x1d0] sm:$0xff]  ;;  %v5221_v50 = vld [vmem:[%s6070_s29 + $0x148] sm:$0xff] }
 0x157   : > { %3921 = vmatpush.bf16.msra.mxu0 %v5181_v56  ;;  %v5237_v51 = vld [vmem:[%s6070_s29 + $0x1c8] sm:$0xff]  ;;  %v5228_v52 = vld [vmem:[%s6070_s29 + $0x180] sm:$0xff]  ;;  %v4438_v56 = vld [vmem:[%s6465_s0 + $0x10] sm:$0xf] }
 0x158   : > { %3940 = vmatpush.bf16.msra.mxu1 %v5189_v57  ;;  %v5212_v53 = vld [vmem:[%s6070_s29 + $0x100] sm:$0xff]  ;;  %v5267_v57 = vld [vmem:[%s6070_s29 + $0x2b8] sm:$0xff]  ;;  %v5266_v5 = vld [vmem:[%s6070_s29 + $0x2b0] sm:$0xff] }
 0x159   : > { %3959 = vmatpush.bf16.msra.mxu2 %v5197_v58  ;;  %v5220_v54 = vld [vmem:[%s6070_s29 + $0x140] sm:$0xff]  ;;  %v5251_v58 = vld [vmem:[%s6070_s29 + $0x238] sm:$0xff]  ;;  %v4520_v29 = vld [vmem:[%s6465_s0 + $0xf0] sm:$0xf0] }
 0x15a   : > { %3978 = vmatpush.bf16.msra.mxu3 %v5205_v59  ;;  %v5236_v55 = vld [vmem:[%s6070_s29 + $0x1c0] sm:$0xff]  ;;  %v5155_v59 = vld [vmem:[%s6465_s0 + $0x54] sm:$0xf0]  ;;  %v4440_v61 = vld [vmem:[%s6465_s0 + $0x58] sm:$0xf0] }
 0x15b   : > { %3922 = vmatpush.bf16.msra.mxu0 %v5180_v60  ;;  %v5146_v60 = vld [vmem:[%s6465_s0 + $0x14] sm:$0xf]  ;;  %v4446_v62 = vld [vmem:[%s6465_s0 + $0x18] sm:$0xf]  ;;  %v4439_v4 = vor.u32 %v5155_v59, %v4438_v56  ;;  %v4456_v56 = vld [vmem:[%s6465_s0 + $0x68] sm:$0xf0] }
 0x15c   : > { %3941 = vmatpush.bf16.msra.mxu1 %v5188_v63  ;;  %v5156_v63 = vld [vmem:[%s6465_s0 + $0x5c] sm:$0xf0]  ;;  %v5259_v2 = vld [vmem:[%s6070_s29 + $0x278] sm:$0xff]  ;;  %v4443_v6 = vor.u32 %v5146_v60, %v4440_v61  ;;  %v5262_v33 = vld [vmem:[%s6070_s29 + $0x290] sm:$0xff] }
 0x15d   : > { %3960 = vmatpush.bf16.msra.mxu2 %v5196_v0  ;;  %v5147_v0 = vld [vmem:[%s6465_s0 + $0x1c] sm:$0xf]  ;;  %v4447_v7 = vor.u32 %v5156_v63, %v4446_v62  ;;  %v5149_v59 = vld [vmem:[%s6465_s0 + $0x2c] sm:$0xf]  ;;  %v4464_v60 = vld [vmem:[%s6465_s0 + $0x70] sm:$0xf0] }
 0x15e   : > { %3979 = vmatpush.bf16.msra.mxu3 %v5204_v1  ;;  %3923 = vmatmul.bf16.vlgmr.msra.gmra.mxu0 %v4423_v10  ;;  %v4448_v1 = vld [vmem:[%s6465_s0 + $0x60] sm:$0xf0]  ;;  %v5275_v3 = vld [vmem:[%s6070_s29 + $0x2f8] sm:$0xff]  ;;  %v5258_v10 = vld [vmem:[%s6070_s29 + $0x270] sm:$0xff] }
 0x15f   : > { %3991 = vmatpush.bf16.msrb.mxu0 %v5219_v9  ;;  %3942 = vmatmul.bf16.vlgmr.msra.gmra.mxu1 %v4427_v11  ;;  %v5250_v9 = vld [vmem:[%s6070_s29 + $0x230] sm:$0xff]  ;;  %v5247_v28 = vld [vmem:[%s6070_s29 + $0x218] sm:$0xff] }
 0x160   : > { %3961 = vmatmul.bf16.vlgmr.msra.gmra.mxu2 %v4431_v12  ;;  %4010 = vmatpush.bf16.msrb.mxu1 %v5227_v14  ;;  %v5274_v11 = vld [vmem:[%s6070_s29 + $0x2f0] sm:$0xff]  ;;  %v5265_v12 = vld [vmem:[%s6070_s29 + $0x2a8] sm:$0xff]  ;;  %v5255_v30 = vld [vmem:[%s6070_s29 + $0x258] sm:$0xff] }
 0x161   : > { %4029 = vmatpush.bf16.msrb.mxu2 %v5235_v8  ;;  %3980 = vmatmul.bf16.vlgmr.msra.gmra.mxu3 %v4435_v13  ;;  %v4451_v8 = vor.u32 %v5147_v0, %v4448_v1  ;;  %v5249_v13 = vld [vmem:[%s6070_s29 + $0x228] sm:$0xff]  ;;  %v5271_v31 = vld [vmem:[%s6070_s29 + $0x2d8] sm:$0xff]  ;;  %v5290_v62 = vld [vmem:[%s6070_s29 + $0x370] sm:$0xff]  ;;  %v4467_v1 = vor.u32 %v5149_v59, %v4464_v60 }
 0x162   : > { %4048 = vmatpush.bf16.msrb.mxu3 %v5243_v15  ;;  %v5257_v14 = vld [vmem:[%s6070_s29 + $0x268] sm:$0xff]  ;;  %v5320_v59 = vld [vmem:[%s6070_s29 + $0x460] sm:$0xff]  ;;  %v5311_v60 = vld [vmem:[%s6070_s29 + $0x418] sm:$0xff] }
 0x163   : > { %3992 = vmatpush.bf16.msrb.mxu0 %v5218_v17  ;;  %v5273_v15 = vld [vmem:[%s6070_s29 + $0x2e8] sm:$0xff]  ;;  %v5248_v17 = vld [vmem:[%s6070_s29 + $0x220] sm:$0xff] }
 0x164   : > { %4011 = vmatpush.bf16.msrb.mxu1 %v5226_v18  ;;  %v5256_v18 = vld [vmem:[%s6070_s29 + $0x260] sm:$0xff] }
 0x165   : > { %4030 = vmatpush.bf16.msrb.mxu2 %v5234_v16  ;;  %v5264_v16 = vld [vmem:[%s6070_s29 + $0x2a0] sm:$0xff] }
 0x166   : > { %4049 = vmatpush.bf16.msrb.mxu3 %v5242_v19  ;;  %v5272_v19 = vld [vmem:[%s6070_s29 + $0x2e0] sm:$0xff] }
 0x167   : > { %3993 = vmatpush.bf16.msrb.mxu0 %v5217_v21  ;;  %v5173_v21 = vld [vmem:[%s6465_s0 + $0xe4] sm:$0xf0] }
 0x168   : > { %4012 = vmatpush.bf16.msrb.mxu1 %v5225_v22  ;;  %v5263_v22 = vld [vmem:[%s6070_s29 + $0x298] sm:$0xff] }
 0x169   : > { %4031 = vmatpush.bf16.msrb.mxu2 %v5233_v20  ;;  %v4510_v20 = vld [vmem:[%s6465_s0 + $0xa0] sm:$0xf] }
 0x16a   : > { %4050 = vmatpush.bf16.msrb.mxu3 %v5241_v23  ;;  %v5164_v23 = vld [vmem:[%s6465_s0 + $0xa4] sm:$0xf]  ;;  %v4511_v32 = vor.u32 %v5173_v21, %v4510_v20  ;;  %v5167_v20 = vld [vmem:[%s6465_s0 + $0xbc] sm:$0xf] }
 0x16b   : > { %3994 = vmatpush.bf16.msrb.mxu0 %v5216_v25  ;;  %v4518_v25 = vld [vmem:[%s6465_s0 + $0xa8] sm:$0xf]  ;;  %v5279_v21 = vld [vmem:[%s6070_s29 + $0x318] sm:$0xff] }
 0x16c   : > { %4013 = vmatpush.bf16.msrb.mxu1 %v5224_v26  ;;  %v5174_v26 = vld [vmem:[%s6465_s0 + $0xec] sm:$0xf0] }
 0x16d   : > { %4032 = vmatpush.bf16.msrb.mxu2 %v5232_v24  ;;  %v4512_v24 = vld [vmem:[%s6465_s0 + $0xe8] sm:$0xf0]  ;;  %v4519_v35 = vor.u32 %v5174_v26, %v4518_v25  ;;  %v5286_v26 = vld [vmem:[%s6070_s29 + $0x350] sm:$0xff] }
 0x16e   : > { %4051 = vmatpush.bf16.msrb.mxu3 %v5240_v27  ;;  %3928 = vmatmul.bf16.gmra.mxu0 %v4495_v38  ;;  %v5165_v27 = vld [vmem:[%s6465_s0 + $0xac] sm:$0xf]  ;;  %v4515_v34 = vor.u32 %v5164_v23, %v4512_v24  ;;  %v5254_v38 = vld [vmem:[%s6070_s29 + $0x250] sm:$0xff]  ;;  %v5303_v23 = vld [vmem:[%s6070_s29 + $0x3d8] sm:$0xff] }
 0x16f   : > { %3995 = vmatpush.bf16.msrb.mxu0 %v5215_v37  ;;  %3947 = vmatmul.bf16.gmra.mxu1 %v4499_v39  ;;  %v5246_v37 = vld [vmem:[%s6070_s29 + $0x210] sm:$0xff] }
 0x170   : > { %3966 = vmatmul.bf16.gmra.mxu2 %v4503_v40  ;;  %4014 = vmatpush.bf16.msrb.mxu1 %v5223_v42  ;;  %v5270_v39 = vld [vmem:[%s6070_s29 + $0x2d0] sm:$0xff]  ;;  %v5261_v40 = vld [vmem:[%s6070_s29 + $0x288] sm:$0xff] }
 0x171   : > { %4033 = vmatpush.bf16.msrb.mxu2 %v5231_v36  ;;  %3985 = vmatmul.bf16.gmra.mxu3 %v4507_v41  ;;  %v4523_v36 = vor.u32 %v5165_v27, %v4520_v29  ;;  %v5245_v41 = vld [vmem:[%s6070_s29 + $0x208] sm:$0xff]  ;;  %v5294_v24 = vld [vmem:[%s6070_s29 + $0x390] sm:$0xff] }
 0x172   : > { %4052 = vmatpush.bf16.msrb.mxu3 %v5239_v43  ;;  %v5253_v42 = vld [vmem:[%s6070_s29 + $0x248] sm:$0xff] }
 0x173   : > { %3996 = vmatpush.bf16.msrb.mxu0 %v5214_v45  ;;  %v5269_v43 = vld [vmem:[%s6070_s29 + $0x2c8] sm:$0xff]  ;;  %v5299_v45 = vld [vmem:[%s6070_s29 + $0x3b8] sm:$0xff] }
 0x174   : > { %4015 = vmatpush.bf16.msrb.mxu1 %v5222_v46  ;;  %v5244_v46 = vld [vmem:[%s6070_s29 + $0x200] sm:$0xff] }
 0x175   : > { %4034 = vmatpush.bf16.msrb.mxu2 %v5230_v44  ;;  %v5260_v44 = vld [vmem:[%s6070_s29 + $0x280] sm:$0xff] }
 0x176   : > { %4053 = vmatpush.bf16.msrb.mxu3 %v5238_v47  ;;  %v5252_v47 = vld [vmem:[%s6070_s29 + $0x240] sm:$0xff] }
 0x177   : > { %3997 = vmatpush.bf16.msrb.mxu0 %v5213_v49  ;;  %v4454_v49 = vld [vmem:[%s6465_s0 + $0x20] sm:$0xf] }
 0x178   : > { %4016 = vmatpush.bf16.msrb.mxu1 %v5221_v50  ;;  %v5157_v50 = vld [vmem:[%s6465_s0 + $0x64] sm:$0xf0] }
 0x179   : > { %4035 = vmatpush.bf16.msrb.mxu2 %v5229_v48  ;;  %v5268_v48 = vld [vmem:[%s6070_s29 + $0x2c0] sm:$0xff]  ;;  %v4455_v61 = vor.u32 %v5157_v50, %v4454_v49  ;;  %v5151_v50 = vld [vmem:[%s6465_s0 + $0x3c] sm:$0xf] }
 0x17a   : > { %4054 = vmatpush.bf16.msrb.mxu3 %v5237_v51  ;;  %v5283_v51 = vld [vmem:[%s6070_s29 + $0x338] sm:$0xff]  ;;  %v5160_v49 = vld [vmem:[%s6465_s0 + $0x7c] sm:$0xf0] }
 0x17b   : > { %3998 = vmatpush.bf16.msrb.mxu0 %v5212_v53  ;;  %v5148_v53 = vld [vmem:[%s6465_s0 + $0x24] sm:$0xf] }
 0x17c   : > { %4017 = vmatpush.bf16.msrb.mxu1 %v5220_v54  ;;  %v5307_v54 = vld [vmem:[%s6070_s29 + $0x3f8] sm:$0xff]  ;;  %v4459_v63 = vor.u32 %v5148_v53, %v4456_v56  ;;  %v5313_v56 = vld [vmem:[%s6070_s29 + $0x428] sm:$0xff] }
 0x17d   : > { %4036 = vmatpush.bf16.msrb.mxu2 %v5228_v52  ;;  %v5291_v52 = vld [vmem:[%s6070_s29 + $0x378] sm:$0xff] }
 0x17e   : > { %4055 = vmatpush.bf16.msrb.mxu3 %v5236_v55  ;;  %3999 = vmatmul.bf16.vlgmr.msrb.gmra.mxu0 %v4439_v4  ;;  %v5298_v55 = vld [vmem:[%s6070_s29 + $0x3b0] sm:$0xff]  ;;  %v5297_v4 = vld [vmem:[%s6070_s29 + $0x3a8] sm:$0xff] }
 0x17f   : > { %4067 = vmatpush.bf16.msra.mxu0 %v5251_v58  ;;  %4018 = vmatmul.bf16.vlgmr.msrb.gmra.mxu1 %v4443_v6  ;;  %v5158_v58 = vld [vmem:[%s6465_s0 + $0x6c] sm:$0xf0]  ;;  %v5281_v6 = vld [vmem:[%s6070_s29 + $0x328] sm:$0xff] }
 0x180   : > { %4086 = vmatpush.bf16.msra.mxu1 %v5259_v2  ;;  %4037 = vmatmul.bf16.vlgmr.msrb.gmra.mxu2 %v4447_v7  ;;  %v5282_v2 = vld [vmem:[%s6070_s29 + $0x330] sm:$0xff]  ;;  %v5305_v7 = vld [vmem:[%s6070_s29 + $0x3e8] sm:$0xff] }
 0x181   : > { %4105 = vmatpush.bf16.msra.mxu2 %v5267_v57  ;;  %4056 = vmatmul.bf16.vlgmr.msrb.gmra.mxu3 %v4451_v8  ;;  %v4462_v57 = vld [vmem:[%s6465_s0 + $0x28] sm:$0xf]  ;;  %v5296_v8 = vld [vmem:[%s6070_s29 + $0x3a0] sm:$0xff] }
 0x182   : > { %4124 = vmatpush.bf16.msra.mxu3 %v5275_v3  ;;  %v4463_v0 = vor.u32 %v5158_v58, %v4462_v57  ;;  %v5306_v3 = vld [vmem:[%s6070_s29 + $0x3f0] sm:$0xff]  ;;  %v5321_v57 = vld [vmem:[%s6070_s29 + $0x468] sm:$0xff]  ;;  %v5312_v58 = vld [vmem:[%s6070_s29 + $0x420] sm:$0xff] }
 0x183   : > { %4068 = vmatpush.bf16.msra.mxu0 %v5250_v9  ;;  %v5288_v9 = vld [vmem:[%s6070_s29 + $0x360] sm:$0xff] }
 0x184   : > { %4087 = vmatpush.bf16.msra.mxu1 %v5258_v10  ;;  %v5280_v10 = vld [vmem:[%s6070_s29 + $0x320] sm:$0xff] }
 0x185   : > { %4106 = vmatpush.bf16.msra.mxu2 %v5266_v5  ;;  %v5289_v5 = vld [vmem:[%s6070_s29 + $0x368] sm:$0xff] }
 0x186   : > { %4125 = vmatpush.bf16.msra.mxu3 %v5274_v11  ;;  %v5304_v11 = vld [vmem:[%s6070_s29 + $0x3e0] sm:$0xff] }
 0x187   : > { %4069 = vmatpush.bf16.msra.mxu0 %v5249_v13  ;;  %v4526_v13 = vld [vmem:[%s6465_s0 + $0xb0] sm:$0xf] }
 0x188   : > { %4088 = vmatpush.bf16.msra.mxu1 %v5257_v14  ;;  %v5175_v14 = vld [vmem:[%s6465_s0 + $0xf4] sm:$0xf0] }
 0x189   : > { %4107 = vmatpush.bf16.msra.mxu2 %v5265_v12  ;;  %v5295_v12 = vld [vmem:[%s6070_s29 + $0x398] sm:$0xff]  ;;  %v4527_v25 = vor.u32 %v5175_v14, %v4526_v13  ;;  %v5317_v13 = vld [vmem:[%s6070_s29 + $0x448] sm:$0xff]  ;;  %v5308_v14 = vld [vmem:[%s6070_s29 + $0x400] sm:$0xff] }
 0x18a   : > { %4126 = vmatpush.bf16.msra.mxu3 %v5273_v15  ;;  %v5287_v15 = vld [vmem:[%s6070_s29 + $0x358] sm:$0xff] }
 0x18b   : > { %4070 = vmatpush.bf16.msra.mxu0 %v5248_v17  ;;  %v4528_v17 = vld [vmem:[%s6465_s0 + $0xf8] sm:$0xf0] }
 0x18c   : > { %4089 = vmatpush.bf16.msra.mxu1 %v5256_v18  ;;  %v4534_v18 = vld [vmem:[%s6465_s0 + $0xb8] sm:$0xf] }
 0x18d   : > { %4108 = vmatpush.bf16.msra.mxu2 %v5264_v16  ;;  %v5166_v16 = vld [vmem:[%s6465_s0 + $0xb4] sm:$0xf] }
 0x18e   : > { %4127 = vmatpush.bf16.msra.mxu3 %v5272_v19  ;;  %4004 = vmatmul.bf16.gmra.mxu0 %v4511_v32  ;;  %v5176_v19 = vld [vmem:[%s6465_s0 + $0xfc] sm:$0xf0]  ;;  %v4531_v27 = vor.u32 %v5166_v16, %v4528_v17  ;;  %v5293_v32 = vld [vmem:[%s6070_s29 + $0x388] sm:$0xff] }
 0x18f   : > { %4071 = vmatpush.bf16.msra.mxu0 %v5247_v28  ;;  %4023 = vmatmul.bf16.gmra.mxu1 %v4515_v34  ;;  %v4535_v28 = vor.u32 %v5176_v19, %v4534_v18  ;;  %v5277_v34 = vld [vmem:[%s6070_s29 + $0x308] sm:$0xff]  ;;  %v4486_v16 = vld [vmem:[%s6465_s0 + $0x40] sm:$0xf]  ;;  %v4558_v18 = vld [vmem:[%s6465_s0 + $0xd0] sm:$0xf] }
 0x190   : > { %4090 = vmatpush.bf16.msra.mxu1 %v5255_v30  ;;  %4042 = vmatmul.bf16.gmra.mxu2 %v4519_v35  ;;  %v5278_v30 = vld [vmem:[%s6070_s29 + $0x310] sm:$0xff]  ;;  %v5301_v35 = vld [vmem:[%s6070_s29 + $0x3c8] sm:$0xff]  ;;  %v5179_v19 = vld [vmem:[%s6465_s0 + $0x114] sm:$0xf0] }
 0x191   : > { %4109 = vmatpush.bf16.msra.mxu2 %v5263_v22  ;;  %4061 = vmatmul.bf16.gmra.mxu3 %v4523_v36  ;;  %v4536_v22 = vld [vmem:[%s6465_s0 + $0x100] sm:$0xf0]  ;;  %v5161_v17 = vld [vmem:[%s6465_s0 + $0x84] sm:$0xf0] }
 0x192   : > { %4128 = vmatpush.bf16.msra.mxu3 %v5271_v31  ;;  %v4539_v29 = vor.u32 %v5167_v20, %v4536_v22  ;;  %v5302_v31 = vld [vmem:[%s6070_s29 + $0x3d0] sm:$0xff]  ;;  %v5292_v36 = vld [vmem:[%s6070_s29 + $0x380] sm:$0xff] }
 0x193   : > { %4072 = vmatpush.bf16.msra.mxu0 %v5246_v37  ;;  %v5284_v37 = vld [vmem:[%s6070_s29 + $0x340] sm:$0xff]  ;;  %v5170_v22 = vld [vmem:[%s6465_s0 + $0xd4] sm:$0xf] }
 0x194   : > { %4091 = vmatpush.bf16.msra.mxu1 %v5254_v38  ;;  %v5315_v38 = vld [vmem:[%s6070_s29 + $0x438] sm:$0xff]  ;;  %v5152_v20 = vld [vmem:[%s6465_s0 + $0x44] sm:$0xf] }
 0x195   : > { %4110 = vmatpush.bf16.msra.mxu2 %v5262_v33  ;;  %v5285_v33 = vld [vmem:[%s6070_s29 + $0x348] sm:$0xff] }
 0x196   : > { %4129 = vmatpush.bf16.msra.mxu3 %v5270_v39  ;;  %v5323_v39 = vld [vmem:[%s6070_s29 + $0x478] sm:$0xff] }
 0x197   : > { %4073 = vmatpush.bf16.msra.mxu0 %v5245_v41  ;;  %v5300_v41 = vld [vmem:[%s6070_s29 + $0x3c0] sm:$0xff] }
 0x198   : > { %4092 = vmatpush.bf16.msra.mxu1 %v5253_v42  ;;  %v4470_v42 = vld [vmem:[%s6465_s0 + $0x30] sm:$0xf] }
 0x199   : > { %4111 = vmatpush.bf16.msra.mxu2 %v5261_v40  ;;  %v5276_v40 = vld [vmem:[%s6070_s29 + $0x300] sm:$0xff] }
 0x19a   : > { %4130 = vmatpush.bf16.msra.mxu3 %v5269_v43  ;;  %v5314_v43 = vld [vmem:[%s6070_s29 + $0x430] sm:$0xff] }
 0x19b   : > { %4074 = vmatpush.bf16.msra.mxu0 %v5244_v46  ;;  %v5322_v46 = vld [vmem:[%s6070_s29 + $0x470] sm:$0xff] }
 0x19c   : > { %4093 = vmatpush.bf16.msra.mxu1 %v5252_v47  ;;  %v4472_v47 = vld [vmem:[%s6465_s0 + $0x78] sm:$0xf0] }
 0x19d   : > { %4112 = vmatpush.bf16.msra.mxu2 %v5260_v44  ;;  %v5159_v44 = vld [vmem:[%s6465_s0 + $0x74] sm:$0xf0] }
 0x19e   : > { %4131 = vmatpush.bf16.msra.mxu3 %v5268_v48  ;;  %4075 = vmatmul.bf16.vlgmr.msra.gmra.mxu0 %v4455_v61  ;;  %v4478_v48 = vld [vmem:[%s6465_s0 + $0x38] sm:$0xf] }
 0x19f   : > { %4143 = vmatpush.bf16.msrb.mxu0 %v5283_v51  ;;  %4094 = vmatmul.bf16.vlgmr.msra.gmra.mxu1 %v4459_v63  ;;  %v4480_v51 = vld [vmem:[%s6465_s0 + $0x80] sm:$0xf0]  ;;  %v5319_v61 = vld [vmem:[%s6070_s29 + $0x458] sm:$0xff]  ;;  %v5177_v63 = vld [vmem:[%s6465_s0 + $0x104] sm:$0xf0] }
 0x1a0   : > { %4162 = vmatpush.bf16.msrb.mxu1 %v5291_v52  ;;  %4113 = vmatmul.bf16.vlgmr.msra.gmra.mxu2 %v4463_v0  ;;  %v4471_v52 = vor.u32 %v5159_v44, %v4470_v42  ;;  %v5168_v0 = vld [vmem:[%s6465_s0 + $0xc4] sm:$0xf] }
 0x1a1   : > { %4181 = vmatpush.bf16.msrb.mxu2 %v5299_v45  ;;  %4132 = vmatmul.bf16.vlgmr.msra.gmra.mxu3 %v4467_v1  ;;  %v5150_v45 = vld [vmem:[%s6465_s0 + $0x34] sm:$0xf]  ;;  %v4544_v1 = vld [vmem:[%s6465_s0 + $0x108] sm:$0xf0] }
 0x1a2   : > { %4200 = vmatpush.bf16.msrb.mxu3 %v5307_v54  ;;  %v4475_v53 = vor.u32 %v5150_v45, %v4472_v47  ;;  %v4479_v54 = vor.u32 %v5160_v49, %v4478_v48 }
 0x1a3   : > { %4144 = vmatpush.bf16.msrb.mxu0 %v5282_v2  ;;  %v4550_v2 = vld [vmem:[%s6465_s0 + $0xc8] sm:$0xf] }
 0x1a4   : > { %4163 = vmatpush.bf16.msrb.mxu1 %v5290_v62  ;;  %v4542_v62 = vld [vmem:[%s6465_s0 + $0xc0] sm:$0xf] }
 0x1a5   : > { %4182 = vmatpush.bf16.msrb.mxu2 %v5298_v55  ;;  %v4483_v55 = vor.u32 %v5151_v50, %v4480_v51 }
 0x1a6   : > { %4201 = vmatpush.bf16.msrb.mxu3 %v5306_v3  ;;  %v5178_v3 = vld [vmem:[%s6465_s0 + $0x10c] sm:$0xf0] }
 0x1a7   : > { %4145 = vmatpush.bf16.msrb.mxu0 %v5281_v6  ;;  %v4552_v6 = vld [vmem:[%s6465_s0 + $0x110] sm:$0xf0] }
 0x1a8   : > { %4164 = vmatpush.bf16.msrb.mxu1 %v5289_v5  ;;  %v5169_v5 = vld [vmem:[%s6465_s0 + $0xcc] sm:$0xf] }
 0x1a9   : > { %4183 = vmatpush.bf16.msrb.mxu2 %v5297_v4  ;;  %v5310_v4 = vld [vmem:[%s6070_s29 + $0x410] sm:$0xff] }
 0x1aa   : > { %4202 = vmatpush.bf16.msrb.mxu3 %v5305_v7  ;;  %v5318_v7 = vld [vmem:[%s6070_s29 + $0x450] sm:$0xff] }
 0x1ab   : > { %4146 = vmatpush.bf16.msrb.mxu0 %v5280_v10  ;;  %v4551_v10 = vor.u32 %v5178_v3, %v4550_v2 }
 0x1ac   : > { %4165 = vmatpush.bf16.msrb.mxu1 %v5288_v9  ;;  %v4547_v9 = vor.u32 %v5168_v0, %v4544_v1 }
 0x1ad   : > { %4184 = vmatpush.bf16.msrb.mxu2 %v5296_v8  ;;  %v4543_v8 = vor.u32 %v5177_v63, %v4542_v62 }
 0x1ae   : > { %4203 = vmatpush.bf16.msrb.mxu3 %v5304_v11  ;;  %4080 = vmatmul.bf16.gmra.mxu0 %v4527_v25  ;;  %v4555_v11 = vor.u32 %v5169_v5, %v4552_v6 }
 0x1af   : > { %4147 = vmatpush.bf16.msrb.mxu0 %v5279_v21  ;;  %4099 = vmatmul.bf16.gmra.mxu1 %v4531_v27  ;;  %v4488_v21 = vld [vmem:[%s6465_s0 + $0x88] sm:$0xf0]  ;;  %v4559_v27 = vor.u32 %v5179_v19, %v4558_v18 }
 0x1b0   : > { %4166 = vmatpush.bf16.msrb.mxu1 %v5287_v15  ;;  %4118 = vmatmul.bf16.gmra.mxu2 %v4535_v28  ;;  %v5316_v15 = vld [vmem:[%s6070_s29 + $0x440] sm:$0xff]  ;;  %v4491_v28 = vor.u32 %v5152_v20, %v4488_v21 }
 0x1b1   : > { %4185 = vmatpush.bf16.msrb.mxu2 %v5295_v12  ;;  %4137 = vmatmul.bf16.gmra.mxu3 %v4539_v29  ;;  %v5309_v12 = vld [vmem:[%s6070_s29 + $0x408] sm:$0xff] }
 0x1b2   : > { %4204 = vmatpush.bf16.msrb.mxu3 %v5303_v23  ;;  %v4560_v23 = vld [vmem:[%s6465_s0 + $0x118] sm:$0xf0] }
 0x1b3   : > { %4148 = vmatpush.bf16.msrb.mxu0 %v5278_v30  ;;  %v4563_v30 = vor.u32 %v5170_v22, %v4560_v23 }
 0x1b4   : > { %4167 = vmatpush.bf16.msrb.mxu1 %v5286_v26 }
 0x1b5   : > { %4186 = vmatpush.bf16.msrb.mxu2 %v5294_v24  ;;  %v4487_v24 = vor.u32 %v5161_v17, %v4486_v16 }
 0x1b6   : > { %4205 = vmatpush.bf16.msrb.mxu3 %v5302_v31 }
 0x1b7   : > { %4149 = vmatpush.bf16.msrb.mxu0 %v5277_v34 }
 0x1b8   : > { %4168 = vmatpush.bf16.msrb.mxu1 %v5285_v33 }
 0x1b9   : > { %4187 = vmatpush.bf16.msrb.mxu2 %v5293_v32 }
 0x1ba   : > { %4206 = vmatpush.bf16.msrb.mxu3 %v5301_v35 }
 0x1bb   : > { %4150 = vmatpush.bf16.msrb.mxu0 %v5276_v40 }
 0x1bc   : > { %4169 = vmatpush.bf16.msrb.mxu1 %v5284_v37 }
 0x1bd   : > { %4188 = vmatpush.bf16.msrb.mxu2 %v5292_v36 }
 0x1be   : > { %4207 = vmatpush.bf16.msrb.mxu3 %v5300_v41  ;;  %4151 = vmatmul.bf16.vlgmr.msrb.gmra.mxu0 %v4471_v52 }
 0x1bf   : > { %4219 = vmatpush.bf16.msra.mxu0 %v5315_v38  ;;  %4170 = vmatmul.bf16.vlgmr.msrb.gmra.mxu1 %v4475_v53 }
 0x1c0   : > { %4238 = vmatpush.bf16.msra.mxu1 %v5323_v39  ;;  %4189 = vmatmul.bf16.vlgmr.msrb.gmra.mxu2 %v4479_v54 }
 0x1c1   : > { %5324 = vmatpush.bf16.msra.mxu2 %v5315_v38  ;;  %4208 = vmatmul.bf16.vlgmr.msrb.gmra.mxu3 %v4483_v55 }
 0x1c2   : > { %5332 = vmatpush.bf16.msra.mxu3 %v5323_v39 }
 0x1c3   : > { %4220 = vmatpush.bf16.msra.mxu0 %v5314_v43 }
 0x1c4   : > { %4239 = vmatpush.bf16.msra.mxu1 %v5322_v46 }
 0x1c5   : > { %5325 = vmatpush.bf16.msra.mxu2 %v5314_v43 }
 0x1c6   : > { %5333 = vmatpush.bf16.msra.mxu3 %v5322_v46 }
 0x1c7   : > { %4221 = vmatpush.bf16.msra.mxu0 %v5313_v56 }
 0x1c8   : > { %4240 = vmatpush.bf16.msra.mxu1 %v5321_v57 }
 0x1c9   : > { %5326 = vmatpush.bf16.msra.mxu2 %v5313_v56 }
 0x1ca   : > { %5334 = vmatpush.bf16.msra.mxu3 %v5321_v57 }
 0x1cb   : > { %4222 = vmatpush.bf16.msra.mxu0 %v5312_v58 }
 0x1cc   : > { %4241 = vmatpush.bf16.msra.mxu1 %v5320_v59 }
 0x1cd   : > { %5327 = vmatpush.bf16.msra.mxu2 %v5312_v58 }
 0x1ce   : > { %5335 = vmatpush.bf16.msra.mxu3 %v5320_v59  ;;  %4156 = vmatmul.bf16.gmra.mxu0 %v4543_v8 }
 0x1cf   : > { %4223 = vmatpush.bf16.msra.mxu0 %v5311_v60  ;;  %4175 = vmatmul.bf16.gmra.mxu1 %v4547_v9 }
 0x1d0   : > { %4242 = vmatpush.bf16.msra.mxu1 %v5319_v61  ;;  %4194 = vmatmul.bf16.gmra.mxu2 %v4551_v10 }
 0x1d1   : > { %5328 = vmatpush.bf16.msra.mxu2 %v5311_v60  ;;  %4213 = vmatmul.bf16.gmra.mxu3 %v4555_v11 }
 0x1d2   : > { %5336 = vmatpush.bf16.msra.mxu3 %v5319_v61 }
 0x1d3   : > { %4224 = vmatpush.bf16.msra.mxu0 %v5310_v4 }
 0x1d4   : > { %4243 = vmatpush.bf16.msra.mxu1 %v5318_v7 }
 0x1d5   : > { %5329 = vmatpush.bf16.msra.mxu2 %v5310_v4 }
 0x1d6   : > { %5337 = vmatpush.bf16.msra.mxu3 %v5318_v7 }
 0x1d7   : > { %4225 = vmatpush.bf16.msra.mxu0 %v5309_v12 }
 0x1d8   : > { %4244 = vmatpush.bf16.msra.mxu1 %v5317_v13 }
 0x1d9   : > { %5330 = vmatpush.bf16.msra.mxu2 %v5309_v12 }
 0x1da   : > { %5338 = vmatpush.bf16.msra.mxu3 %v5317_v13 }
 0x1db   : > { %4226 = vmatpush.bf16.msra.mxu0 %v5308_v14  ;;  %v3924_v25 = vpop.f32.mrf.mxu0 }
 0x1dc   : > { %4245 = vmatpush.bf16.msra.mxu1 %v5316_v15  ;;  %v3943_v26 = vpop.f32.mrf.mxu1 }
 0x1dd   : > { %5331 = vmatpush.bf16.msra.mxu2 %v5308_v14  ;;  %v3944_v29 = vadd.f32 %v3943_v26, %v3924_v25 }
 0x1de   : > { %5339 = vmatpush.bf16.msra.mxu3 %v5316_v15  ;;  %4227 = vmatmul.bf16.vlgmr.msra.gmra.mxu0 %v4487_v24 }
 0x1df   : > { %4246 = vmatmul.bf16.vlgmr.msra.gmra.mxu1 %v4491_v28 }
 0x1e0   : > { %4232 = vmatmul.bf16.vlgmr.msra.gmra.mxu2 %v4559_v27 }
 0x1e1   : > { %4251 = vmatmul.bf16.vlgmr.msra.gmra.mxu3 %v4563_v30 }
 0x1e3   : > { %v3962_v31 = vpop.f32.mrf.mxu2  ;;  %v3926_v34 = vpop.f32.mrf.mxu0 }
 0x1e4   : > { %v3981_v32 = vpop.f32.mrf.mxu3  ;;  %v3963_v33 = vadd.f32 %v3962_v31, %v3944_v29  ;;  %v3945_v35 = vpop.f32.mrf.mxu1 }
 0x1e5   : > { %v3946_v36 = vadd.f32 %v3945_v35, %v3926_v34 }
 0x1e6   : > { %v3982_v37 = vadd.f32 %v3981_v32, %v3963_v33 }
 0x1eb   : > { %v3964_v38 = vpop.f32.mrf.mxu2  ;;  %v3929_v41 = vpop.f32.mrf.mxu0 }
 0x1ec   : > { %v3983_v39 = vpop.f32.mrf.mxu3  ;;  %v3965_v40 = vadd.f32 %v3964_v38, %v3946_v36  ;;  %v3948_v42 = vpop.f32.mrf.mxu1 }
 0x1ed   : > { %v3949_v43 = vadd.f32 %v3948_v42, %v3929_v41 }
 0x1ee   : > { %v3984_v44 = vadd.f32 %v3983_v39, %v3965_v40 }
 0x1f3   : > { %v3967_v45 = vpop.f32.mrf.mxu2  ;;  %v3931_v48 = vpop.f32.mrf.mxu0 }
 0x1f4   : > { %v3986_v46 = vpop.f32.mrf.mxu3  ;;  %v3968_v47 = vadd.f32 %v3967_v45, %v3949_v43  ;;  %v3950_v49 = vpop.f32.mrf.mxu1 }
 0x1f5   : > { %v3951_v50 = vadd.f32 %v3950_v49, %v3931_v48 }
 0x1f6   : > { %v3987_v51 = vadd.f32 %v3986_v46, %v3968_v47 }
 0x1fb   : > { %v3969_v52 = vpop.f32.mrf.mxu2  ;;  %v4000_v55 = vpop.f32.mrf.mxu0 }
 0x1fc   : > { %v3988_v53 = vpop.f32.mrf.mxu3  ;;  %v3970_v54 = vadd.f32 %v3969_v52, %v3951_v50  ;;  %v4001_v56 = vadd.f32 %v4000_v55, %v3982_v37  ;;  %v4019_v57 = vpop.f32.mrf.mxu1 }
 0x1fe   : > { %v3989_v58 = vadd.f32 %v3988_v53, %v3970_v54  ;;  %v4020_v59 = vadd.f32 %v4019_v57, %v4001_v56 }
 0x203   : > { %v4038_v60 = vpop.f32.mrf.mxu2  ;;  %v4002_v63 = vpop.f32.mrf.mxu0 }
 0x204   : > { %v4039_v61 = vadd.f32 %v4038_v60, %v4020_v59  ;;  %v4057_v62 = vpop.f32.mrf.mxu3  ;;  %v4003_v0 = vadd.f32 %v4002_v63, %v3984_v44  ;;  %v4021_v1 = vpop.f32.mrf.mxu1 }
 0x206   : > { %v4058_v2 = vadd.f32 %v4057_v62, %v4039_v61  ;;  %v4022_v3 = vadd.f32 %v4021_v1, %v4003_v0 }
 0x20b   : > { %v4040_v4 = vpop.f32.mrf.mxu2  ;;  %v4005_v7 = vpop.f32.mrf.mxu0 }
 0x20c   : > { %v4041_v5 = vadd.f32 %v4040_v4, %v4022_v3  ;;  %v4059_v6 = vpop.f32.mrf.mxu3  ;;  %v4024_v8 = vpop.f32.mrf.mxu1  ;;  %v4006_v34 = vadd.f32 %v4005_v7, %v3987_v51 }
 0x20e   : > { %v4060_v9 = vadd.f32 %v4059_v6, %v4041_v5  ;;  %v4025_v36 = vadd.f32 %v4024_v8, %v4006_v34 }
 0x213   : > { %v4043_v10 = vpop.f32.mrf.mxu2  ;;  %v4007_v12 = vpop.f32.mrf.mxu0 }
 0x214   : > { %v4062_v11 = vpop.f32.mrf.mxu3  ;;  %v4026_v13 = vpop.f32.mrf.mxu1  ;;  %v4044_v41 = vadd.f32 %v4043_v10, %v4025_v36  ;;  %v4008_v42 = vadd.f32 %v4007_v12, %v3989_v58 }
 0x216   : > { %v4063_v44 = vadd.f32 %v4062_v11, %v4044_v41  ;;  %v4027_v47 = vadd.f32 %v4026_v13, %v4008_v42 }
 0x21b   : > { %v4045_v14 = vpop.f32.mrf.mxu2  ;;  %v4076_v16 = vpop.f32.mrf.mxu0 }
 0x21c   : > { %v4064_v15 = vpop.f32.mrf.mxu3  ;;  %v4095_v17 = vpop.f32.mrf.mxu1  ;;  %v4077_v39 = vadd.f32 %v4076_v16, %v4058_v2  ;;  %v4046_v54 = vadd.f32 %v4045_v14, %v4027_v47 }
 0x21e   : > { %v4096_v43 = vadd.f32 %v4095_v17, %v4077_v39  ;;  %v4065_v59 = vadd.f32 %v4064_v15, %v4046_v54 }
 0x223   : > { %v4114_v18 = vpop.f32.mrf.mxu2  ;;  %v4078_v20 = vpop.f32.mrf.mxu0 }
 0x224   : > { %v4133_v19 = vpop.f32.mrf.mxu3  ;;  %v4097_v21 = vpop.f32.mrf.mxu1  ;;  %v4115_v45 = vadd.f32 %v4114_v18, %v4096_v43  ;;  %v4079_v52 = vadd.f32 %v4078_v20, %v4060_v9 }
 0x226   : > { %v4134_v51 = vadd.f32 %v4133_v19, %v4115_v45  ;;  %v4098_v56 = vadd.f32 %v4097_v21, %v4079_v52 }
 0x22b   : > { %v4116_v22 = vpop.f32.mrf.mxu2  ;;  %v4081_v24 = vpop.f32.mrf.mxu0 }
 0x22c   : > { %v4135_v23 = vpop.f32.mrf.mxu3  ;;  %v4100_v25 = vpop.f32.mrf.mxu1  ;;  %v4082_v48 = vadd.f32 %v4081_v24, %v4063_v44  ;;  %v4117_v61 = vadd.f32 %v4116_v22, %v4098_v56 }
 0x22e   : > { %v4101_v55 = vadd.f32 %v4100_v25, %v4082_v48  ;;  %v4136_v4 = vadd.f32 %v4135_v23, %v4117_v61 }
 0x233   : > { %v4119_v26 = vpop.f32.mrf.mxu2  ;;  %v4083_v28 = vpop.f32.mrf.mxu0 }
 0x234   : > { %v4138_v27 = vpop.f32.mrf.mxu3  ;;  %v4102_v29 = vpop.f32.mrf.mxu1  ;;  %v4120_v60 = vadd.f32 %v4119_v26, %v4101_v55  ;;  %v4084_v58 = vadd.f32 %v4083_v28, %v4065_v59 }
 0x236   : > { %v4139_v3 = vadd.f32 %v4138_v27, %v4120_v60  ;;  %v4103_v6 = vadd.f32 %v4102_v29, %v4084_v58 }
 0x23b   : > { %v4121_v30 = vpop.f32.mrf.mxu2  ;;  %v4152_v32 = vpop.f32.mrf.mxu0 }
 0x23c   : > { %v4140_v31 = vpop.f32.mrf.mxu3  ;;  %v4171_v33 = vpop.f32.mrf.mxu1  ;;  %v4153_v57 = vadd.f32 %v4152_v32, %v4134_v51  ;;  %v4122_v9 = vadd.f32 %v4121_v30, %v4103_v6 }
 0x23e   : > { %v4172_v1 = vadd.f32 %v4171_v33, %v4153_v57  ;;  %v4141_v18 = vadd.f32 %v4140_v31, %v4122_v9 }
 0x243   : > { %v4190_v35 = vpop.f32.mrf.mxu2  ;;  %v4154_v38 = vpop.f32.mrf.mxu0 }
 0x244   : > { %v4209_v37 = vpop.f32.mrf.mxu3  ;;  %v4173_v40 = vpop.f32.mrf.mxu1  ;;  %v4191_v5 = vadd.f32 %v4190_v35, %v4172_v1  ;;  %v4155_v8 = vadd.f32 %v4154_v38, %v4136_v4 }
 0x246   : > { %v4210_v10 = vadd.f32 %v4209_v37, %v4191_v5  ;;  %v4174_v15 = vadd.f32 %v4173_v40, %v4155_v8 }
 0x24b   : > { %v4192_v46 = vpop.f32.mrf.mxu2  ;;  %v4157_v50 = vpop.f32.mrf.mxu0 }
 0x24c   : > { %v4211_v49 = vpop.f32.mrf.mxu3  ;;  %v4176_v53 = vpop.f32.mrf.mxu1  ;;  %v4158_v7 = vadd.f32 %v4157_v50, %v4139_v3  ;;  %v4193_v20 = vadd.f32 %v4192_v46, %v4174_v15 }
 0x24e   : > { %v4177_v12 = vadd.f32 %v4176_v53, %v4158_v7  ;;  %v4212_v25 = vadd.f32 %v4211_v49, %v4193_v20 }
 0x253   : > { %v4195_v62 = vpop.f32.mrf.mxu2  ;;  %v4159_v0 = vpop.f32.mrf.mxu0 }
 0x254   : > { %v4214_v63 = vpop.f32.mrf.mxu3  ;;  %v4178_v2 = vpop.f32.mrf.mxu1  ;;  %v4196_v19 = vadd.f32 %v4195_v62, %v4177_v12  ;;  %v4160_v22 = vadd.f32 %v4159_v0, %v4141_v18 }
 0x256   : > { %v4215_v24 = vadd.f32 %v4214_v63, %v4196_v19  ;;  %v4179_v27 = vadd.f32 %v4178_v2, %v4160_v22 }
 0x25b   : > { %v4197_v11 = vpop.f32.mrf.mxu2  ;;  %v4228_v14 = vpop.f32.mrf.mxu0 }
 0x25c   : > { %v4216_v13 = vpop.f32.mrf.mxu3  ;;  %v4229_v16 = vadd.f32 %v4228_v14, %v4210_v10  ;;  %v4247_v17 = vpop.f32.mrf.mxu1  ;;  %v4198_v32 = vadd.f32 %v4197_v11, %v4179_v27 }
 0x25e   : > { %v4248_v21 = vadd.f32 %v4247_v17, %v4229_v16  ;;  %v4217_v38 = vadd.f32 %v4216_v13, %v4198_v32 }
 0x260   : > { %v4257_v23 = vmax.f32 %v4248_v21, 0.0 }
 0x262   : > { %4261 = vst [vmem:[%s6434_s30] sm:$0xff] %v4257_v23 }
 0x263   : > { %v4233_v26 = vpop.f32.mrf.mxu2  ;;  %v4230_v30 = vpop.f32.mrf.mxu0 }
 0x264   : > { %v4234_v28 = vadd.f32 %v4233_v26, %v4215_v24  ;;  %v4252_v29 = vpop.f32.mrf.mxu3  ;;  %v4231_v31 = vadd.f32 %v4230_v30, %v4212_v25  ;;  %v4249_v34 = vpop.f32.mrf.mxu1 }
 0x266   : > { %v4253_v33 = vadd.f32 %v4252_v29, %v4234_v28  ;;  %v4250_v35 = vadd.f32 %v4249_v34, %v4231_v31 }
 0x268   : > { %v4259_v36 = vmax.f32 %v4253_v33, 0.0  ;;  %v4258_v37 = vmax.f32 %v4250_v35, 0.0 }
 0x269   : > { %v4311_v44 = vld [vmem:[%s6434_s30] sm:$0xff] (%p5472_p6) }
 0x26a   : > { %4263 = vst [vmem:[%s6434_s30 + $0x10] sm:$0xff] %v4259_v36 }
 0x26b   : > { %4262 = vst [vmem:[%s6434_s30 + $0x8] sm:$0xff] %v4258_v37  ;;  %v4235_v39 = vpop.f32.mrf.mxu2 }
 0x26c   : > { %v4236_v40 = vadd.f32 %v4235_v39, %v4217_v38  ;;  %v4254_v41 = vpop.f32.mrf.mxu3  ;;  %4312 = vst [vmem:[%s4276_s4] sm:$0xff] (%p5472_p6), %v4311_v44 }
 0x26e   : > { %v4255_v42 = vadd.f32 %v4254_v41, %v4236_v40  ;;  %4271 = sbr.rel (!%p5472_p6) target bundleno = 635 (0x27b), region = 84 }
 0x270   : > { %v4260_v43 = vmax.f32 %v4255_v42, 0.0 }
 0x271   : > { %v4315_v46 = vld [vmem:[%s6434_s30 + $0x10] sm:$0xff] (%p5472_p6) }
 0x272   : > { %4264 = vst [vmem:[%s6434_s30 + $0x18] sm:$0xff] %v4260_v43  ;;  %v4313_v45 = vld [vmem:[%s6434_s30 + $0x8] sm:$0xff] (%p5472_p6) }
 0x273   : > { %4314 = vst [vmem:[%s4276_s4 + $0x10] sm:$0xff] %v4313_v45 }
 0x274   : > { %4316 = vst [vmem:[%s4276_s4 + $0x20] sm:$0xff] %v4315_v46 }
 0x279   : > { %v4317_v47 = vld [vmem:[%s6434_s30 + $0x18] sm:$0xff] }
 0x27a   : > { %4318 = vst [vmem:[%s4276_s4 + $0x30] sm:$0xff] %v4317_v47 }
 0x27b PF: > { %s12_s13 = sadd.s32 1, %s5420_s13   ;;  %s6469_s9 = smov %s5408_s10 }
 0x27c   : > { %p9_p11 = scmp.ge.s32.totalorder %s12_s13, 4   ;;  %s6470_s10 = smov %s5477_s19 }
 0x27d   : > { %s6471_s11 = smov %s5416_s12  ;;  %s6472_s12 = smov %s6474_s14 }
 0x27e   :  { %11 = sbr.rel (!%p9_p11) target bundleno = 3 (0x3), region = 160 }

</bundles_post_ra>
